<compile_context>
chip_gen: v5e
topology: v5e:2x2
jax: 0.10.0
libtpu: 0.0.40
codegen_flags: <defaults>
</compile_context>

<pallas_src>
import functools

import jax
import jax.numpy as jnp
from jax.experimental import pallas as pl
from jax.experimental.pallas import tpu as pltpu

EXPANSION = 4


def _vmem_limit_bytes():
    # v7x: 64 MiB physical VMEM per TensorCore -> keep the scoped limit at 32 MiB.
    # v5e / v6e: 128 MiB physical -> raise to 96 MiB so big tiles pipeline near roofline.
    try:
        cap = pltpu.get_tpu_info().vmem_capacity_bytes
    except Exception:
        cap = 128 * 1024 * 1024
    return 32 * 1024 * 1024 if cap <= 64 * 1024 * 1024 else 96 * 1024 * 1024


# ----------------------------------------------------------------------------
# Fully fused bottleneck kernel (one grid step = one image)
# ----------------------------------------------------------------------------
def _bottleneck_kernel(x_ref, w1_ref, b1_ref, w2_ref, b2_ref, w3_ref, b3_ref,
                       *rest, H, W, has_proj):
    if has_proj:
        wsc_ref, bsc_ref, o_ref, h1pad_ref = rest
    else:
        o_ref, h1pad_ref = rest

    planes = w1_ref.shape[1]
    x = x_ref[0]                                            # (H*W, Cin) bf16, VMEM-resident

    # ---- conv1 (1x1) + bn1 + relu : bf16 operands, fp32 MXU accumulation ----
    a1 = jnp.dot(x, w1_ref[...], preferred_element_type=jnp.float32)
    h1 = jnp.maximum(a1 + b1_ref[...], 0.0).astype(jnp.bfloat16)

    # ---- zero-padded halo built directly in VMEM scratch (no HBM pad pass) ----
    h1pad_ref[...] = jnp.zeros_like(h1pad_ref)
    h1pad_ref[pl.ds(1, H), pl.ds(1, W), :] = h1.reshape(H, W, planes)
    xt = h1pad_ref[...]                                     # (H+2, W+2, planes) bf16

    # ---- conv2 (3x3, pad=1) + bn2 + relu : ONE K = 9*planes matmul (im2col in VMEM) ----
    cols = []
    for kh in range(3):
        for kw in range(3):
            tap = jax.lax.slice(xt, (kh, kw, 0), (kh + H, kw + W, planes))
            cols.append(tap.reshape(H * W, planes))
    patch = jnp.concatenate(cols, axis=-1)                  # (H*W, 9*planes), K order (kh,kw,c)
    a2 = jnp.dot(patch, w2_ref[...], preferred_element_type=jnp.float32)
    h2 = jnp.maximum(a2 + b2_ref[...], 0.0).astype(jnp.bfloat16)

    # ---- conv3 (1x1) + bn3 + shortcut + final relu, all in the fp32 accumulator ----
    a3 = jnp.dot(h2, w3_ref[...], preferred_element_type=jnp.float32) + b3_ref[...]
    if has_proj:
        sc = jnp.dot(x, wsc_ref[...], preferred_element_type=jnp.float32) + bsc_ref[...]
    else:
        sc = x.astype(jnp.float32)                          # identity: Cin == 4*planes
    o_ref[...] = jnp.maximum(a3 + sc, 0.0)[None].astype(o_ref.dtype)


def bottleneck_apply_nhwc(p, x_nhwc):
    """x_nhwc: (N, H, W, Cin). Returns (N, H, W, 4*planes) bf16 (lane-dense channels-last)."""
    N, H, W, Cin = x_nhwc.shape
    planes = p["w1"].shape[1]
    cout = p["w3"].shape[1]
    has_proj = bool(p["has_shortcut"])
    if not has_proj:
        assert Cin == cout, "identity shortcut requires in_planes == expansion*planes"

    x = x_nhwc.astype(jnp.bfloat16).reshape(N, H * W, Cin)  # free row-major reshape

    const2d = lambda n: (0, 0)
    in_specs = [
        pl.BlockSpec((1, H * W, Cin), lambda n: (n, 0, 0)),
        pl.BlockSpec((Cin, planes), const2d),
        pl.BlockSpec((1, planes), const2d),
        pl.BlockSpec((9 * planes, planes), const2d),
        pl.BlockSpec((1, planes), const2d),
        pl.BlockSpec((planes, cout), const2d),
        pl.BlockSpec((1, cout), const2d),
    ]
    args = [
        x,
        p["w1"].astype(jnp.bfloat16), p["b1"].reshape(1, -1).astype(jnp.float32),
        p["w2"].astype(jnp.bfloat16), p["b2"].reshape(1, -1).astype(jnp.float32),
        p["w3"].astype(jnp.bfloat16), p["b3"].reshape(1, -1).astype(jnp.float32),
    ]
    if has_proj:
        in_specs += [pl.BlockSpec((Cin, cout), const2d), pl.BlockSpec((1, cout), const2d)]
        args += [p["wsc"].astype(jnp.bfloat16), p["bsc"].reshape(1, -1).astype(jnp.float32)]

    out = pl.pallas_call(
        functools.partial(_bottleneck_kernel, H=H, W=W, has_proj=has_proj),
        out_shape=jax.ShapeDtypeStruct((N, H * W, cout), jnp.bfloat16),
        grid=(N,),
        in_specs=in_specs,
        out_specs=pl.BlockSpec((1, H * W, cout), lambda n: (n, 0, 0)),
        scratch_shapes=[pltpu.VMEM((H + 2, W + 2, planes), jnp.bfloat16)],
        compiler_params=pltpu.CompilerParams(
            dimension_semantics=("parallel",),
            vmem_limit_bytes=_vmem_limit_bytes(),
        ),
    )(*args)
    return out.reshape(N, H, W, cout)


def bottleneck_apply(p, x_nchw):
    """PyTorch-parity wrapper: NCHW in -> NCHW out (bf16). For chained blocks prefer
    bottleneck_apply_nhwc to avoid layout transposes at every block boundary."""
    x = jnp.transpose(x_nchw, (0, 2, 3, 1))
    out = bottleneck_apply_nhwc(p, x)
    return jnp.transpose(out, (0, 3, 1, 2))


# ----------------------------------------------------------------------------
# Deterministic parameter init (BN eval-mode scale/shift folded into the convs)
# ----------------------------------------------------------------------------
def init_conv(key, kh, kw, cin, cout):
    fan_in = kh * kw * cin
    return jax.random.normal(key, (kh, kw, cin, cout), jnp.float32) * (2.0 / fan_in) ** 0.5


def init_bn_folded(key, c, eps=1e-5):
    k1, k2 = jax.random.split(key)
    gamma = jax.random.uniform(k1, (c,), jnp.float32, 0.5, 1.5)
    beta = jax.random.normal(k2, (c,), jnp.float32) * 0.1
    running_mean = jnp.zeros((c,), jnp.float32)
    running_var = jnp.ones((c,), jnp.float32)
    scale = gamma / jnp.sqrt(running_var + eps)
    bias = beta - running_mean * scale
    return scale, bias


def bottleneck_init(key, in_planes, planes, stride=1):
    keys = jax.random.split(key, 9)
    cout = EXPANSION * planes
    s1, b1 = init_bn_folded(keys[1], planes)
    s2, b2 = init_bn_folded(keys[3], planes)
    s3, b3 = init_bn_folded(keys[5], cout)
    w1 = init_conv(keys[0], 1, 1, in_planes, planes).reshape(in_planes, planes)
    # 3x3 weight packed for the in-kernel im2col matmul: K index order = (kh, kw, cin).
    w2 = init_conv(keys[2], 3, 3, planes, planes).reshape(9 * planes, planes)
    w3 = init_conv(keys[4], 1, 1, planes, cout).reshape(planes, cout)
    p = {
        "w1": w1 * s1[None, :], "b1": b1,
        "w2": w2 * s2[None, :], "b2": b2,
        "w3": w3 * s3[None, :], "b3": b3,
        "has_shortcut": (stride != 1) or (in_planes != cout),
    }
    if p["has_shortcut"]:
        ssc, bsc = init_bn_folded(keys[7], cout)
        wsc = init_conv(keys[6], 1, 1, in_planes, cout).reshape(in_planes, cout)
        # PyTorch shortcut Conv2d has bias=True (default); fold the conv bias through BN.
        bound = 1.0 / (in_planes ** 0.5)
        bsc_conv = jax.random.uniform(keys[8], (cout,), jnp.float32, -bound, bound)
        p["wsc"] = wsc * ssc[None, :]
        p["bsc"] = ssc * bsc_conv + bsc
    return p


# ----------------------------------------------------------------------------
# Pure-JAX reference (fp32 math on bf16-rounded inputs/weights, same folded params)
# ----------------------------------------------------------------------------
def bottleneck_reference(p, x_nchw):
    f = lambda a: a.astype(jnp.bfloat16).astype(jnp.float32)
    x = f(jnp.transpose(x_nchw, (0, 2, 3, 1)))
    N, H, W, Cin = x.shape
    planes = p["w1"].shape[1]
    cout = p["w3"].shape[1]
    h1 = jnp.maximum(x.reshape(-1, Cin) @ f(p["w1"]) + p["b1"], 0.0).reshape(N, H, W, planes)
    hp = jnp.pad(h1, ((0, 0), (1, 1), (1, 1), (0, 0)))
    cols = [hp[:, kh:kh + H, kw:kw + W, :] for kh in range(3) for kw in range(3)]
    patch = jnp.concatenate(cols, axis=-1).reshape(N * H * W, 9 * planes)
    h2 = jnp.maximum(patch @ f(p["w2"]) + p["b2"], 0.0)
    if p["has_shortcut"]:
        sc = x.reshape(-1, Cin) @ f(p["wsc"]) + p["bsc"]
    else:
        sc = x.reshape(-1, Cin)
    out = jnp.maximum(h2 @ f(p["w3"]) + p["b3"] + sc, 0.0).reshape(N, H, W, cout)
    return jnp.transpose(out, (0, 3, 1, 2))


if __name__ == "__main__":
    key = jax.random.PRNGKey(0)
    k_p1, k_p2, k_x1, k_x2 = jax.random.split(key, 4)

    N, H, W = 4, 16, 16          # 4 "parallel" grid steps (>=2 TCs stay busy on v7x)
    planes = 32                  # cout = 128 -> lane-dense output stores

    # Config 1: projection shortcut active (in_planes != expansion*planes).
    in_planes = 64
    p1 = bottleneck_init(k_p1, in_planes, planes, stride=1)
    x1 = jax.random.normal(k_x1, (N, in_planes, H, W), jnp.float32)   # NCHW, like PyTorch
    out1 = jax.block_until_ready(bottleneck_apply(p1, x1))
    assert out1.shape == (N, EXPANSION * planes, H, W), out1.shape
    assert bool(jnp.all(jnp.isfinite(out1)))
    ref1 = bottleneck_reference(p1, x1)
    assert bool(jnp.allclose(out1.astype(jnp.float32), ref1, atol=1e-1, rtol=1e-1)), (
        float(jnp.max(jnp.abs(out1.astype(jnp.float32) - ref1))))

    # Config 2: identity shortcut (in_planes == expansion*planes).
    in_planes2 = EXPANSION * planes
    p2 = bottleneck_init(k_p2, in_planes2, planes, stride=1)
    x2 = jax.random.normal(k_x2, (N, in_planes2, H, W), jnp.float32)
    out2 = jax.block_until_ready(bottleneck_apply(p2, x2))
    assert out2.shape == (N, EXPANSION * planes, H, W), out2.shape
    assert bool(jnp.all(jnp.isfinite(out2)))
    ref2 = bottleneck_reference(p2, x2)
    assert bool(jnp.allclose(out2.astype(jnp.float32), ref2, atol=1e-1, rtol=1e-1)), (
        float(jnp.max(jnp.abs(out2.astype(jnp.float32) - ref2))))

    print("KERNEL_OK")
</pallas_src>

<mosaic_0001>
module attributes {stable_mosaic.version = 11 : i64} {
  func.func @_bottleneck_kernel(%arg0: i32, %arg1: memref<1x256x64xbf16, #tpu.memory_space<vmem>>, %arg2: memref<64x32xbf16, #tpu.memory_space<vmem>>, %arg3: memref<1x32xf32, #tpu.memory_space<vmem>>, %arg4: memref<288x32xbf16, #tpu.memory_space<vmem>>, %arg5: memref<1x32xf32, #tpu.memory_space<vmem>>, %arg6: memref<32x128xbf16, #tpu.memory_space<vmem>>, %arg7: memref<1x128xf32, #tpu.memory_space<vmem>>, %arg8: memref<64x128xbf16, #tpu.memory_space<vmem>>, %arg9: memref<1x128xf32, #tpu.memory_space<vmem>>, %arg10: memref<1x256x128xbf16, #tpu.memory_space<vmem>>, %arg11: memref<18x18x32xbf16, #tpu.memory_space<vmem>>) attributes {dimension_semantics = [#tpu.dimension_semantics<parallel>], iteration_bounds = array<i64: 4>, scalar_prefetch = 0 : i64, scratch_operands = 1 : i64, tpu.core_type = #tpu.core_type<tc>, window_params = [{transform_indices = @transform_0, window_bounds = array<i64: 1, 256, 64>}, {pipeline_mode = #tpu.pipeline_mode<synchronous>, transform_indices = @transform_1, window_bounds = array<i64: 64, 32>}, {pipeline_mode = #tpu.pipeline_mode<synchronous>, transform_indices = @transform_2, window_bounds = array<i64: 1, 32>}, {pipeline_mode = #tpu.pipeline_mode<synchronous>, transform_indices = @transform_3, window_bounds = array<i64: 288, 32>}, {pipeline_mode = #tpu.pipeline_mode<synchronous>, transform_indices = @transform_4, window_bounds = array<i64: 1, 32>}, {pipeline_mode = #tpu.pipeline_mode<synchronous>, transform_indices = @transform_5, window_bounds = array<i64: 32, 128>}, {pipeline_mode = #tpu.pipeline_mode<synchronous>, transform_indices = @transform_6, window_bounds = array<i64: 1, 128>}, {pipeline_mode = #tpu.pipeline_mode<synchronous>, transform_indices = @transform_7, window_bounds = array<i64: 64, 128>}, {pipeline_mode = #tpu.pipeline_mode<synchronous>, transform_indices = @transform_8, window_bounds = array<i64: 1, 128>}, {transform_indices = @transform_9, window_bounds = array<i64: 1, 256, 128>}]} {
    %c0 = arith.constant 0 : index
    %c0_0 = arith.constant 0 : index
    %c0_1 = arith.constant 0 : index
    %0 = vector.load %arg1[%c0, %c0_0, %c0_1] : memref<1x256x64xbf16, #tpu.memory_space<vmem>>, vector<1x256x64xbf16>
    %1 = vector.shape_cast %0 : vector<1x256x64xbf16> to vector<256x64xbf16>
    %c0_2 = arith.constant 0 : index
    %c0_3 = arith.constant 0 : index
    %2 = vector.load %arg2[%c0_2, %c0_3] : memref<64x32xbf16, #tpu.memory_space<vmem>>, vector<64x32xbf16>
    %cst = arith.constant dense<0.000000e+00> : vector<256x32xf32>
    %3 = tpu.matmul %1, %2, %cst {dimension_numbers = #tpu.dot_dimension_numbers<[1], [0], [0], [1], [0, 0, 1, 1], [], []>} : vector<256x64xbf16>, vector<64x32xbf16>, vector<256x32xf32> -> vector<256x32xf32>
    %c0_4 = arith.constant 0 : index
    %c0_5 = arith.constant 0 : index
    %4 = vector.load %arg3[%c0_4, %c0_5] : memref<1x32xf32, #tpu.memory_space<vmem>>, vector<1x32xf32>
    %5 = vector.broadcast %4 : vector<1x32xf32> to vector<256x32xf32>
    %6 = arith.addf %3, %5 : vector<256x32xf32>
    %cst_6 = arith.constant 0.000000e+00 : f32
    %7 = vector.broadcast %cst_6 : f32 to vector<256x32xf32>
    %8 = arith.maximumf %6, %7 : vector<256x32xf32>
    %9 = arith.truncf %8 : vector<256x32xf32> to vector<256x32xbf16>
    %cst_7 = arith.constant 0.000000e+00 : bf16
    %10 = vector.broadcast %cst_7 : bf16 to vector<18x18x32xbf16>
    %c0_8 = arith.constant 0 : index
    %c0_9 = arith.constant 0 : index
    %c0_10 = arith.constant 0 : index
    %11 = vector.load %arg11[%c0_8, %c0_9, %c0_10] : memref<18x18x32xbf16, #tpu.memory_space<vmem>>, vector<18x18x32xbf16>
    tpu.vector_store %arg11[%c0_8, %c0_9, %c0_10], %10 {strides = array<i32>} : memref<18x18x32xbf16, #tpu.memory_space<vmem>>, vector<18x18x32xbf16>,
    %12 = vector.shape_cast %9 : vector<256x32xbf16> to vector<16x16x32xbf16>
    %c1 = arith.constant 1 : index
    %c1_11 = arith.constant 1 : index
    %c0_12 = arith.constant 0 : index
    %13 = vector.load %arg11[%c1, %c1_11, %c0_12] : memref<18x18x32xbf16, #tpu.memory_space<vmem>>, vector<16x16x32xbf16>
    tpu.vector_store %arg11[%c1, %c1_11, %c0_12], %12 {strides = array<i32>} : memref<18x18x32xbf16, #tpu.memory_space<vmem>>, vector<16x16x32xbf16>,
    %c0_13 = arith.constant 0 : index
    %c0_14 = arith.constant 0 : index
    %c0_15 = arith.constant 0 : index
    %14 = vector.load %arg11[%c0_13, %c0_14, %c0_15] : memref<18x18x32xbf16, #tpu.memory_space<vmem>>, vector<18x18x32xbf16>
    %15 = vector.extract_strided_slice %14 {offsets = [0, 0, 0], sizes = [16, 16, 32], strides = [1, 1, 1]} : vector<18x18x32xbf16> to vector<16x16x32xbf16>
    %16 = vector.shape_cast %15 : vector<16x16x32xbf16> to vector<256x32xbf16>
    %17 = vector.extract_strided_slice %14 {offsets = [0, 1, 0], sizes = [16, 16, 32], strides = [1, 1, 1]} : vector<18x18x32xbf16> to vector<16x16x32xbf16>
    %18 = vector.shape_cast %17 : vector<16x16x32xbf16> to vector<256x32xbf16>
    %19 = vector.extract_strided_slice %14 {offsets = [0, 2, 0], sizes = [16, 16, 32], strides = [1, 1, 1]} : vector<18x18x32xbf16> to vector<16x16x32xbf16>
    %20 = vector.shape_cast %19 : vector<16x16x32xbf16> to vector<256x32xbf16>
    %21 = vector.extract_strided_slice %14 {offsets = [1, 0, 0], sizes = [16, 16, 32], strides = [1, 1, 1]} : vector<18x18x32xbf16> to vector<16x16x32xbf16>
    %22 = vector.shape_cast %21 : vector<16x16x32xbf16> to vector<256x32xbf16>
    %23 = vector.extract_strided_slice %14 {offsets = [1, 1, 0], sizes = [16, 16, 32], strides = [1, 1, 1]} : vector<18x18x32xbf16> to vector<16x16x32xbf16>
    %24 = vector.shape_cast %23 : vector<16x16x32xbf16> to vector<256x32xbf16>
    %25 = vector.extract_strided_slice %14 {offsets = [1, 2, 0], sizes = [16, 16, 32], strides = [1, 1, 1]} : vector<18x18x32xbf16> to vector<16x16x32xbf16>
    %26 = vector.shape_cast %25 : vector<16x16x32xbf16> to vector<256x32xbf16>
    %27 = vector.extract_strided_slice %14 {offsets = [2, 0, 0], sizes = [16, 16, 32], strides = [1, 1, 1]} : vector<18x18x32xbf16> to vector<16x16x32xbf16>
    %28 = vector.shape_cast %27 : vector<16x16x32xbf16> to vector<256x32xbf16>
    %29 = vector.extract_strided_slice %14 {offsets = [2, 1, 0], sizes = [16, 16, 32], strides = [1, 1, 1]} : vector<18x18x32xbf16> to vector<16x16x32xbf16>
    %30 = vector.shape_cast %29 : vector<16x16x32xbf16> to vector<256x32xbf16>
    %31 = vector.extract_strided_slice %14 {offsets = [2, 2, 0], sizes = [16, 16, 32], strides = [1, 1, 1]} : vector<18x18x32xbf16> to vector<16x16x32xbf16>
    %32 = vector.shape_cast %31 : vector<16x16x32xbf16> to vector<256x32xbf16>
    %33 = tpu.concatenate %16, %18, %20, %22, %24, %26, %28, %30, %32 in 1 : vector<256x32xbf16>, vector<256x32xbf16>, vector<256x32xbf16>, vector<256x32xbf16>, vector<256x32xbf16>, vector<256x32xbf16>, vector<256x32xbf16>, vector<256x32xbf16>, vector<256x32xbf16> -> vector<256x288xbf16>
    %c0_16 = arith.constant 0 : index
    %c0_17 = arith.constant 0 : index
    %34 = vector.load %arg4[%c0_16, %c0_17] : memref<288x32xbf16, #tpu.memory_space<vmem>>, vector<288x32xbf16>
    %cst_18 = arith.constant dense<0.000000e+00> : vector<256x32xf32>
    %35 = tpu.matmul %33, %34, %cst_18 {dimension_numbers = #tpu.dot_dimension_numbers<[1], [0], [0], [1], [0, 0, 1, 1], [], []>} : vector<256x288xbf16>, vector<288x32xbf16>, vector<256x32xf32> -> vector<256x32xf32>
    %c0_19 = arith.constant 0 : index
    %c0_20 = arith.constant 0 : index
    %36 = vector.load %arg5[%c0_19, %c0_20] : memref<1x32xf32, #tpu.memory_space<vmem>>, vector<1x32xf32>
    %37 = vector.broadcast %36 : vector<1x32xf32> to vector<256x32xf32>
    %38 = arith.addf %35, %37 : vector<256x32xf32>
    %cst_21 = arith.constant 0.000000e+00 : f32
    %39 = vector.broadcast %cst_21 : f32 to vector<256x32xf32>
    %40 = arith.maximumf %38, %39 : vector<256x32xf32>
    %41 = arith.truncf %40 : vector<256x32xf32> to vector<256x32xbf16>
    %c0_22 = arith.constant 0 : index
    %c0_23 = arith.constant 0 : index
    %42 = vector.load %arg6[%c0_22, %c0_23] : memref<32x128xbf16, #tpu.memory_space<vmem>>, vector<32x128xbf16>
    %cst_24 = arith.constant dense<0.000000e+00> : vector<256x128xf32>
    %43 = tpu.matmul %41, %42, %cst_24 {dimension_numbers = #tpu.dot_dimension_numbers<[1], [0], [0], [1], [0, 0, 1, 1], [], []>} : vector<256x32xbf16>, vector<32x128xbf16>, vector<256x128xf32> -> vector<256x128xf32>
    %c0_25 = arith.constant 0 : index
    %c0_26 = arith.constant 0 : index
    %44 = vector.load %arg7[%c0_25, %c0_26] : memref<1x128xf32, #tpu.memory_space<vmem>>, vector<1x128xf32>
    %45 = vector.broadcast %44 : vector<1x128xf32> to vector<256x128xf32>
    %46 = arith.addf %43, %45 : vector<256x128xf32>
    %c0_27 = arith.constant 0 : index
    %c0_28 = arith.constant 0 : index
    %47 = vector.load %arg8[%c0_27, %c0_28] : memref<64x128xbf16, #tpu.memory_space<vmem>>, vector<64x128xbf16>
    %cst_29 = arith.constant dense<0.000000e+00> : vector<256x128xf32>
    %48 = tpu.matmul %1, %47, %cst_29 {dimension_numbers = #tpu.dot_dimension_numbers<[1], [0], [0], [1], [0, 0, 1, 1], [], []>} : vector<256x64xbf16>, vector<64x128xbf16>, vector<256x128xf32> -> vector<256x128xf32>
    %c0_30 = arith.constant 0 : index
    %c0_31 = arith.constant 0 : index
    %49 = vector.load %arg9[%c0_30, %c0_31] : memref<1x128xf32, #tpu.memory_space<vmem>>, vector<1x128xf32>
    %50 = vector.broadcast %49 : vector<1x128xf32> to vector<256x128xf32>
    %51 = arith.addf %48, %50 : vector<256x128xf32>
    %52 = arith.addf %46, %51 : vector<256x128xf32>
    %cst_32 = arith.constant 0.000000e+00 : f32
    %53 = vector.broadcast %cst_32 : f32 to vector<256x128xf32>
    %54 = arith.maximumf %52, %53 : vector<256x128xf32>
    %55 = vector.shape_cast %54 : vector<256x128xf32> to vector<1x256x128xf32>
    %56 = arith.truncf %55 : vector<1x256x128xf32> to vector<1x256x128xbf16>
    %c0_33 = arith.constant 0 : index
    %c0_34 = arith.constant 0 : index
    %c0_35 = arith.constant 0 : index
    %57 = vector.load %arg10[%c0_33, %c0_34, %c0_35] : memref<1x256x128xbf16, #tpu.memory_space<vmem>>, vector<1x256x128xbf16>
    tpu.vector_store %arg10[%c0_33, %c0_34, %c0_35], %56 {strides = array<i32>} : memref<1x256x128xbf16, #tpu.memory_space<vmem>>, vector<1x256x128xbf16>,
    return
  }
  func.func @transform_0(%arg0: i32) -> (i32, i32, i32) {
    %c0_i32 = arith.constant 0 : i32
    %c0_i32_0 = arith.constant 0 : i32
    %c0_i32_1 = arith.constant 0 : i32
    return %arg0, %c0_i32, %c0_i32_0 : i32, i32, i32
  }
  func.func @transform_1(%arg0: i32) -> (i32, i32) {
    %c0_i32 = arith.constant 0 : i32
    %c0_i32_0 = arith.constant 0 : i32
    %c0_i32_1 = arith.constant 0 : i32
    return %c0_i32, %c0_i32_0 : i32, i32
  }
  func.func @transform_2(%arg0: i32) -> (i32, i32) {
    %c0_i32 = arith.constant 0 : i32
    %c0_i32_0 = arith.constant 0 : i32
    %c0_i32_1 = arith.constant 0 : i32
    return %c0_i32, %c0_i32_0 : i32, i32
  }
  func.func @transform_3(%arg0: i32) -> (i32, i32) {
    %c0_i32 = arith.constant 0 : i32
    %c0_i32_0 = arith.constant 0 : i32
    %c0_i32_1 = arith.constant 0 : i32
    return %c0_i32, %c0_i32_0 : i32, i32
  }
  func.func @transform_4(%arg0: i32) -> (i32, i32) {
    %c0_i32 = arith.constant 0 : i32
    %c0_i32_0 = arith.constant 0 : i32
    %c0_i32_1 = arith.constant 0 : i32
    return %c0_i32, %c0_i32_0 : i32, i32
  }
  func.func @transform_5(%arg0: i32) -> (i32, i32) {
    %c0_i32 = arith.constant 0 : i32
    %c0_i32_0 = arith.constant 0 : i32
    %c0_i32_1 = arith.constant 0 : i32
    return %c0_i32, %c0_i32_0 : i32, i32
  }
  func.func @transform_6(%arg0: i32) -> (i32, i32) {
    %c0_i32 = arith.constant 0 : i32
    %c0_i32_0 = arith.constant 0 : i32
    %c0_i32_1 = arith.constant 0 : i32
    return %c0_i32, %c0_i32_0 : i32, i32
  }
  func.func @transform_7(%arg0: i32) -> (i32, i32) {
    %c0_i32 = arith.constant 0 : i32
    %c0_i32_0 = arith.constant 0 : i32
    %c0_i32_1 = arith.constant 0 : i32
    return %c0_i32, %c0_i32_0 : i32, i32
  }
  func.func @transform_8(%arg0: i32) -> (i32, i32) {
    %c0_i32 = arith.constant 0 : i32
    %c0_i32_0 = arith.constant 0 : i32
    %c0_i32_1 = arith.constant 0 : i32
    return %c0_i32, %c0_i32_0 : i32, i32
  }
  func.func @transform_9(%arg0: i32) -> (i32, i32, i32) {
    %c0_i32 = arith.constant 0 : i32
    %c0_i32_0 = arith.constant 0 : i32
    %c0_i32_1 = arith.constant 0 : i32
    return %arg0, %c0_i32, %c0_i32_0 : i32, i32, i32
  }
}

</mosaic_0001>

<bundles_post_ra>
// kernel: tpu_custom_call.1
= control target key start
LH: loop header
LB: loop body
LE: loop exit
PB: predicated region body
PF: predicated region fallthrough
CT: control target
= control target key end

     0   :  { %14 = vsyncpa [#allocation4], 0  ;;  %s5860_s0 = inlined_call_operand.vmem [shape: bf16[4,256,64], index: 0, kind: input, shape index: {}]   ;;  %s5861_s1 = inlined_call_operand.vmem [shape: bf16[64,32], index: 1, kind: input, shape index: {}]   ;;  %s5862_s2 = inlined_call_operand.vmem [shape: f32[1,32], index: 2, kind: input, shape index: {}]   ;;  %s5863_s3 = inlined_call_operand.vmem [shape: bf16[288,32], index: 3, kind: input, shape index: {}]   ;;  %s5864_s4 = inlined_call_operand.vmem [shape: f32[1,32], index: 4, kind: input, shape index: {}]   ;;  %s5865_s5 = inlined_call_operand.vmem [shape: bf16[32,128], index: 5, kind: input, shape index: {}]   ;;  %s5866_s6 = inlined_call_operand.vmem [shape: f32[1,128], index: 6, kind: input, shape index: {}]   ;;  %s5867_s7 = inlined_call_operand.vmem [shape: bf16[64,128], index: 7, kind: input, shape index: {}]   ;;  %s5868_s8 = inlined_call_operand.vmem [shape: f32[1,128], index: 8, kind: input, shape index: {}]   ;;  %s5869_s9 = inlined_call_operand.hbm [shape: bf16[4,256,128], index: 9, kind: output, shape index: {}]  }
   0x1   :  { %16 = vsyncpa [#allocation4 + $0x1], 0  ;;  %s4167_s30 = smov 0   ;;  %s4169_s10 = smov 0  }
   0x2   :  { %s4171_s11 = smov 0   ;;  %s4173_s12 = smov 0  }
   0x3 LB: > { %s4188_s13 = sadd.s32 4294967295, %s4110_s12   ;;  %s3462_s14 = sadd.s32 4294967294, %s4110_s12   ;;  %s4110_s12 = sphi %s4173_s12, %s5901_s12   ;;  %s4106_s11 = sphi %s4171_s11, %s5900_s11   ;;  %s4102_s10 = sphi %s4169_s10, %s5899_s10   ;;  %s4098_s30 = sphi %s4167_s30, %s5898_s30  }
   0x4   : > { %s4192_s15 = sadd.s32 1, %s4110_s12   ;;  %s223_s16 = sadd.s32 1, %s4106_s11 }
   0x5   : > { %s220_s17 = ssub.s32 %s4110_s12, %s4192_s15  ;;  %p233_p0 = scmp.ne.s32.totalorder %s4106_s11, %s4102_s10 }
   0x6   : > { %p221_p1 = scmp.eq.s32.totalorder %s220_s17, 0  ;;  %p234_p2 = scmp.eq.s32.totalorder %s4188_s13, 3 }
   0x7   : > { %p239_p3 = scmp.ne.s32.totalorder %s4102_s10, %s4098_s30  ;;  %p240_p4 = scmp.eq.s32.totalorder %s3462_s14, 3 }
   0x8   : > { %s4203_s18 = scalar_select %p221_p1, %s4106_s11, %s223_s16  }
   0x9   : > { %p4205_p5 = por %p234_p2, %p233_p0  ;;  %p4209_p6 = por %p240_p4, %p239_p3 }
   0xa   : > { %p3465_p7 = scmp.ge.s32.totalorder %s4110_s12, 1  ;;  %p290_p8 = scmp.lt.s32.totalorder %s4110_s12, 5 }
   0xc   : > { %p291_p9 = pnand %p3465_p7, %p290_p8 }
   0xe   : > { %294 = sbr.rel (%p291_p9) target bundleno = 1130 (0x46a), region = 56 }
  0x13   : > { %v3824_v0 = vld [vmem:[%s5861_s1 + $0x18] sm:$0xff]  ;;  %p326_p10 = scmp.lt.s32.totalorder %s4188_s13, 3  ;;  %v3823_v1 = vld [vmem:[%s5861_s1 + $0x10] sm:$0xff]  ;;  %v3822_v2 = vld [vmem:[%s5861_s1 + $0x8] sm:$0xff]  ;;  %vm480_vm0 = vcmask 523264   ;;  %vm682_vm1 = vcmask 257024  }
  0x14   : > { %533 = vmatpush.bf16.msra.mxu0 %v3824_v0  ;;  %3963 = vmatpush.bf16.msra.mxu1 %v3824_v0  ;;  %v3821_v3 = vld [vmem:[%s5861_s1] sm:$0xff]  ;;  %v4112_v14 = vmov 0   ;;  %vm685_vm2 = vcmask 253952   ;;  %vm1063_vm3 = vsmask.f32 7938  ;;  %vm1668_vm9 = vcmask 1042432  }
  0x15   : > { %s327_s25 = scalar_select %p326_p10, %s4188_s13, 3  ;;  %687 = vst.msk [vmem:[#allocation2 + $0xc] sm:$0xf] %vm682_vm1, %v4112_v14  ;;  %v4311_v18 = vld [vmem:[%s5862_s2] ss:$0 sm:$0xff]  ;;  %vm4344_vm4 = vmand %vm682_vm1, %vm1063_vm3  ;;  %vm1669_vm10 = vcmask 1046532  }
  0x16   : > { %683 = vst.msk [vmem:[#allocation2] sm:$0xf] %vm682_vm1, %v4112_v14  ;;  %vm738_vm5 = vsmask.f32 256  ;;  %vm739_vm6 = vsmask.f32 4368  ;;  %vm4406_vm13 = vmor %vm1668_vm9, %vm1669_vm10 }
  0x17   : > { %s3804_s28 = sshll.u32 %s327_s25, 7  ;;  %684 = vst.msk [vmem:[#allocation2 + $0x4] sm:$0xf] %vm682_vm1, %v4112_v14  ;;  %vm4364_vm7 = vmor %vm738_vm5, %vm739_vm6  ;;  %vm1233_vm11 = vsmask.f32 3328  ;;  %s4113_s24 = smov 32  }
  0x18   : > { %534 = vmatpush.bf16.msra.mxu0 %v3823_v1  ;;  %3964 = vmatpush.bf16.msra.mxu1 %v3823_v1  ;;  %s4232_s21 = scalar_lea.vmem %s5860_s0, %s3804_s28  ;;  %688 = vst.msk [vmem:[#allocation2 + $0x10] sm:$0xf] %vm682_vm1, %v4112_v14  ;;  %vm4372_vm8 = vmand %vm685_vm2, %vm738_vm5  ;;  %vm1234_vm12 = vsmask.f32 7440  ;;  %s4114_s25 = smov 64   ;;  %vm2205_vm15 = vcmask 261120  }
  0x19   : > { %v3805_v4 = vld [vmem:[%s4232_s21] sm:$0xff]  ;;  %v3806_v5 = vld [vmem:[%s4232_s21 + $0x8] sm:$0xff]  ;;  %v3807_v6 = vld [vmem:[%s4232_s21 + $0x10] sm:$0xff]  ;;  %690 = vst.msk [vmem:[#allocation2 + $0x18] sm:$0xf] %vm682_vm1, %v4112_v14  ;;  %s4115_s26 = smov 96  }
  0x1a   : > { %v3808_v7 = vld [vmem:[%s4232_s21 + $0x18] sm:$0xff]  ;;  %v3814_v8 = vld [vmem:[%s4232_s21 + $0x48] sm:$0xff]  ;;  %v3809_v9 = vld [vmem:[%s4232_s21 + $0x20] sm:$0xff]  ;;  %691 = vst.msk [vmem:[#allocation2 + $0x1c] sm:$0xf] %vm682_vm1, %v4112_v14  ;;  %s323_s16 = sand.u32 1, %s4102_s10  }
  0x1b   : > { %v3815_v10 = vld [vmem:[%s4232_s21 + $0x50] sm:$0xff]  ;;  %v3810_v11 = vld [vmem:[%s4232_s21 + $0x28] sm:$0xff]  ;;  %v3816_v12 = vld [vmem:[%s4232_s21 + $0x58] sm:$0xff]  ;;  %693 = vst.msk [vmem:[#allocation2 + $0x24] sm:$0xf] %vm682_vm1, %v4112_v14  ;;  %s3466_s17 = sshll.u32 %s323_s16, 7 }
  0x1c   : > { %535 = vmatpush.bf16.msra.mxu0 %v3822_v2  ;;  %3965 = vmatpush.bf16.msra.mxu1 %v3822_v2  ;;  %v3811_v13 = vld [vmem:[%s4232_s21 + $0x30] sm:$0xff]  ;;  %v3817_v15 = vld [vmem:[%s4232_s21 + $0x60] sm:$0xff]  ;;  %694 = vst.msk [vmem:[#allocation2 + $0x28] sm:$0xf] %vm682_vm1, %v4112_v14  ;;  %v3812_v16 = vld [vmem:[%s4232_s21 + $0x38] sm:$0xff] }
  0x1d   : > { %696 = vst.msk [vmem:[#allocation2 + $0x30] sm:$0xf] %vm682_vm1, %v4112_v14  ;;  %v3818_v17 = vld [vmem:[%s4232_s21 + $0x68] sm:$0xff]  ;;  %v3813_v19 = vld [vmem:[%s4232_s21 + $0x40] sm:$0xff]  ;;  %v3819_v33 = vld [vmem:[%s4232_s21 + $0x70] sm:$0xff] }
  0x1e   : > { %697 = vst.msk [vmem:[#allocation2 + $0x34] sm:$0xf] %vm682_vm1, %v4112_v14  ;;  %v1065_v30 = vld [vmem:[#allocation2 + $0xc] sm:$0xf]  ;;  %v3820_v0 = vld [vmem:[%s4232_s21 + $0x78] sm:$0xff]  ;;  %vm4413_vm14 = vmor %vm1233_vm11, %vm1234_vm12 }
  0x1f   : > { %699 = vst.msk [vmem:[#allocation2 + $0x3c] sm:$0xf] %vm682_vm1, %v4112_v14 }
  0x20   : > { %536 = vmatpush.bf16.msra.mxu0 %v3821_v3  ;;  %3966 = vmatpush.bf16.msra.mxu1 %v3821_v3  ;;  %700 = vst.msk [vmem:[#allocation2 + $0x40] sm:$0xf] %vm682_vm1, %v4112_v14  ;;  %v1074_v61 = vld [vmem:[#allocation2 + $0x18] sm:$0xf] }
  0x21   : > { %702 = vst.msk [vmem:[#allocation2 + $0x48] sm:$0xf] %vm682_vm1, %v4112_v14 }
  0x22   : > { %703 = vst.msk [vmem:[#allocation2 + $0x4c] sm:$0xf] %vm682_vm1, %v4112_v14 }
  0x23   : > { %3549 = vmatmul.msk.bf16.vlgmr.msra.gmra.mxu0 %vm480_vm0, %v3805_v4  ;;  %3558 = vmatmul.msk.bf16.vlgmr.msra.gmra.mxu1 %vm480_vm0, %v3814_v8  ;;  %705 = vst.msk [vmem:[#allocation2 + $0x54] sm:$0xf] %vm682_vm1, %v4112_v14  ;;  %v5884_v8 = vmov 0 }
  0x24   : > { %706 = vst.msk [vmem:[#allocation2 + $0x58] sm:$0xf] %vm682_vm1, %v4112_v14  ;;  %v5885_v8 = vsel %vm4406_vm13, 4294967295, %v5884_v8 }
  0x25   : > { %708 = vst.msk [vmem:[#allocation2 + $0x60] sm:$0xf] %vm682_vm1, %v4112_v14 }
  0x26   : > { %709 = vst.msk [vmem:[#allocation2 + $0x64] sm:$0xf] %vm682_vm1, %v4112_v14 }
  0x27   : > { %711 = vst.msk [vmem:[#allocation2 + $0x6c] sm:$0xf] %vm682_vm1, %v4112_v14 }
  0x28   : > { %712 = vst.msk [vmem:[#allocation2 + $0x70] sm:$0xf] %vm682_vm1, %v4112_v14 }
  0x29   : > { %714 = vst.msk [vmem:[#allocation2 + $0x78] sm:$0xf] %vm682_vm1, %v4112_v14 }
  0x2a   : > { %715 = vst.msk [vmem:[#allocation2 + $0x7c] sm:$0xf] %vm682_vm1, %v4112_v14 }
  0x2b   : > { %717 = vst.msk [vmem:[#allocation2 + $0x84] sm:$0xf] %vm682_vm1, %v4112_v14 }
  0x2c   : > { %718 = vst.msk [vmem:[#allocation2 + $0x88] sm:$0xf] %vm682_vm1, %v4112_v14 }
  0x2d   : > { %720 = vst.msk [vmem:[#allocation2 + $0x90] sm:$0xf] %vm682_vm1, %v4112_v14 }
  0x2e   : > { %721 = vst.msk [vmem:[#allocation2 + $0x94] sm:$0xf] %vm682_vm1, %v4112_v14 }
  0x2f   : > { %723 = vst.msk [vmem:[#allocation2 + $0x9c] sm:$0xf] %vm682_vm1, %v4112_v14 }
  0x30   : > { %724 = vst.msk [vmem:[#allocation2 + $0xa0] sm:$0xf] %vm682_vm1, %v4112_v14 }
  0x31   : > { %726 = vst.msk [vmem:[#allocation2 + $0xa8] sm:$0xf] %vm682_vm1, %v4112_v14 }
  0x32   : > { %727 = vst.msk [vmem:[#allocation2 + $0xac] sm:$0xf] %vm682_vm1, %v4112_v14 }
  0x33   : > { %3550 = vmatmul.msk.bf16.gmra.mxu0 %vm480_vm0, %v3806_v5  ;;  %3559 = vmatmul.msk.bf16.gmra.mxu1 %vm480_vm0, %v3815_v10  ;;  %729 = vst.msk [vmem:[#allocation2 + $0xb4] sm:$0xf] %vm682_vm1, %v4112_v14 }
  0x34   : > { %730 = vst.msk [vmem:[#allocation2 + $0xb8] sm:$0xf] %vm682_vm1, %v4112_v14 }
  0x35   : > { %732 = vst.msk [vmem:[#allocation2 + $0xc0] sm:$0xf] %vm682_vm1, %v4112_v14 }
  0x36   : > { %733 = vst.msk [vmem:[#allocation2 + $0xc4] sm:$0xf] %vm682_vm1, %v4112_v14 }
  0x37   : > { %735 = vst.msk [vmem:[#allocation2 + $0xcc] sm:$0xf] %vm682_vm1, %v4112_v14 }
  0x38   : > { %736 = vst.msk [vmem:[#allocation2 + $0xd0] sm:$0xf] %vm682_vm1, %v4112_v14 }
  0x39   : > { %689 = vst.msk [vmem:[#allocation2 + $0x14] sm:$0x1] %vm685_vm2, %v4112_v14 }
  0x3a   : > { %686 = vst.msk [vmem:[#allocation2 + $0x8] sm:$0x1] %vm685_vm2, %v4112_v14 }
  0x3b   : > { %692 = vst.msk [vmem:[#allocation2 + $0x20] sm:$0x1] %vm685_vm2, %v4112_v14 }
  0x3c   : > { %695 = vst.msk [vmem:[#allocation2 + $0x2c] sm:$0x1] %vm685_vm2, %v4112_v14 }
  0x3d   : > { %698 = vst.msk [vmem:[#allocation2 + $0x38] sm:$0x1] %vm685_vm2, %v4112_v14 }
  0x3e   : > { %701 = vst.msk [vmem:[#allocation2 + $0x44] sm:$0x1] %vm685_vm2, %v4112_v14 }
  0x3f   : > { %704 = vst.msk [vmem:[#allocation2 + $0x50] sm:$0x1] %vm685_vm2, %v4112_v14 }
  0x40   : > { %707 = vst.msk [vmem:[#allocation2 + $0x5c] sm:$0x1] %vm685_vm2, %v4112_v14  ;;  %v1071_v43 = vld [vmem:[#allocation2 + $0x14] sm:$0x1] }
  0x41   : > { %710 = vst.msk [vmem:[#allocation2 + $0x68] sm:$0x1] %vm685_vm2, %v4112_v14 }
  0x42   : > { %713 = vst.msk [vmem:[#allocation2 + $0x74] sm:$0x1] %vm685_vm2, %v4112_v14 }
  0x43   : > { %3551 = vmatmul.msk.bf16.gmra.mxu0 %vm480_vm0, %v3807_v6  ;;  %3560 = vmatmul.msk.bf16.gmra.mxu1 %vm480_vm0, %v3816_v12  ;;  %716 = vst.msk [vmem:[#allocation2 + $0x80] sm:$0x1] %vm685_vm2, %v4112_v14 }
  0x44   : > { %719 = vst.msk [vmem:[#allocation2 + $0x8c] sm:$0x1] %vm685_vm2, %v4112_v14 }
  0x45   : > { %722 = vst.msk [vmem:[#allocation2 + $0x98] sm:$0x1] %vm685_vm2, %v4112_v14 }
  0x46   : > { %725 = vst.msk [vmem:[#allocation2 + $0xa4] sm:$0x1] %vm685_vm2, %v4112_v14 }
  0x47   : > { %728 = vst.msk [vmem:[#allocation2 + $0xb0] sm:$0x1] %vm685_vm2, %v4112_v14 }
  0x48   : > { %731 = vst.msk [vmem:[#allocation2 + $0xbc] sm:$0x1] %vm685_vm2, %v4112_v14 }
  0x49   : > { %734 = vst.msk [vmem:[#allocation2 + $0xc8] sm:$0x1] %vm685_vm2, %v4112_v14 }
  0x4a   : > { %737 = vst.msk [vmem:[#allocation2 + $0xd4] sm:$0x1] %vm685_vm2, %v4112_v14  ;;  %vm2286_vm2 = vcmask 785408  }
  0x4b   : > { %5886 = vst [vmem:[#allocation6_spill] sm:$0xff] %v5885_v8 }
  0x53   : > { %3552 = vmatmul.msk.bf16.gmra.mxu0 %vm480_vm0, %v3808_v7  ;;  %3561 = vmatmul.msk.bf16.gmra.mxu1 %vm480_vm0, %v3817_v15 }
  0x63   : > { %3553 = vmatmul.msk.bf16.gmra.mxu0 %vm480_vm0, %v3809_v9  ;;  %3562 = vmatmul.msk.bf16.gmra.mxu1 %vm480_vm0, %v3818_v17 }
  0x73   : > { %3554 = vmatmul.msk.bf16.gmra.mxu0 %vm480_vm0, %v3810_v11  ;;  %3563 = vmatmul.msk.bf16.gmra.mxu1 %vm480_vm0, %v3819_v33 }
  0x83   : > { %3555 = vmatmul.msk.bf16.gmra.mxu0 %vm480_vm0, %v3811_v13  ;;  %3564 = vmatmul.msk.bf16.gmra.mxu1 %vm480_vm0, %v3820_v0 }
  0x93   : > { %3556 = vmatmul.msk.bf16.gmra.mxu0 %vm480_vm0, %v3812_v16 }
  0xa0   : > { %v538_v20 = vpop.f32.mrf.mxu0 }
  0xa1   : > { %v539_v21 = vadd.f32 %v4311_v18, %v538_v20 }
  0xa3   : > { %v618_v22 = vmax.f32 %v539_v21, 0.0  ;;  %3557 = vmatmul.msk.bf16.gmra.mxu0 %vm480_vm0, %v3813_v19 }
  0xa5   : > { %v650_v23 = vpack.c.bf16 %v618_v22, %v618_v22 }
  0xa7   : > { %v742_v24 = vshrl.u32 %v650_v23, 16  ;;  %v745_v27 = vshll.u32 %v650_v23, 16  ;;  %v1078_v23 = vld [vmem:[#allocation2 + $0x20] sm:$0x1] }
  0xa8   : > { %v540_v25 = vpop.f32.mrf.mxu0 }
  0xa9   : > { %v744_v26 = vrot.slane %v742_v24, 7  ;;  %v541_v28 = vadd.f32 %v4311_v18, %v540_v25 }
  0xab   : > { %v747_v31 = vor.u32 %v745_v27, %v744_v26  ;;  %v619_v32 = vmax.f32 %v541_v28, 0.0  ;;  %v748_v44 = vrot.slane %v744_v26, 4 }
  0xad   : > { %v1066_v34 = vsel %vm4344_vm4, %v747_v31, %v1065_v30  ;;  %v651_v35 = vpack.c.bf16 %v619_v32, %v619_v32 }
  0xae   : > { %1067 = vst [vmem:[#allocation2 + $0xc] sm:$0xf] %v1066_v34 }
  0xaf   : > { %v750_v36 = vshrl.u32 %v651_v35, 16  ;;  %v753_v40 = vshll.u32 %v651_v35, 16 }
  0xb0   : > { %v543_v37 = vpop.f32.mrf.mxu0 }
  0xb1   : > { %v752_v39 = vrot.slane %v750_v36, 7  ;;  %v544_v41 = vadd.f32 %v4311_v18, %v543_v37 }
  0xb3   : > { %v755_v45 = vor.u32 %v753_v40, %v752_v39  ;;  %v757_v46 = vrot.slane %v752_v39, 4  ;;  %v620_v47 = vmax.f32 %v544_v41, 0.0 }
  0xb5   : > { %v756_v48 = vsel %vm4364_vm7, %v748_v44, %v755_v45  ;;  %v1072_v49 = vsel %vm4372_vm8, %v757_v46, %v1071_v43  ;;  %v652_v50 = vpack.c.bf16 %v620_v47, %v620_v47  ;;  %v1182_v51 = vld [vmem:[#allocation2 + $0xc] sm:$0xf] }
  0xb6   : > { %1068 = vst.msk [vmem:[#allocation2 + $0x10] sm:$0xf] %vm682_vm1, %v756_v48  ;;  %v1261_v52 = vshrl.u32 %v1182_v51, 16  ;;  %v1264_v53 = vshll.u32 %v1182_v51, 16  ;;  %v3566_v10 = vrot.slane %v1182_v51, 9 }
  0xb7   : > { %1073 = vst [vmem:[#allocation2 + $0x14] sm:$0x1] %v1072_v49  ;;  %v759_v54 = vshrl.u32 %v652_v50, 16  ;;  %v762_v59 = vshll.u32 %v652_v50, 16 }
  0xb8   : > { %v545_v55 = vpop.f32.mrf.mxu0  ;;  %v1263_v56 = vrot.slane %v1261_v52, 4  ;;  %v1266_v57 = vrot.slane %v1264_v53, 5 }
  0xb9   : > { %v761_v58 = vrot.slane %v759_v54, 7  ;;  %v546_v60 = vadd.f32 %v4311_v18, %v545_v55 }
  0xba   : > { %v1267_v1 = vor.u32 %v1266_v57, %v1263_v56  ;;  %v1081_v57 = vld [vmem:[#allocation2 + $0x24] sm:$0xf] }
  0xbb   : > { %v764_v62 = vor.u32 %v762_v59, %v761_v58  ;;  %v621_v63 = vmax.f32 %v546_v60, 0.0  ;;  %v765_v28 = vrot.slane %v761_v58, 4 }
  0xbc   : > { %v1268_v17 = vrot.slane %v1267_v1, 4 }
  0xbd   : > { %v1075_v2 = vsel %vm4344_vm4, %v764_v62, %v1074_v61  ;;  %v653_v3 = vpack.c.bf16 %v621_v63, %v621_v63  ;;  %v1183_v4 = vld [vmem:[#allocation2 + $0x10] sm:$0xf] }
  0xbe   : > { %1076 = vst [vmem:[#allocation2 + $0x18] sm:$0xf] %v1075_v2  ;;  %v1184_v5 = vld [vmem:[#allocation2 + $0x14] sm:$0x1]  ;;  %v1270_v6 = vshll.u32 %v1183_v4, 16  ;;  %v1274_v7 = vshrl.u32 %v1183_v4, 16 }
  0xbf   : > { %v767_v9 = vshrl.u32 %v653_v3, 16  ;;  %v1680_v11 = vrot.slane %v1183_v4, 5  ;;  %v1280_v15 = vshll.u32 %v1184_v5, 16  ;;  %v770_v20 = vshll.u32 %v653_v3, 16 }
  0xc0   : > { %v548_v13 = vpop.f32.mrf.mxu0  ;;  %v1276_v14 = vrot.slane %v1274_v7, 4  ;;  %v1272_v16 = vrot.slane %v1270_v6, 5  ;;  %v1683_v25 = vrot.slane %v1184_v5, 5 }
  0xc1   : > { %v769_v19 = vrot.slane %v767_v9, 7  ;;  %v549_v21 = vadd.f32 %v4311_v18, %v548_v13  ;;  %v1681_v22 = vsel %vm4406_vm13, %v3566_v10, %v1680_v11  ;;  %v1682_v24 = vrot.slane %v1680_v11, 4 }
  0xc2   : > { %v1277_v26 = vor.u32 %v1276_v14, %v1272_v16  ;;  %v1273_v27 = vsel %vm4413_vm14, %v1268_v17, %v1272_v16  ;;  %v1282_v33 = vrot.slane %v1280_v15, 5  ;;  %v1981_v35 = vunpack.c.l.b16 %v1681_v22 }
  0xc3   : > { %v772_v30 = vor.u32 %v770_v20, %v769_v19  ;;  %v774_v31 = vrot.slane %v769_v19, 4  ;;  %v622_v32 = vmax.f32 %v549_v21, 0.0  ;;  %v1684_v34 = vsel %vm4406_vm13, %v1682_v24, %v1683_v25  ;;  %v1085_v19 = vld [vmem:[#allocation2 + $0x2c] sm:$0x1] }
  0xc4   : > { %v1278_v36 = vrot.slane %v1277_v26, 4  ;;  %v1982_v41 = vunpack.c.l.b16 %v1684_v34  ;;  %v1901_v54 = vunpack.c.l.b16 %v1273_v27 }
  0xc5   : > { %v773_v37 = vsel %vm4364_vm7, %v765_v28, %v772_v30  ;;  %v1079_v39 = vsel %vm4372_vm8, %v774_v31, %v1078_v23  ;;  %v654_v40 = vpack.c.bf16 %v622_v32, %v622_v32  ;;  %v4428_v43 = vld [vmem:[#allocation2 + $0x18] sm:$0xf] }
  0xc6   : > { %1077 = vst.msk [vmem:[#allocation2 + $0x1c] sm:$0xf] %vm682_vm1, %v773_v37  ;;  %v1285_v44 = vshrl.u32 %v4428_v43, 16  ;;  %v1288_v45 = vshll.u32 %v4428_v43, 16  ;;  %v1283_v46 = vsel %vm4413_vm14, %v1278_v36, %v1282_v33  ;;  %v4435_v49 = vpack.c.b16 %v1982_v41, %v1981_v35 }
  0xc7   : > { %1080 = vst [vmem:[#allocation2 + $0x20] sm:$0x1] %v1079_v39  ;;  %v776_v47 = vshrl.u32 %v654_v40, 16  ;;  %v779_v48 = vshll.u32 %v654_v40, 16  ;;  %v1902_v53 = vunpack.c.l.b16 %v1283_v46  ;;  %v3567_v36 = vrot.slane %v4428_v43, 9 }
  0xc8   : > { %v550_v50 = vpop.f32.mrf.mxu0  ;;  %v1287_v51 = vrot.slane %v1285_v44, 4  ;;  %v1290_v52 = vrot.slane %v1288_v45, 5  ;;  %2100 = vrot.lane.b32.xlu0 %v4435_v49, %s4113_s24  ;;  %v1088_v43 = vld [vmem:[#allocation2 + $0x30] sm:$0xf] }
  0xc9   : > { %v778_v55 = vrot.slane %v776_v47, 7  ;;  %v551_v56 = vadd.f32 %v4311_v18, %v550_v50  ;;  %v4440_v58 = vpack.c.b16 %v1902_v53, %v1901_v54 }
  0xca   : > { %v1291_v61 = vor.u32 %v1290_v52, %v1287_v51 }
  0xcb   : > { %v781_v59 = vor.u32 %v779_v48, %v778_v55  ;;  %v623_v60 = vmax.f32 %v551_v56, 0.0  ;;  %v782_v15 = vrot.slane %v778_v55, 4  ;;  %v583_v55 = vpop.f32.mrf.mxu1 }
  0xcc   : > { %v1292_v10 = vrot.slane %v1291_v61, 4 }
  0xcd   : > { %v1082_v62 = vsel %vm4344_vm4, %v781_v59, %v1081_v57  ;;  %v655_v63 = vpack.c.bf16 %v623_v60, %v623_v60  ;;  %v3827_v0 = vld [vmem:[#allocation2 + $0x18] sm:$0xff] }
  0xce   : > { %v1186_v1 = vld [vmem:[#allocation2 + $0x1c] sm:$0xf]  ;;  %1083 = vst [vmem:[#allocation2 + $0x24] sm:$0xf] %v1082_v62  ;;  %v1187_v2 = vld [vmem:[#allocation2 + $0x20] sm:$0x1] }
  0xcf   : > { %v1294_v3 = vshll.u32 %v1186_v1, 16  ;;  %v1298_v4 = vshrl.u32 %v1186_v1, 16  ;;  %v784_v5 = vshrl.u32 %v655_v63, 16  ;;  %v787_v6 = vshll.u32 %v655_v63, 16 }
  0xd0   : > { %v1687_v7 = vrot.slane %v1186_v1, 5  ;;  %v553_v9 = vpop.f32.mrf.mxu0  ;;  %v1304_v14 = vshll.u32 %v1187_v2, 16  ;;  %2135 = vrot.lane.b32.xlu0 %v3827_v0, %s4114_s25  ;;  %v1690_v32 = vrot.slane %v1187_v2, 5 }
  0xd1   : > { %v1296_v11 = vrot.slane %v1294_v3, 5  ;;  %v1300_v13 = vrot.slane %v1298_v4, 4  ;;  %v786_v16 = vrot.slane %v784_v5, 7  ;;  %v554_v17 = vadd.f32 %v4311_v18, %v553_v9 }
  0xd2   : > { %v1689_v25 = vrot.slane %v1687_v7, 4  ;;  %v1306_v27 = vrot.slane %v1304_v14, 5  ;;  %v1688_v52 = vsel %vm4406_vm13, %v3567_v36, %v1687_v7 }
  0xd3   : > { %v1297_v20 = vsel %vm4413_vm14, %v1292_v10, %v1296_v11  ;;  %v1301_v21 = vor.u32 %v1300_v13, %v1296_v11  ;;  %v789_v22 = vor.u32 %v787_v6, %v786_v16  ;;  %v791_v23 = vrot.slane %v786_v16, 4 }
  0xd4   : > { %v624_v24 = vmax.f32 %v554_v17, 0.0  ;;  %v1903_v35 = vunpack.c.l.b16 %v1297_v20  ;;  %v1691_v44 = vsel %vm4406_vm13, %v1689_v25, %v1690_v32  ;;  %v1983_v59 = vunpack.c.l.b16 %v1688_v52 }
  0xd5   : > { %v1302_v26 = vrot.slane %v1301_v21, 4  ;;  %v790_v28 = vsel %vm4364_vm7, %v782_v15, %v789_v22  ;;  %v1086_v30 = vsel %vm4372_vm8, %v791_v23, %v1085_v19  ;;  %v1188_v33 = vld [vmem:[#allocation2 + $0x24] sm:$0xf]  ;;  %v1984_v53 = vunpack.c.l.b16 %v1691_v44  ;;  %v1092_v23 = vld [vmem:[#allocation2 + $0x38] sm:$0x1] }
  0xd6   : > { %v656_v31 = vpack.c.bf16 %v624_v24, %v624_v24  ;;  %1084 = vst.msk [vmem:[#allocation2 + $0x28] sm:$0xf] %vm682_vm1, %v790_v28  ;;  %v1309_v37 = vshrl.u32 %v1188_v33, 16  ;;  %v1312_v47 = vshll.u32 %v1188_v33, 16  ;;  %v3568_v60 = vrot.slane %v1188_v33, 9 }
  0xd7   : > { %v1307_v34 = vsel %vm4413_vm14, %v1302_v26, %v1306_v27  ;;  %1087 = vst [vmem:[#allocation2 + $0x2c] sm:$0x1] %v1086_v30  ;;  %v4467_v3 = vpack.c.b16 %v1984_v53, %v1983_v59  ;;  %v1095_v59 = vld [vmem:[#allocation2 + $0x3c] sm:$0xf] }
  0xd8   : > { %v793_v39 = vshrl.u32 %v656_v31, 16  ;;  %v796_v40 = vshll.u32 %v656_v31, 16  ;;  %v1904_v41 = vunpack.c.l.b16 %v1307_v34  ;;  %v555_v45 = vpop.f32.mrf.mxu0  ;;  %v1311_v46 = vrot.slane %v1309_v37, 4  ;;  %v585_v34 = vpop.f32.mrf.mxu1 }
  0xd9   : > { %v556_v50 = vadd.f32 %v4311_v18, %v555_v45  ;;  %v1314_v54 = vrot.slane %v1312_v47, 5 }
  0xda   : > { %v795_v48 = vrot.slane %v793_v39, 7  ;;  %v4459_v51 = vpack.c.b16 %v1904_v41, %v1903_v35 }
  0xdb   : > { %v625_v57 = vmax.f32 %v556_v50, 0.0  ;;  %v1315_v61 = vor.u32 %v1314_v54, %v1311_v46  ;;  %v584_v46 = vadd.f32 %v4311_v18, %v583_v55 }
  0xdc   : > { %v798_v56 = vor.u32 %v796_v40, %v795_v48  ;;  %2170 = vrot.lane.b32.xlu1 %v4459_v51, %s4115_s26  ;;  %v799_v62 = vrot.slane %v795_v48, 4 }
  0xdd   : > { %v657_v0 = vpack.c.bf16 %v625_v57, %v625_v57  ;;  %v3828_v1 = vld [vmem:[#allocation2 + $0x24] sm:$0xff]  ;;  %v1316_v6 = vrot.slane %v1315_v61, 4  ;;  %v636_v57 = vmax.f32 %v584_v46, 0.0 }
  0xde   : > { %v1089_v63 = vsel %vm4344_vm4, %v798_v56, %v1088_v43  ;;  %v1189_v2 = vld [vmem:[#allocation2 + $0x28] sm:$0xf]  ;;  %v1190_v4 = vld [vmem:[#allocation2 + $0x2c] sm:$0x1]  ;;  %2137 = vrot.lane.b32.xlu2 %v3828_v1, %s4114_s25 }
  0xdf   : > { %1090 = vst [vmem:[#allocation2 + $0x30] sm:$0xf] %v1089_v63  ;;  %v1694_v5 = vrot.slane %v1189_v2, 5  ;;  %v801_v7 = vshrl.u32 %v657_v0, 16  ;;  %v804_v9 = vshll.u32 %v657_v0, 16  ;;  %v1697_v10 = vrot.slane %v1190_v4, 5 }
  0xe0   : > { %v1318_v11 = vshll.u32 %v1189_v2, 16  ;;  %v558_v13 = vpop.f32.mrf.mxu0  ;;  %v1322_v16 = vshrl.u32 %v1189_v2, 16  ;;  %v1328_v17 = vshll.u32 %v1190_v4, 16  ;;  %v668_v1 = vpack.c.bf16 %v636_v57, %v636_v57  ;;  %v588_v2 = vpop.f32.mrf.mxu1 }
  0xe1   : > { %v1695_v14 = vsel %vm4406_vm13, %v3568_v60, %v1694_v5  ;;  %v1696_v15 = vrot.slane %v1694_v5, 4  ;;  %v803_v19 = vrot.slane %v801_v7, 7  ;;  %v559_v20 = vadd.f32 %v4311_v18, %v558_v13 }
  0xe2   : > { %v1985_v21 = vunpack.c.l.b16 %v1695_v14  ;;  %v1320_v22 = vrot.slane %v1318_v11, 5  ;;  %v1324_v25 = vrot.slane %v1322_v16, 4  ;;  %v1330_v33 = vrot.slane %v1328_v17, 5 }
  0xe3   : > { %v1698_v24 = vsel %vm4406_vm13, %v1696_v15, %v1697_v10  ;;  %v806_v26 = vor.u32 %v804_v9, %v803_v19  ;;  %v808_v27 = vrot.slane %v803_v19, 4  ;;  %v626_v28 = vmax.f32 %v559_v20, 0.0 }
  0xe4   : > { %2102 = vrot.lane.b32.xlu1 %v4467_v3, %s4113_s24  ;;  %v1986_v30 = vunpack.c.l.b16 %v1698_v24  ;;  %v1321_v31 = vsel %vm4413_vm14, %v1316_v6, %v1320_v22  ;;  %v1325_v32 = vor.u32 %v1324_v25, %v1320_v22  ;;  %v895_v13 = vshrl.u32 %v668_v1, 16 }
  0xe5   : > { %v807_v35 = vsel %vm4364_vm7, %v799_v62, %v806_v26  ;;  %v1093_v36 = vsel %vm4372_vm8, %v808_v27, %v1092_v23  ;;  %v658_v37 = vpack.c.bf16 %v626_v28, %v626_v28  ;;  %v1905_v50 = vunpack.c.l.b16 %v1321_v31  ;;  %v1130_v28 = vld [vmem:[#allocation2 + $0x78] sm:$0xf]  ;;  %v1099_v31 = vld [vmem:[#allocation2 + $0x44] sm:$0x1] }
  0xe6   : > { %v4483_v39 = vpack.c.b16 %v1986_v30, %v1985_v21  ;;  %v1191_v40 = vld [vmem:[#allocation2 + $0x30] sm:$0xf]  ;;  %1091 = vst.msk [vmem:[#allocation2 + $0x34] sm:$0xf] %vm682_vm1, %v807_v35  ;;  %v1326_v41 = vrot.slane %v1325_v32, 4  ;;  %v898_v19 = vshll.u32 %v668_v1, 16  ;;  %v586_v24 = vadd.f32 %v4311_v18, %v585_v34 }
  0xe7   : > { %1094 = vst [vmem:[#allocation2 + $0x38] sm:$0x1] %v1093_v36  ;;  %v810_v44 = vshrl.u32 %v658_v37, 16  ;;  %v813_v45 = vshll.u32 %v658_v37, 16  ;;  %v1333_v52 = vshrl.u32 %v1191_v40, 16  ;;  %v1336_v43 = vshll.u32 %v1191_v40, 16 }
  0xe8   : > { %2104 = vrot.lane.b32.xlu0 %v4483_v39, %s4113_s24  ;;  %v560_v47 = vpop.f32.mrf.mxu0  ;;  %v1331_v48 = vsel %vm4413_vm14, %v1326_v41, %v1330_v33  ;;  %v3569_v55 = vrot.slane %v1191_v40, 9  ;;  %v4501_v23 = vrot.slane %v895_v13, 7  ;;  %v1102_v13 = vld [vmem:[#allocation2 + $0x48] sm:$0xf] }
  0xe9   : > { %v812_v53 = vrot.slane %v810_v44, 7  ;;  %v561_v54 = vadd.f32 %v4311_v18, %v560_v47  ;;  %v1906_v56 = vunpack.c.l.b16 %v1331_v48  ;;  %v1335_v60 = vrot.slane %v1333_v52, 4 }
  0xea   : > { %v1338_v61 = vrot.slane %v1336_v43, 5  ;;  %v900_v33 = vor.u32 %v898_v19, %v4501_v23 }
  0xeb   : > { %v815_v62 = vor.u32 %v813_v45, %v812_v53  ;;  %v627_v63 = vmax.f32 %v561_v54, 0.0  ;;  %v4492_v0 = vpack.c.b16 %v1906_v56, %v1905_v50  ;;  %v816_v4 = vrot.slane %v812_v53, 4 }
  0xec   : > { %v1339_v14 = vor.u32 %v1338_v61, %v1335_v60  ;;  %v1131_v34 = vsel %vm4344_vm4, %v900_v33, %v1130_v28  ;;  %v4519_v60 = vpop.f32.mrf.mxu1 }
  0xed   : > { %v1096_v5 = vsel %vm4344_vm4, %v815_v62, %v1095_v59  ;;  %v659_v6 = vpack.c.bf16 %v627_v63, %v627_v63  ;;  %2172 = vrot.lane.b32.xlu2 %v4492_v0, %s4115_s26  ;;  %v3829_v7 = vld [vmem:[#allocation2 + $0x30] sm:$0xff]  ;;  %1132 = vst [vmem:[#allocation2 + $0x78] sm:$0xf] %v1131_v34  ;;  %v637_v59 = vmax.f32 %v586_v24, 0.0  ;;  %v901_v63 = vrot.slane %v4501_v23, 4 }
  0xee   : > { %v1192_v9 = vld [vmem:[#allocation2 + $0x34] sm:$0xf]  ;;  %1097 = vst [vmem:[#allocation2 + $0x3c] sm:$0xf] %v1096_v5  ;;  %v1193_v10 = vld [vmem:[#allocation2 + $0x38] sm:$0x1]  ;;  %2139 = vrot.lane.b32.xlu1 %v3829_v7, %s4114_s25  ;;  %v589_v5 = vadd.f32 %v4311_v18, %v588_v2 }
  0xef   : > { %v1701_v11 = vrot.slane %v1192_v9, 5  ;;  %v818_v15 = vshrl.u32 %v659_v6, 16  ;;  %v821_v16 = vshll.u32 %v659_v6, 16  ;;  %v1704_v17 = vrot.slane %v1193_v10, 5 }
  0xf0   : > { %v563_v20 = vpop.f32.mrf.mxu0  ;;  %v1342_v30 = vshll.u32 %v1192_v9, 16  ;;  %v1340_v35 = vrot.slane %v1339_v14, 4  ;;  %v1346_v36 = vshrl.u32 %v1192_v9, 16  ;;  %v1352_v47 = vshll.u32 %v1193_v10, 16 }
  0xf1   : > { %v1702_v21 = vsel %vm4406_vm13, %v3569_v55, %v1701_v11  ;;  %v1703_v22 = vrot.slane %v1701_v11, 4  ;;  %v820_v25 = vrot.slane %v818_v15, 7  ;;  %v564_v26 = vadd.f32 %v4311_v18, %v563_v20 }
  0xf2   : > { %v1987_v27 = vunpack.c.l.b16 %v1702_v21  ;;  %v1344_v45 = vrot.slane %v1342_v30, 5  ;;  %v1348_v46 = vrot.slane %v1346_v36, 4  ;;  %v1354_v57 = vrot.slane %v1352_v47, 5 }
  0xf3   : > { %v1705_v32 = vsel %vm4406_vm13, %v1703_v22, %v1704_v17  ;;  %v823_v37 = vor.u32 %v821_v16, %v820_v25  ;;  %v825_v40 = vrot.slane %v820_v25, 4  ;;  %v628_v41 = vmax.f32 %v564_v26, 0.0 }
  0xf4   : > { %v1988_v44 = vunpack.c.l.b16 %v1705_v32  ;;  %v1345_v54 = vsel %vm4413_vm14, %v1340_v35, %v1344_v45  ;;  %v1349_v56 = vor.u32 %v1348_v46, %v1344_v45  ;;  %v638_v17 = vmax.f32 %v589_v5, 0.0 }
  0xf5   : > { %v824_v48 = vsel %vm4364_vm7, %v816_v4, %v823_v37  ;;  %v1100_v50 = vsel %vm4372_vm8, %v825_v40, %v1099_v31  ;;  %v660_v52 = vpack.c.bf16 %v628_v41, %v628_v41  ;;  %v1194_v53 = vld [vmem:[#allocation2 + $0x3c] sm:$0xf]  ;;  %v669_v4 = vpack.c.bf16 %v637_v59, %v637_v59  ;;  %v1134_v31 = vld [vmem:[#allocation2 + $0x80] sm:$0x1] }
  0xf6   : > { %v4514_v43 = vpack.c.b16 %v1988_v44, %v1987_v27  ;;  %1098 = vst.msk [vmem:[#allocation2 + $0x40] sm:$0xf] %vm682_vm1, %v824_v48  ;;  %v1350_v1 = vrot.slane %v1349_v56, 4  ;;  %v1357_v6 = vshrl.u32 %v1194_v53, 16  ;;  %v1907_v10 = vunpack.c.l.b16 %v1345_v54  ;;  %v593_v44 = vpop.f32.mrf.mxu1 }
  0xf7   : > { %1101 = vst [vmem:[#allocation2 + $0x44] sm:$0x1] %v1100_v50  ;;  %v827_v61 = vshrl.u32 %v660_v52, 16  ;;  %v830_v62 = vshll.u32 %v660_v52, 16  ;;  %v1360_v11 = vshll.u32 %v1194_v53, 16  ;;  %v903_v15 = vshrl.u32 %v669_v4, 16 }
  0xf8   : > { %2106 = vrot.lane.b32.xlu0 %v4514_v43, %s4113_s24  ;;  %v565_v55 = vpop.f32.mrf.mxu0  ;;  %v1355_v14 = vsel %vm4413_vm14, %v1350_v1, %v1354_v57  ;;  %v906_v16 = vshll.u32 %v669_v4, 16  ;;  %v3570_v22 = vrot.slane %v1194_v53, 9  ;;  %v670_v23 = vpack.c.bf16 %v638_v17, %v638_v17  ;;  %v1106_v57 = vld [vmem:[#allocation2 + $0x50] sm:$0x1] }
  0xf9   : > { %v4525_v7 = vrot.slane %v827_v61, 7  ;;  %v566_v9 = vadd.f32 %v4311_v18, %v565_v55  ;;  %v1908_v21 = vunpack.c.l.b16 %v1355_v14  ;;  %v905_v2 = vrot.slane %v903_v15, 7 }
  0xfa   : > { %v1359_v24 = vrot.slane %v1357_v6, 4  ;;  %v1362_v25 = vrot.slane %v1360_v11, 5  ;;  %v912_v47 = vshrl.u32 %v670_v23, 16  ;;  %v915_v55 = vshll.u32 %v670_v23, 16 }
  0xfb   : > { %v832_v19 = vor.u32 %v830_v62, %v4525_v7  ;;  %v629_v20 = vmax.f32 %v566_v9, 0.0  ;;  %v833_v26 = vrot.slane %v4525_v7, 4  ;;  %v4534_v30 = vpack.c.b16 %v1908_v21, %v1907_v10  ;;  %v1137_v10 = vld [vmem:[#allocation2 + $0x84] sm:$0xf] }
  0xfc   : > { %v908_v35 = vor.u32 %v906_v16, %v905_v2  ;;  %v910_v36 = vrot.slane %v905_v2, 4  ;;  %v1363_v41 = vor.u32 %v1362_v25, %v1359_v24  ;;  %v4547_v62 = vrot.slane %v912_v47, 7 }
  0xfd   : > { %v1103_v27 = vsel %vm4344_vm4, %v832_v19, %v1102_v13  ;;  %v661_v28 = vpack.c.bf16 %v629_v20, %v629_v20  ;;  %v3830_v32 = vld [vmem:[#allocation2 + $0x3c] sm:$0xff]  ;;  %2174 = vrot.lane.b32.xlu2 %v4534_v30, %s4115_s26 }
  0xfe   : > { %v1195_v33 = vld [vmem:[#allocation2 + $0x40] sm:$0xf]  ;;  %1104 = vst [vmem:[#allocation2 + $0x48] sm:$0xf] %v1103_v27  ;;  %v1196_v37 = vld [vmem:[#allocation2 + $0x44] sm:$0x1]  ;;  %2141 = vrot.lane.b32.xlu1 %v3830_v32, %s4114_s25  ;;  %v909_v50 = vsel %vm4364_vm7, %v901_v63, %v908_v35  ;;  %v1135_v52 = vsel %vm4372_vm8, %v910_v36, %v1134_v31  ;;  %v917_v11 = vor.u32 %v915_v55, %v4547_v62  ;;  %v595_v36 = vpop.f32.mrf.mxu1 }
  0xff   : > { %v1708_v40 = vrot.slane %v1195_v33, 5  ;;  %v835_v34 = vshrl.u32 %v661_v28, 16  ;;  %v838_v45 = vshll.u32 %v661_v28, 16  ;;  %v1711_v46 = vrot.slane %v1196_v37, 5  ;;  %1133 = vst.msk [vmem:[#allocation2 + $0x7c] sm:$0xf] %vm682_vm1, %v909_v50 }
 0x100   : > { %v568_v48 = vpop.f32.mrf.mxu0  ;;  %1136 = vst [vmem:[#allocation2 + $0x80] sm:$0x1] %v1135_v52  ;;  %v1364_v1 = vrot.slane %v1363_v41, 4  ;;  %v1366_v4 = vshll.u32 %v1195_v33, 16  ;;  %v1370_v14 = vshrl.u32 %v1195_v33, 16  ;;  %v1138_v20 = vsel %vm4344_vm4, %v917_v11, %v1137_v10 }
 0x101   : > { %v1709_v53 = vsel %vm4406_vm13, %v3570_v22, %v1708_v40  ;;  %v1710_v54 = vrot.slane %v1708_v40, 4  ;;  %v837_v56 = vrot.slane %v835_v34, 7  ;;  %v569_v59 = vadd.f32 %v4311_v18, %v568_v48  ;;  %1139 = vst [vmem:[#allocation2 + $0x84] sm:$0xf] %v1138_v20 }
 0x102   : > { %v1989_v61 = vunpack.c.l.b16 %v1709_v53  ;;  %v1368_v13 = vrot.slane %v1366_v4, 5  ;;  %v1372_v22 = vrot.slane %v1370_v14, 4  ;;  %v1376_v2 = vshll.u32 %v1196_v37, 16 }
 0x103   : > { %v1712_v63 = vsel %vm4406_vm13, %v1710_v54, %v1711_v46  ;;  %v840_v5 = vor.u32 %v838_v45, %v837_v56  ;;  %v842_v6 = vrot.slane %v837_v56, 4  ;;  %v630_v7 = vmax.f32 %v569_v59, 0.0  ;;  %v1109_v45 = vld [vmem:[#allocation2 + $0x54] sm:$0xf] }
 0x104   : > { %v1990_v9 = vunpack.c.l.b16 %v1712_v63  ;;  %v1369_v21 = vsel %vm4413_vm14, %v1364_v1, %v1368_v13  ;;  %v591_v27 = vadd.f32 %v4311_v18, %v4519_v60  ;;  %v1373_v31 = vor.u32 %v1372_v22, %v1368_v13 }
 0x105   : > { %v841_v15 = vsel %vm4364_vm7, %v833_v26, %v840_v5  ;;  %v1107_v16 = vsel %vm4372_vm8, %v842_v6, %v1106_v57  ;;  %v662_v17 = vpack.c.bf16 %v630_v7, %v630_v7  ;;  %v1197_v23 = vld [vmem:[#allocation2 + $0x48] sm:$0xf]  ;;  %v918_v26 = vrot.slane %v4547_v62, 4 }
 0x106   : > { %v4556_v19 = vpack.c.b16 %v1990_v9, %v1989_v61  ;;  %1105 = vst.msk [vmem:[#allocation2 + $0x4c] sm:$0xf] %vm682_vm1, %v841_v15  ;;  %v1378_v32 = vrot.slane %v1376_v2, 5  ;;  %v1909_v33 = vunpack.c.l.b16 %v1369_v21  ;;  %v594_v35 = vadd.f32 %v4311_v18, %v593_v44 }
 0x107   : > { %1108 = vst [vmem:[#allocation2 + $0x50] sm:$0x1] %v1107_v16  ;;  %v844_v24 = vshrl.u32 %v662_v17, 16  ;;  %v847_v25 = vshll.u32 %v662_v17, 16  ;;  %v639_v41 = vmax.f32 %v591_v27, 0.0  ;;  %v1381_v34 = vshrl.u32 %v1197_v23, 16 }
 0x108   : > { %2108 = vrot.lane.b32.xlu0 %v4556_v19, %s4113_s24  ;;  %v570_v28 = vpop.f32.mrf.mxu0  ;;  %v1374_v46 = vrot.slane %v1373_v31, 4  ;;  %v3571_v47 = vrot.slane %v1197_v23, 9  ;;  %v640_v48 = vmax.f32 %v594_v35, 0.0  ;;  %v1384_v50 = vshll.u32 %v1197_v23, 16  ;;  %v598_v23 = vpop.f32.mrf.mxu1  ;;  %v1141_v31 = vld [vmem:[#allocation2 + $0x8c] sm:$0x1] }
 0x109   : > { %v4569_v37 = vrot.slane %v844_v24, 7  ;;  %v571_v40 = vadd.f32 %v4311_v18, %v570_v28  ;;  %v671_v54 = vpack.c.bf16 %v639_v41, %v639_v41  ;;  %v1383_v57 = vrot.slane %v1381_v34, 4 }
 0x10a   : > { %v1379_v44 = vsel %vm4413_vm14, %v1374_v46, %v1378_v32  ;;  %v672_v56 = vpack.c.bf16 %v640_v48, %v640_v48  ;;  %v1386_v59 = vrot.slane %v1384_v50, 5  ;;  %v596_v11 = vadd.f32 %v4311_v18, %v595_v36  ;;  %v1113_v32 = vld [vmem:[#allocation2 + $0x5c] sm:$0x1]  ;;  %v1144_v46 = vld [vmem:[#allocation2 + $0x90] sm:$0xf] }
 0x10b   : > { %v849_v60 = vor.u32 %v847_v25, %v4569_v37  ;;  %v850_v52 = vrot.slane %v4569_v37, 4  ;;  %v631_v53 = vmax.f32 %v571_v40, 0.0  ;;  %v1910_v55 = vunpack.c.l.b16 %v1379_v44 }
 0x10c   : > { %v920_v1 = vshrl.u32 %v671_v54, 16  ;;  %v923_v6 = vshll.u32 %v671_v54, 16  ;;  %v1387_v10 = vor.u32 %v1386_v59, %v1383_v57  ;;  %v929_v2 = vshrl.u32 %v672_v56, 16 }
 0x10d   : > { %v1110_v61 = vsel %vm4344_vm4, %v849_v60, %v1109_v45  ;;  %v663_v63 = vpack.c.bf16 %v631_v53, %v631_v53  ;;  %v3831_v4 = vld [vmem:[#allocation2 + $0x48] sm:$0xff]  ;;  %v4581_v15 = vpack.c.b16 %v1910_v55, %v1909_v33  ;;  %v932_v37 = vshll.u32 %v672_v56, 16 }
 0x10e   : > { %v1198_v5 = vld [vmem:[#allocation2 + $0x4c] sm:$0xf]  ;;  %1111 = vst [vmem:[#allocation2 + $0x54] sm:$0xf] %v1110_v61  ;;  %v4578_v7 = vld [vmem:[#allocation2 + $0x50] sm:$0x1]  ;;  %2143 = vrot.lane.b32.xlu1 %v3831_v4, %s4114_s25 }
 0x10f   : > { %v1715_v9 = vrot.slane %v1198_v5, 5  ;;  %v852_v13 = vshrl.u32 %v663_v63, 16  ;;  %v855_v14 = vshll.u32 %v663_v63, 16  ;;  %v922_v16 = vrot.slane %v920_v1, 7  ;;  %2176 = vrot.lane.b32.xlu2 %v4581_v15, %s4115_s26 }
 0x110   : > { %v573_v17 = vpop.f32.mrf.mxu0  ;;  %v1718_v22 = vrot.slane %v4578_v7, 5  ;;  %v4592_v36 = vrot.slane %v929_v2, 7  ;;  %v1390_v57 = vshll.u32 %v1198_v5, 16  ;;  %v1394_v59 = vshrl.u32 %v1198_v5, 16  ;;  %v3858_v5 = vld [vmem:[%s5863_s3 + $0x78] sm:$0xff] }
 0x111   : > { %v1716_v20 = vsel %vm4406_vm13, %v3571_v47, %v1715_v9  ;;  %v1717_v21 = vrot.slane %v1715_v9, 4  ;;  %v854_v24 = vrot.slane %v852_v13, 7  ;;  %v574_v25 = vadd.f32 %v4311_v18, %v573_v17  ;;  %2748 = vmatpush.bf16.msra.mxu2 %v3858_v5 }
 0x112   : > { %v925_v27 = vor.u32 %v923_v6, %v922_v16  ;;  %v927_v28 = vrot.slane %v922_v16, 4  ;;  %v1991_v35 = vunpack.c.l.b16 %v1716_v20  ;;  %v934_v50 = vor.u32 %v932_v37, %v4592_v36  ;;  %v600_v20 = vpop.f32.mrf.mxu1 }
 0x113   : > { %v1719_v33 = vsel %vm4406_vm13, %v1717_v21, %v1718_v22  ;;  %v857_v40 = vor.u32 %v855_v14, %v854_v24  ;;  %v859_v41 = vrot.slane %v854_v24, 4  ;;  %v632_v34 = vmax.f32 %v574_v25, 0.0  ;;  %v1116_v21 = vld [vmem:[#allocation2 + $0x60] sm:$0xf]  ;;  %v3857_v24 = vld [vmem:[%s5863_s3 + $0x70] sm:$0xff] }
 0x114   : > { %v926_v45 = vsel %vm4364_vm7, %v918_v26, %v925_v27  ;;  %v1142_v47 = vsel %vm4372_vm8, %v927_v28, %v1141_v31  ;;  %v1992_v48 = vunpack.c.l.b16 %v1719_v33  ;;  %v935_v60 = vrot.slane %v4592_v36, 4 }
 0x115   : > { %1140 = vst.msk [vmem:[#allocation2 + $0x88] sm:$0xf] %vm682_vm1, %v926_v45  ;;  %v858_v53 = vsel %vm4364_vm7, %v850_v52, %v857_v40  ;;  %v1114_v62 = vsel %vm4372_vm8, %v859_v41, %v1113_v32  ;;  %v664_v54 = vpack.c.bf16 %v632_v34, %v632_v34  ;;  %v1388_v26 = vrot.slane %v1387_v10, 4  ;;  %v4612_v61 = vld [vmem:[#allocation2 + $0x54] sm:$0xf]  ;;  %2749 = vmatpush.bf16.msra.mxu2 %v3857_v24 }
 0x116   : > { %1143 = vst [vmem:[#allocation2 + $0x8c] sm:$0x1] %v1142_v47  ;;  %v4608_v44 = vpack.c.b16 %v1992_v48, %v1991_v35  ;;  %v1145_v56 = vsel %vm4344_vm4, %v934_v50, %v1144_v46  ;;  %v1400_v55 = vshll.u32 %v4578_v7, 16  ;;  %v641_v1 = vmax.f32 %v596_v11, 0.0  ;;  %v4627_v7 = vld [vmem:[%s5862_s2] ss:$0 sm:$0xff] }
 0x117   : > { %1112 = vst.msk [vmem:[#allocation2 + $0x58] sm:$0xf] %vm682_vm1, %v858_v53  ;;  %v861_v63 = vshrl.u32 %v664_v54, 16  ;;  %v864_v52 = vshll.u32 %v664_v54, 16  ;;  %v1392_v6 = vrot.slane %v1390_v57, 5  ;;  %v1396_v9 = vrot.slane %v1394_v59, 4 }
 0x118   : > { %1115 = vst [vmem:[#allocation2 + $0x5c] sm:$0x1] %v1114_v62  ;;  %2110 = vrot.lane.b32.xlu0 %v4608_v44, %s4113_s24  ;;  %v575_v4 = vpop.f32.mrf.mxu0  ;;  %v3572_v10 = vrot.slane %v4612_v61, 9  ;;  %v599_v13 = vadd.f32 %v4311_v18, %v598_v23  ;;  %v1402_v16 = vrot.slane %v1400_v55, 5  ;;  %v673_v17 = vpack.c.bf16 %v641_v1, %v641_v1  ;;  %v3856_v48 = vld [vmem:[%s5863_s3 + $0x68] sm:$0xff] }
 0x119   : > { %1146 = vst [vmem:[#allocation2 + $0x90] sm:$0xf] %v1145_v56  ;;  %v4622_v14 = vrot.slane %v861_v63, 7  ;;  %v576_v11 = vadd.f32 %v4627_v7, %v575_v4  ;;  %v1393_v18 = vsel %vm4413_vm14, %v1388_v26, %v1392_v6  ;;  %v1397_v22 = vor.u32 %v1396_v9, %v1392_v6  ;;  %2750 = vmatpush.bf16.msra.mxu2 %v3856_v48  ;;  %v4700_v48 = vld [vmem:[%s5863_s3 + $0x80] sm:$0xff] }
 0x11a   : > { %v642_v2 = vmax.f32 %v599_v13, 0.0  ;;  %v1405_v23 = vshrl.u32 %v4612_v61, 16  ;;  %v1911_v31 = vunpack.c.l.b16 %v1393_v18  ;;  %v937_v33 = vshrl.u32 %v673_v17, 16 }
 0x11b   : > { %v866_v25 = vor.u32 %v864_v52, %v4622_v14  ;;  %v867_v27 = vrot.slane %v4622_v14, 4  ;;  %v633_v28 = vmax.f32 %v576_v11, 0.0  ;;  %v1398_v32 = vrot.slane %v1397_v22, 4  ;;  %v1120_v11 = vld [vmem:[#allocation2 + $0x68] sm:$0x1] }
 0x11c   : > { %v940_v35 = vshll.u32 %v673_v17, 16  ;;  %v674_v37 = vpack.c.bf16 %v642_v2, %v642_v2  ;;  %v4642_v46 = vrot.slane %v1405_v23, 4  ;;  %v1408_v47 = vshll.u32 %v4612_v61, 16  ;;  %v1148_v61 = vld [vmem:[#allocation2 + $0x98] sm:$0x1]  ;;  %v603_v2 = vpop.f32.mrf.mxu1 }
 0x11d   : > { %v1117_v40 = vsel %vm4344_vm4, %v866_v25, %v1116_v21  ;;  %v665_v41 = vpack.c.bf16 %v633_v28, %v633_v28  ;;  %v1403_v50 = vsel %vm4413_vm14, %v1398_v32, %v1402_v16  ;;  %v939_v53 = vrot.slane %v937_v33, 7 }
 0x11e   : > { %v3832_v34 = vld [vmem:[#allocation2 + $0x54] sm:$0xff]  ;;  %1118 = vst [vmem:[#allocation2 + $0x60] sm:$0xf] %v1117_v40  ;;  %v4654_v26 = vadd.f32 %v4627_v7, %v600_v20  ;;  %v1912_v59 = vunpack.c.l.b16 %v1403_v50  ;;  %v949_v24 = vshll.u32 %v674_v37, 16  ;;  %v1410_v25 = vrot.slane %v1408_v47, 5 }
 0x11f   : > { %v4640_v45 = vld [vmem:[#allocation2 + $0x58] sm:$0xf]  ;;  %v4650_v62 = vld [vmem:[#allocation2 + $0x5c] sm:$0x1]  ;;  %v869_v56 = vshrl.u32 %v665_v41, 16  ;;  %v872_v57 = vshll.u32 %v665_v41, 16  ;;  %2145 = vrot.lane.b32.xlu1 %v3832_v34, %s4114_s25  ;;  %v942_v55 = vor.u32 %v940_v35, %v939_v53 }
 0x120   : > { %v1722_v54 = vrot.slane %v4640_v45, 5  ;;  %v1725_v63 = vrot.slane %v4650_v62, 5  ;;  %v578_v52 = vpop.f32.mrf.mxu0  ;;  %v944_v1 = vrot.slane %v939_v53, 4  ;;  %v4660_v13 = vpack.c.b16 %v1912_v59, %v1911_v31  ;;  %v1151_v40 = vld [vmem:[#allocation2 + $0x9c] sm:$0xf]  ;;  %v4689_v41 = vld [vmem:[%s5863_s3 + $0x88] sm:$0xff] }
 0x121   : > { %v871_v9 = vrot.slane %v869_v56, 7  ;;  %v579_v5 = vadd.f32 %v4627_v7, %v578_v52  ;;  %v943_v16 = vsel %vm4364_vm7, %v935_v60, %v942_v55  ;;  %v3855_v60 = vld [vmem:[%s5863_s3 + $0x60] sm:$0xff]  ;;  %v1414_v28 = vshll.u32 %v4640_v45, 16  ;;  %3967 = vmatpush.bf16.msra.mxu3 %v4689_v41 }
 0x122   : > { %v1723_v4 = vsel %vm4406_vm13, %v3572_v10, %v1722_v54  ;;  %v1724_v6 = vrot.slane %v1722_v54, 4  ;;  %v1149_v17 = vsel %vm4372_vm8, %v944_v1, %v1148_v61  ;;  %v946_v10 = vshrl.u32 %v674_v37, 16  ;;  %2178 = vrot.lane.b32.xlu2 %v4660_v13, %s4115_s26  ;;  %1147 = vst.msk [vmem:[#allocation2 + $0x94] sm:$0xf] %vm682_vm1, %v943_v16  ;;  %2751 = vmatpush.bf16.msra.mxu2 %v3855_v60 }
 0x123   : > { %v1993_v14 = vunpack.c.l.b16 %v1723_v4  ;;  %v874_v21 = vor.u32 %v872_v57, %v871_v9  ;;  %v876_v18 = vrot.slane %v871_v9, 4  ;;  %v634_v22 = vmax.f32 %v579_v5, 0.0  ;;  %1150 = vst [vmem:[#allocation2 + $0x98] sm:$0x1] %v1149_v17  ;;  %v1123_v4 = vld [vmem:[#allocation2 + $0x6c] sm:$0xf] }
 0x124   : > { %v1726_v20 = vsel %vm4406_vm13, %v1724_v6, %v1725_v63  ;;  %v4677_v23 = vrot.slane %v946_v10, 7  ;;  %v1411_v34 = vor.u32 %v1410_v25, %v4642_v46  ;;  %v1416_v47 = vrot.slane %v1414_v28, 5  ;;  %v605_v28 = vpop.f32.mrf.mxu1 }
 0x125   : > { %v1994_v36 = vunpack.c.l.b16 %v1726_v20  ;;  %v875_v31 = vsel %vm4364_vm7, %v867_v27, %v874_v21  ;;  %v1121_v32 = vsel %vm4372_vm8, %v876_v18, %v1120_v11  ;;  %v666_v33 = vpack.c.bf16 %v634_v22, %v634_v22  ;;  %v3854_v27 = vld [vmem:[%s5863_s3 + $0x58] sm:$0xff]  ;;  %v4711_v52 = vld [vmem:[#allocation2 + $0x60] sm:$0xf]  ;;  %3968 = vmatpush.bf16.msra.mxu3 %v4700_v48 }
 0x126   : > { %1119 = vst.msk [vmem:[#allocation2 + $0x64] sm:$0xf] %vm682_vm1, %v875_v31  ;;  %v951_v37 = vor.u32 %v949_v24, %v4677_v23  ;;  %v1418_v54 = vshrl.u32 %v4640_v45, 16  ;;  %v1424_v46 = vshll.u32 %v4650_v62, 16  ;;  %v952_v57 = vrot.slane %v4677_v23, 4  ;;  %2752 = vmatpush.bf16.msra.mxu2 %v3854_v27  ;;  %v3852_v31 = vld [vmem:[%s5863_s3 + $0x48] sm:$0xff] }
 0x127   : > { %v4684_v35 = vpack.c.b16 %v1994_v36, %v1993_v14  ;;  %1122 = vst [vmem:[#allocation2 + $0x68] sm:$0x1] %v1121_v32  ;;  %v878_v50 = vshrl.u32 %v666_v33, 16  ;;  %v881_v53 = vshll.u32 %v666_v33, 16  ;;  %v1412_v61 = vrot.slane %v1411_v34, 4 }
 0x128   : > { %v580_v56 = vpop.f32.mrf.mxu0  ;;  %v1152_v59 = vsel %vm4344_vm4, %v951_v37, %v1151_v40  ;;  %v643_v63 = vmax.f32 %v4654_v26, 0.0  ;;  %v1420_v45 = vrot.slane %v1418_v54, 4  ;;  %v3573_v62 = vrot.slane %v4711_v52, 9  ;;  %v3853_v26 = vld [vmem:[%s5863_s3 + $0x50] sm:$0xff] }
 0x129   : > { %2112 = vrot.lane.b32.xlu0 %v4684_v35, %s4113_s24  ;;  %v4713_v55 = vrot.slane %v878_v50, 7  ;;  %v581_v1 = vadd.f32 %v4627_v7, %v580_v56  ;;  %1153 = vst [vmem:[#allocation2 + $0x9c] sm:$0xf] %v1152_v59  ;;  %v1417_v6 = vsel %vm4413_vm14, %v1412_v61, %v1416_v47  ;;  %v1426_v9 = vrot.slane %v1424_v46, 5 }
 0x12a   : > { %v675_v5 = vpack.c.bf16 %v643_v63, %v643_v63  ;;  %v604_v14 = vadd.f32 %v4627_v7, %v603_v2  ;;  %v1421_v20 = vor.u32 %v1420_v45, %v1416_v47  ;;  %v1913_v10 = vunpack.c.l.b16 %v1417_v6  ;;  %2753 = vmatpush.bf16.msra.mxu2 %v3853_v26 }
 0x12b   : > { %v883_v11 = vor.u32 %v881_v53, %v4713_v55  ;;  %v884_v16 = vrot.slane %v4713_v55, 4  ;;  %v635_v17 = vmax.f32 %v581_v1, 0.0  ;;  %v1429_v25 = vshrl.u32 %v4711_v52, 16  ;;  %v1155_v53 = vld [vmem:[#allocation2 + $0xa4] sm:$0x1] }
 0x12c   : > { %v954_v21 = vshrl.u32 %v675_v5, 16  ;;  %v957_v18 = vshll.u32 %v675_v5, 16  ;;  %v644_v22 = vmax.f32 %v604_v14, 0.0  ;;  %v1422_v60 = vrot.slane %v1421_v20, 4 }
 0x12d   : > { %v1124_v36 = vsel %vm4344_vm4, %v883_v11, %v1123_v4  ;;  %v667_v2 = vpack.c.bf16 %v635_v17, %v635_v17  ;;  %v3833_v23 = vld [vmem:[#allocation2 + $0x60] sm:$0xff]  ;;  %v4738_v34 = vadd.f32 %v4627_v7, %v605_v28  ;;  %v1127_v4 = vld [vmem:[#allocation2 + $0x74] sm:$0x1] }
 0x12e   : > { %v4728_v24 = vld [vmem:[#allocation2 + $0x64] sm:$0xf]  ;;  %1125 = vst [vmem:[#allocation2 + $0x6c] sm:$0xf] %v1124_v36  ;;  %v956_v32 = vrot.slane %v954_v21, 7  ;;  %v676_v37 = vpack.c.bf16 %v644_v22, %v644_v22  ;;  %v1427_v50 = vsel %vm4413_vm14, %v1422_v60, %v1426_v9  ;;  %2147 = vrot.lane.b32.xlu1 %v3833_v23, %s4114_s25  ;;  %2754 = vmatpush.bf16.msra.mxu2 %v3852_v31  ;;  %v1431_v21 = vrot.slane %v1429_v25, 4 }
 0x12f   : > { %v4734_v33 = vld [vmem:[#allocation2 + $0x68] sm:$0x1]  ;;  %v1729_v40 = vrot.slane %v4728_v24, 5  ;;  %v886_v47 = vshrl.u32 %v667_v2, 16  ;;  %v889_v27 = vshll.u32 %v667_v2, 16  ;;  %v1914_v46 = vunpack.c.l.b16 %v1427_v50  ;;  %v608_v50 = vpop.f32.mrf.mxu1 }
 0x130   : > { %v1732_v54 = vrot.slane %v4734_v33, 5  ;;  %v959_v56 = vor.u32 %v957_v18, %v956_v32  ;;  %v961_v59 = vrot.slane %v956_v32, 4  ;;  %v963_v45 = vshrl.u32 %v676_v37, 16 }
 0x131   : > { %v1730_v61 = vsel %vm4406_vm13, %v3573_v62, %v1729_v40  ;;  %v888_v63 = vrot.slane %v886_v47, 7  ;;  %v1731_v55 = vrot.slane %v1729_v40, 4  ;;  %v4746_v6 = vpack.c.b16 %v1914_v46, %v1913_v10  ;;  %v3851_v62 = vld [vmem:[%s5863_s3 + $0x40] sm:$0xff]  ;;  %v1158_v10 = vld [vmem:[#allocation2 + $0xa8] sm:$0xf] }
 0x132   : > { %v1995_v1 = vunpack.c.l.b16 %v1730_v61  ;;  %v960_v9 = vsel %vm4364_vm7, %v952_v57, %v959_v56  ;;  %v1156_v5 = vsel %vm4372_vm8, %v961_v59, %v1155_v53  ;;  %v966_v14 = vshll.u32 %v676_v37, 16  ;;  %2755 = vmatpush.bf16.msra.mxu2 %v3851_v62  ;;  %v4774_v40 = vld [vmem:[#allocation2 + $0x78] sm:$0xf]  ;;  %v4784_v56 = vld [vmem:[#allocation2 + $0x7c] sm:$0xf] }
 0x133   : > { %v891_v26 = vor.u32 %v889_v27, %v888_v63  ;;  %v893_v11 = vrot.slane %v888_v63, 4  ;;  %1154 = vst.msk [vmem:[#allocation2 + $0xa0] sm:$0xf] %vm682_vm1, %v960_v9  ;;  %v1733_v17 = vsel %vm4406_vm13, %v1731_v55, %v1732_v54  ;;  %v4758_v20 = vrot.slane %v963_v45, 7  ;;  %2180 = vrot.lane.b32.xlu2 %v4746_v6, %s4115_s26 }
 0x134   : > { %1157 = vst [vmem:[#allocation2 + $0xa4] sm:$0x1] %v1156_v5  ;;  %v1996_v57 = vunpack.c.l.b16 %v1733_v17  ;;  %v1432_v18 = vshll.u32 %v4711_v52, 16  ;;  %v1438_v22 = vshll.u32 %v4728_v24, 16  ;;  %v1442_v52 = vshrl.u32 %v4728_v24, 16 }
 0x135   : > { %v892_v36 = vsel %vm4364_vm7, %v884_v16, %v891_v26  ;;  %v1128_v2 = vsel %vm4372_vm8, %v893_v11, %v1127_v4  ;;  %v968_v60 = vor.u32 %v966_v14, %v4758_v20  ;;  %v969_v23 = vrot.slane %v4758_v20, 4  ;;  %v1206_v28 = vld [vmem:[#allocation2 + $0x6c] sm:$0xf] }
 0x136   : > { %1126 = vst.msk [vmem:[#allocation2 + $0x70] sm:$0xf] %vm682_vm1, %v892_v36  ;;  %v4771_v31 = vpack.c.b16 %v1996_v57, %v1995_v1  ;;  %v1434_v25 = vrot.slane %v1432_v18, 5  ;;  %v1440_v32 = vrot.slane %v1438_v22, 5  ;;  %v1448_v37 = vshll.u32 %v4734_v33, 16  ;;  %2843 = vmatpush.bf16.msrb.mxu2 %v4689_v41 }
 0x137   : > { %1129 = vst [vmem:[#allocation2 + $0x74] sm:$0x1] %v1128_v2  ;;  %v1159_v16 = vsel %vm4344_vm4, %v968_v60, %v1158_v10  ;;  %v645_v47 = vmax.f32 %v4738_v34, 0.0  ;;  %v3574_v27 = vrot.slane %v1206_v28, 9  ;;  %v1444_v53 = vrot.slane %v1442_v52, 4 }
 0x138   : > { %2114 = vrot.lane.b32.xlu0 %v4771_v31, %s4113_s24  ;;  %1160 = vst [vmem:[#allocation2 + $0xa8] sm:$0xf] %v1159_v16  ;;  %v1435_v24 = vor.u32 %v1434_v25, %v1431_v21  ;;  %v609_v54 = vadd.f32 %v4627_v7, %v608_v50  ;;  %v1453_v46 = vshrl.u32 %v1206_v28, 16  ;;  %v1450_v59 = vrot.slane %v1448_v37, 5  ;;  %v1162_v21 = vld [vmem:[#allocation2 + $0xb0] sm:$0x1] }
 0x139   : > { %v677_v61 = vpack.c.bf16 %v645_v47, %v645_v47  ;;  %v1456_v33 = vshll.u32 %v1206_v28, 16  ;;  %v3575_v34 = vrot.slane %v4774_v40, 9  ;;  %v1445_v55 = vor.u32 %v1444_v53, %v1440_v32 }
 0x13a   : > { %v1436_v63 = vrot.slane %v1435_v24, 4  ;;  %v646_v1 = vmax.f32 %v609_v54, 0.0  ;;  %v1455_v41 = vrot.slane %v1453_v46, 4  ;;  %v2101_v45 = vpop.permute.xlu0 %2100  ;;  %v1743_v14 = vrot.slane %v4784_v56, 5  ;;  %2844 = vmatpush.bf16.msrb.mxu2 %v4700_v48 }
 0x13b   : > { %v971_v4 = vshrl.u32 %v677_v61, 16  ;;  %v974_v9 = vshll.u32 %v677_v61, 16  ;;  %v1458_v5 = vrot.slane %v1456_v33, 5  ;;  %v2337_v62 = vsel %vm2205_vm15, %v4440_v58, %v2101_v45 }
 0x13c   : > { %v1441_v26 = vsel %vm4413_vm14, %v1436_v63, %v1440_v32  ;;  %v1446_v11 = vrot.slane %v1445_v55, 4  ;;  %v678_v17 = vpack.c.bf16 %v646_v1, %v646_v1  ;;  %v1744_v2 = vsel %vm4406_vm13, %v3575_v34, %v1743_v14  ;;  %v1165_v34 = vld [vmem:[#allocation2 + $0xb4] sm:$0xf]  ;;  %v1211_v63 = vld [vmem:[#allocation2 + $0x80] sm:$0x1] }
 0x13d   : > { %v1915_v10 = vunpack.c.l.b16 %v1441_v26  ;;  %v973_v57 = vrot.slane %v971_v4, 7  ;;  %v3834_v18 = vld [vmem:[#allocation2 + $0x6c] sm:$0xff]  ;;  %v1459_v36 = vor.u32 %v1458_v5, %v1455_v41  ;;  %v610_v5 = vpop.f32.mrf.mxu1 }
 0x13e   : > { %v1207_v22 = vld [vmem:[#allocation2 + $0x70] sm:$0xf]  ;;  %v1451_v48 = vsel %vm4413_vm14, %v1446_v11, %v1450_v59  ;;  %v1208_v60 = vld [vmem:[#allocation2 + $0x74] sm:$0x1]  ;;  %v980_v25 = vshrl.u32 %v678_v17, 16  ;;  %v983_v52 = vshll.u32 %v678_v17, 16  ;;  %2149 = vrot.lane.b32.xlu1 %v3834_v18, %s4114_s25 }
 0x13f   : > { %v1736_v28 = vrot.slane %v1207_v22, 5  ;;  %v1916_v16 = vunpack.c.l.b16 %v1451_v48  ;;  %v976_v32 = vor.u32 %v974_v9, %v973_v57  ;;  %v978_v37 = vrot.slane %v973_v57, 4  ;;  %v4820_v17 = vld [vmem:[#allocation2 + $0x78] sm:$0xff] }
 0x140   : > { %v1739_v47 = vrot.slane %v1208_v60, 5  ;;  %v4800_v53 = vrot.slane %v980_v25, 7  ;;  %v1460_v54 = vrot.slane %v1459_v36, 4  ;;  %v1462_v41 = vshll.u32 %v1207_v22, 16 }
 0x141   : > { %v1737_v50 = vsel %vm4406_vm13, %v3574_v27, %v1736_v28  ;;  %v1738_v24 = vrot.slane %v1736_v28, 4  ;;  %v4802_v46 = vpack.c.b16 %v1916_v16, %v1915_v10  ;;  %v977_v59 = vsel %vm4364_vm7, %v969_v23, %v976_v32 }
 0x142   : > { %v1163_v61 = vsel %vm4372_vm8, %v978_v37, %v1162_v21  ;;  %v1997_v33 = vunpack.c.l.b16 %v1737_v50  ;;  %1161 = vst.msk [vmem:[#allocation2 + $0xac] sm:$0xf] %vm682_vm1, %v977_v59  ;;  %v985_v55 = vor.u32 %v983_v52, %v4800_v53  ;;  %v986_v1 = vrot.slane %v4800_v53, 4  ;;  %v2136_v20 = vpop.permute.xlu0 %2135 }
 0x143   : > { %v1740_v27 = vsel %vm4406_vm13, %v1738_v24, %v1739_v47  ;;  %2182 = vrot.lane.b32.xlu2 %v4802_v46, %s4115_s26  ;;  %1164 = vst [vmem:[#allocation2 + $0xb0] sm:$0x1] %v1163_v61  ;;  %v1466_v45 = vshrl.u32 %v1207_v22, 16  ;;  %v1472_v4 = vshll.u32 %v1208_v60, 16  ;;  %v1745_v9 = vrot.slane %v1743_v14, 4 }
 0x144   : > { %v1998_v23 = vunpack.c.l.b16 %v1740_v27  ;;  %v2384_v26 = vsel %vm480_vm0, %v2337_v62, %v2136_v20  ;;  %v1166_v11 = vsel %vm4344_vm4, %v985_v55, %v1165_v34  ;;  %v1464_v10 = vrot.slane %v1462_v41, 5  ;;  %v4839_v47 = vld [vmem:[#allocation2 + $0x88] sm:$0xf]  ;;  %v4843_v61 = vld [vmem:[#allocation2 + $0x84] sm:$0xf] }
 0x145   : > { %v1746_v57 = vrot.slane %v1211_v63, 5  ;;  %1167 = vst [vmem:[#allocation2 + $0xb4] sm:$0xf] %v1166_v11  ;;  %v1468_v18 = vrot.slane %v1466_v45, 4  ;;  %v1474_v36 = vrot.slane %v1472_v4, 5  ;;  %v1999_v48 = vunpack.c.l.b16 %v1744_v2 }
 0x146   : > { %v4822_v21 = vpack.c.b16 %v1998_v23, %v1997_v33  ;;  %v1465_v22 = vsel %vm4413_vm14, %v1460_v54, %v1464_v10  ;;  %v611_v62 = vadd.f32 %v4627_v7, %v610_v5  ;;  %v1477_v2 = vshrl.u32 %v4774_v40, 16  ;;  %2151 = vrot.lane.b32.xlu1 %v4820_v17, %s4114_s25  ;;  %v4845_v41 = vld [vmem:[#allocation2 + $0x8c] sm:$0x1] }
 0x147   : > { %v1747_v14 = vsel %vm4406_vm13, %v1745_v9, %v1746_v57  ;;  %v1469_v60 = vor.u32 %v1468_v18, %v1464_v10  ;;  %v1917_v28 = vunpack.c.l.b16 %v1465_v22  ;;  %v1480_v16 = vshll.u32 %v4774_v40, 16 }
 0x148   : > { %3734 = vmatmul.msk.bf16.vlgmr.msra.gmra.mxu3 %vm2205_vm15, %v4822_v21  ;;  %2116 = vrot.lane.b32.xlu0 %v4822_v21, %s4113_s24  ;;  %v2000_v25 = vunpack.c.l.b16 %v1747_v14  ;;  %v647_v52 = vmax.f32 %v611_v62, 0.0  ;;  %v1486_v32 = vshll.u32 %v4784_v56, 16  ;;  %v1490_v37 = vshrl.u32 %v4784_v56, 16 }
 0x149   : > { %v1470_v50 = vrot.slane %v1469_v60, 4  ;;  %v1479_v54 = vrot.slane %v1477_v2, 4  ;;  %v1496_v59 = vshll.u32 %v1211_v63, 16  ;;  %v1482_v34 = vrot.slane %v1480_v16, 5  ;;  %v4851_v63 = vld [vmem:[#allocation2 + $0x84] sm:$0xff] }
 0x14a   : > { %v4841_v24 = vpack.c.b16 %v2000_v25, %v1999_v48  ;;  %v679_v33 = vpack.c.bf16 %v647_v52, %v647_v52  ;;  %v1488_v27 = vrot.slane %v1486_v32, 5  ;;  %v1492_v55 = vrot.slane %v1490_v37, 4  ;;  %v2138_v25 = vpop.permute.xlu2 %2137  ;;  %v1169_v2 = vld [vmem:[#allocation2 + $0xbc] sm:$0x1] }
 0x14b   : > { %v1475_v40 = vsel %vm4413_vm14, %v1470_v50, %v1474_v36  ;;  %v1498_v20 = vrot.slane %v1496_v59, 5  ;;  %v3576_v56 = vrot.slane %v4843_v61, 9  ;;  %v1750_v23 = vrot.slane %v4839_v47, 5  ;;  %v613_v36 = vpop.f32.mrf.mxu1 }
 0x14c   : > { %v1918_v45 = vunpack.c.l.b16 %v1475_v40  ;;  %v988_v4 = vshrl.u32 %v679_v33, 16  ;;  %v991_v9 = vshll.u32 %v679_v33, 16  ;;  %v1483_v5 = vor.u32 %v1482_v34, %v1479_v54 }
 0x14d   : > { %v1493_v10 = vor.u32 %v1492_v55, %v1488_v27  ;;  %v1751_v57 = vsel %vm4406_vm13, %v3576_v56, %v1750_v23  ;;  %v1752_v18 = vrot.slane %v1750_v23, 4  ;;  %v1753_v48 = vrot.slane %v4845_v41, 5 }
 0x14e   : > { %v2171_v11 = vpop.permute.xlu1 %2170  ;;  %v4856_v22 = vpack.c.b16 %v1918_v45, %v1917_v28  ;;  %v990_v62 = vrot.slane %v988_v4, 7  ;;  %v1484_v60 = vrot.slane %v1483_v5, 4  ;;  %v2001_v32 = vunpack.c.l.b16 %v1751_v57  ;;  %2153 = vrot.lane.b32.xlu1 %v4851_v63, %s4114_s25  ;;  %v4883_v4 = vld [vmem:[#allocation2 + $0x94] sm:$0xf] }
 0x14f   : > { %v2416_v14 = vsel %vm2286_vm2, %v2384_v26, %v2171_v11  ;;  %v1494_v52 = vrot.slane %v1493_v10, 4  ;;  %v1754_v16 = vsel %vm4406_vm13, %v1752_v18, %v1753_v48  ;;  %v614_v37 = vadd.f32 %v4627_v7, %v613_v36  ;;  %v4892_v10 = vld [vmem:[#allocation2 + $0x90] sm:$0xff] }
 0x150   : > { %2118 = vrot.lane.b32.xlu0 %v4841_v24, %s4113_s24  ;;  %2756 = vmatmul.bf16.vlgmr.msra.gmra.mxu2 %v2416_v14  ;;  %v993_v28 = vor.u32 %v991_v9, %v990_v62  ;;  %v995_v26 = vrot.slane %v990_v62, 4  ;;  %v1489_v50 = vsel %vm4413_vm14, %v1484_v60, %v1488_v27  ;;  %v2002_v54 = vunpack.c.l.b16 %v1754_v16  ;;  %v4881_v27 = vld [vmem:[#allocation2 + $0x90] sm:$0xf] }
 0x151   : > { %2184 = vrot.lane.b32.xlu2 %v4856_v22, %s4115_s26  ;;  %v1499_v59 = vsel %vm4413_vm14, %v1494_v52, %v1498_v20  ;;  %v1919_v33 = vunpack.c.l.b16 %v1489_v50  ;;  %v648_v34 = vmax.f32 %v614_v37, 0.0  ;;  %v1501_v55 = vshrl.u32 %v4843_v61, 16  ;;  %v4885_v20 = vld [vmem:[#allocation2 + $0x98] sm:$0x1] }
 0x152   : > { %v994_v40 = vsel %vm4364_vm7, %v986_v1, %v993_v28  ;;  %v1170_v56 = vsel %vm4372_vm8, %v995_v26, %v1169_v2  ;;  %v1920_v23 = vunpack.c.l.b16 %v1499_v59  ;;  %v4879_v45 = vpack.c.b16 %v2002_v54, %v2001_v32  ;;  %v2173_v37 = vpop.permute.xlu2 %2172  ;;  %v1172_v54 = vld [vmem:[#allocation2 + $0xc0] sm:$0xf] }
 0x153   : > { %1168 = vst.msk [vmem:[#allocation2 + $0xb8] sm:$0xf] %vm682_vm1, %v994_v40  ;;  %v680_v9 = vpack.c.bf16 %v648_v34, %v648_v34  ;;  %v1503_v5 = vrot.slane %v1501_v55, 4  ;;  %v1504_v53 = vshll.u32 %v4843_v61, 16  ;;  %v1510_v1 = vshll.u32 %v4839_v47, 16  ;;  %v615_v50 = vpop.f32.mrf.mxu1 }
 0x154   : > { %1171 = vst [vmem:[#allocation2 + $0xbc] sm:$0x1] %v1170_v56  ;;  %v4890_v11 = vpack.c.b16 %v1920_v23, %v1919_v33  ;;  %v1514_v57 = vshrl.u32 %v4839_v47, 16  ;;  %v1520_v18 = vshll.u32 %v4845_v41, 16  ;;  %v3577_v48 = vrot.slane %v4881_v27, 9 }
 0x155   : > { %v997_v14 = vshrl.u32 %v680_v9, 16  ;;  %v1000_v62 = vshll.u32 %v680_v9, 16  ;;  %v1506_v60 = vrot.slane %v1504_v53, 5  ;;  %v1512_v2 = vrot.slane %v1510_v1, 5 }
 0x156   : > { %v2103_v36 = vpop.permute.xlu1 %2102  ;;  %v1516_v52 = vrot.slane %v1514_v57, 4  ;;  %v1522_v16 = vrot.slane %v1520_v18, 5  ;;  %v1757_v32 = vrot.slane %v4883_v4, 5  ;;  %v1760_v28 = vrot.slane %v4885_v20, 5  ;;  %2155 = vrot.lane.b32.xlu1 %v4892_v10, %s4114_s25 }
 0x157   : > { %v2340_v61 = vsel %vm2205_vm15, %v4459_v51, %v2103_v36  ;;  %v4904_v47 = vrot.slane %v997_v14, 7  ;;  %v1507_v41 = vor.u32 %v1506_v60, %v1503_v5  ;;  %v616_v57 = vadd.f32 %v4627_v7, %v615_v50  ;;  %v4926_v14 = vld [vmem:[#allocation2 + $0x9c] sm:$0xff] }
 0x158   : > { %3735 = vmatmul.msk.bf16.gmra.mxu3 %vm2205_vm15, %v4841_v24  ;;  %2120 = vrot.lane.b32.xlu0 %v4879_v45, %s4113_s24  ;;  %v2386_v26 = vsel %vm480_vm0, %v2340_v61, %v2138_v25  ;;  %v1517_v59 = vor.u32 %v1516_v52, %v1512_v2  ;;  %v1758_v33 = vsel %vm4406_vm13, %v3577_v48, %v1757_v32  ;;  %v1759_v34 = vrot.slane %v1757_v32, 4  ;;  %v4932_v7 = vld [vmem:[#allocation2 + $0xa0] sm:$0xf] }
 0x159   : > { %2186 = vrot.lane.b32.xlu2 %v4890_v11, %s4115_s26  ;;  %v2419_v55 = vsel %vm2286_vm2, %v2386_v26, %v2173_v37  ;;  %v1002_v40 = vor.u32 %v1000_v62, %v4904_v47  ;;  %v1003_v56 = vrot.slane %v4904_v47, 4  ;;  %v1508_v23 = vrot.slane %v1507_v41, 4 }
 0x15a   : > { %v2105_v25 = vpop.permute.xlu0 %2104  ;;  %v2003_v9 = vunpack.c.l.b16 %v1758_v33  ;;  %v1518_v53 = vrot.slane %v1517_v59, 4  ;;  %v1761_v1 = vsel %vm4406_vm13, %v1759_v34, %v1760_v28  ;;  %v1525_v62 = vshrl.u32 %v4881_v27, 16  ;;  %v1218_v28 = vld [vmem:[#allocation2 + $0x9c] sm:$0xf] }
 0x15b   : > { %v2343_v5 = vsel %vm2205_vm15, %v4492_v0, %v2105_v25  ;;  %v1173_v18 = vsel %vm4344_vm4, %v1002_v40, %v1172_v54  ;;  %v1513_v48 = vsel %vm4413_vm14, %v1508_v23, %v1512_v2  ;;  %v2004_v36 = vunpack.c.l.b16 %v1761_v1 }
 0x15c   : > { %1174 = vst [vmem:[#allocation2 + $0xc0] sm:$0xf] %v1173_v18  ;;  %v1523_v60 = vsel %vm4413_vm14, %v1518_v53, %v1522_v16  ;;  %v1921_v61 = vunpack.c.l.b16 %v1513_v48  ;;  %v649_v52 = vmax.f32 %v616_v57, 0.0  ;;  %v1528_v32 = vshll.u32 %v4881_v27, 16  ;;  %v1220_v16 = vld [vmem:[#allocation2 + $0xa4] sm:$0x1] }
 0x15d   : > { %v1922_v29 = vunpack.c.l.b16 %v1523_v60  ;;  %v4934_v37 = vpack.c.b16 %v2004_v36, %v2003_v9  ;;  %v1527_v41 = vrot.slane %v1525_v62, 4  ;;  %v1534_v2 = vshll.u32 %v4883_v4, 16  ;;  %v1176_v60 = vld [vmem:[#allocation2 + $0xc8] sm:$0x1] }
 0x15e   : > { %v681_v26 = vpack.c.bf16 %v649_v52, %v649_v52  ;;  %v1530_v50 = vrot.slane %v1528_v32, 5  ;;  %v1538_v54 = vshrl.u32 %v4883_v4, 16  ;;  %v1544_v59 = vshll.u32 %v4885_v20, 16  ;;  %2157 = vrot.lane.b32.xlu1 %v4926_v14, %s4114_s25 }
 0x15f   : > { %v4939_v33 = vpack.c.b16 %v1922_v29, %v1921_v61  ;;  %v1536_v27 = vrot.slane %v1534_v2, 5  ;;  %v3578_v34 = vrot.slane %v1218_v28, 9  ;;  %v1764_v40 = vrot.slane %v4932_v7, 5 }
 0x160   : > { %2122 = vrot.lane.b32.xlu0 %v4934_v37, %s4113_s24  ;;  %2761 = vmatmul.bf16.gmra.mxu2 %v2419_v55  ;;  %v1005_v25 = vshrl.u32 %v681_v26, 16  ;;  %v1008_v23 = vshll.u32 %v681_v26, 16  ;;  %v1531_v9 = vor.u32 %v1530_v50, %v1527_v41  ;;  %v1540_v4 = vrot.slane %v1538_v54, 4  ;;  %v2140_v20 = vpop.permute.xlu1 %2139  ;;  %v4955_v54 = vld [vmem:[#allocation2 + $0xa8] sm:$0xff] }
 0x161   : > { %2188 = vrot.lane.b32.xlu2 %v4939_v33, %s4115_s26  ;;  %v1546_v53 = vrot.slane %v1544_v59, 5  ;;  %v1765_v1 = vsel %vm4406_vm13, %v3578_v34, %v1764_v40  ;;  %v1766_v55 = vrot.slane %v1764_v40, 4  ;;  %v1767_v57 = vrot.slane %v1220_v16, 5  ;;  %5889 = vst [vmem:[#allocation7_spill] sm:$0xff] %v4955_v54 }
 0x162   : > { %v1007_v18 = vrot.slane %v1005_v25, 7  ;;  %v2388_v48 = vsel %vm480_vm0, %v2343_v5, %v2140_v20  ;;  %v1532_v36 = vrot.slane %v1531_v9, 4  ;;  %v1541_v62 = vor.u32 %v1540_v4, %v1536_v27  ;;  %v1222_v25 = vld [vmem:[#allocation2 + $0xac] sm:$0xf]  ;;  %v1223_v4 = vld [vmem:[#allocation2 + $0xb0] sm:$0x1] }
 0x163   : > { %v1768_v61 = vsel %vm4406_vm13, %v1766_v55, %v1767_v57  ;;  %v2005_v52 = vunpack.c.l.b16 %v1765_v1  ;;  %v1549_v32 = vshrl.u32 %v1218_v28, 16  ;;  %v1552_v29 = vshll.u32 %v1218_v28, 16 }
 0x164   : > { %v1010_v41 = vor.u32 %v1008_v23, %v1007_v18  ;;  %v1012_v2 = vrot.slane %v1007_v18, 4  ;;  %v1537_v26 = vsel %vm4413_vm14, %v1532_v36, %v1536_v27  ;;  %v1542_v50 = vrot.slane %v1541_v62, 4 }
 0x165   : > { %v1923_v59 = vunpack.c.l.b16 %v1537_v26  ;;  %v2006_v34 = vunpack.c.l.b16 %v1768_v61  ;;  %v1551_v5 = vrot.slane %v1549_v32, 4  ;;  %v1554_v40 = vrot.slane %v1552_v29, 5  ;;  %v2175_v61 = vpop.permute.xlu2 %2174 }
 0x166   : > { %v1011_v9 = vsel %vm4364_vm7, %v1003_v56, %v1010_v41  ;;  %v1177_v28 = vsel %vm4372_vm8, %v1012_v2, %v1176_v60  ;;  %v1547_v23 = vsel %vm4413_vm14, %v1542_v50, %v1546_v53  ;;  %v1558_v27 = vshll.u32 %v4932_v7, 16  ;;  %v1221_v56 = vld [vmem:[#allocation2 + $0xa8] sm:$0xf]  ;;  %2159 = vrot.lane.b32.xlu1 %v4955_v54, %s4114_s25 }
 0x167   : > { %1175 = vst.msk [vmem:[#allocation2 + $0xc4] sm:$0xf] %vm682_vm1, %v1011_v9  ;;  %v1924_v20 = vunpack.c.l.b16 %v1547_v23  ;;  %v4969_v1 = vpack.c.b16 %v2006_v34, %v2005_v52  ;;  %v1555_v47 = vor.u32 %v1554_v40, %v1551_v5  ;;  %v1562_v38 = vshrl.u32 %v4932_v7, 16  ;;  %v1224_v40 = vld [vmem:[#allocation2 + $0xb4] sm:$0xf] }
 0x168   : > { %3736 = vmatmul.msk.bf16.gmra.mxu3 %vm2205_vm15, %v4879_v45  ;;  %1178 = vst [vmem:[#allocation2 + $0xc8] sm:$0x1] %v1177_v28  ;;  %v1560_v42 = vrot.slane %v1558_v27, 5  ;;  %v1568_v53 = vshll.u32 %v1220_v16, 16  ;;  %v3579_v55 = vrot.slane %v1221_v56, 9  ;;  %v1771_v57 = vrot.slane %v1222_v25, 5 }
 0x169   : > { %v4974_v18 = vpack.c.b16 %v1924_v20, %v1923_v59  ;;  %2124 = vrot.lane.b32.xlu0 %v4969_v1, %s4113_s24  ;;  %v1556_v36 = vrot.slane %v1555_v47, 4  ;;  %v1564_v62 = vrot.slane %v1562_v38, 4  ;;  %v1774_v60 = vrot.slane %v1223_v4, 5  ;;  %v4987_v59 = vld [vmem:[#allocation2 + $0xb4] sm:$0xff] }
 0x16a   : > { %v1570_v52 = vrot.slane %v1568_v53, 5  ;;  %v1772_v7 = vsel %vm4406_vm13, %v3579_v55, %v1771_v57  ;;  %v1773_v32 = vrot.slane %v1771_v57, 4  ;;  %v2422_v2 = vsel %vm2286_vm2, %v2388_v48, %v2175_v61  ;;  %5890 = vst [vmem:[#allocation8_spill] sm:$0xff] %v4987_v59  ;;  %v1225_v20 = vld [vmem:[#allocation2 + $0xb8] sm:$0xf]  ;;  %v2107_v48 = vpop.permute.xlu0 %2106 }
 0x16b   : > { %2190 = vrot.lane.b32.xlu2 %v4974_v18, %s4115_s26  ;;  %v1561_v16 = vsel %vm4413_vm14, %v1556_v36, %v1560_v42  ;;  %v1565_v29 = vor.u32 %v1564_v62, %v1560_v42  ;;  %v2007_v41 = vunpack.c.l.b16 %v1772_v7  ;;  %v1573_v34 = vshrl.u32 %v1221_v56, 16  ;;  %v1226_v53 = vld [vmem:[#allocation2 + $0xbc] sm:$0x1] }
 0x16c   : > { %v1925_v26 = vunpack.c.l.b16 %v1561_v16  ;;  %v1775_v50 = vsel %vm4406_vm13, %v1773_v32, %v1774_v60  ;;  %v1576_v5 = vshll.u32 %v1221_v56, 16  ;;  %v1582_v23 = vshll.u32 %v1222_v25, 16 }
 0x16d   : > { %v1566_v9 = vrot.slane %v1565_v29, 4  ;;  %v2008_v28 = vunpack.c.l.b16 %v1775_v50  ;;  %v1586_v27 = vshrl.u32 %v1222_v25, 16  ;;  %v1575_v47 = vrot.slane %v1573_v34, 4 }
 0x16e   : > { %v1578_v38 = vrot.slane %v1576_v5, 5  ;;  %v1592_v42 = vshll.u32 %v1223_v4, 16  ;;  %v3580_v55 = vrot.slane %v1224_v40, 9  ;;  %v1584_v62 = vrot.slane %v1582_v23, 5  ;;  %2161 = vrot.lane.b32.xlu1 %v4987_v59, %s4114_s25 }
 0x16f   : > { %v1571_v57 = vsel %vm4413_vm14, %v1566_v9, %v1570_v52  ;;  %v4991_v36 = vpack.c.b16 %v2008_v28, %v2007_v41  ;;  %v1588_v56 = vrot.slane %v1586_v27, 4  ;;  %v1778_v7 = vrot.slane %v1225_v20, 5  ;;  %v5007_v27 = vld [vmem:[#allocation2 + $0xc0] sm:$0xff] }
 0x170   : > { %2766 = vmatmul.bf16.gmra.mxu2 %v2422_v2  ;;  %v1926_v60 = vunpack.c.l.b16 %v1571_v57  ;;  %v1579_v25 = vor.u32 %v1578_v38, %v1575_v47  ;;  %v1594_v61 = vrot.slane %v1592_v42, 5  ;;  %v1781_v32 = vrot.slane %v1226_v53, 5  ;;  %v2142_v23 = vpop.permute.xlu1 %2141  ;;  %5891 = vst [vmem:[#allocation9_spill] sm:$0xff] %v5007_v27  ;;  %v1228_v42 = vld [vmem:[#allocation2 + $0xc4] sm:$0xf] }
 0x171   : > { %2126 = vrot.lane.b32.xlu0 %v4991_v36, %s4113_s24  ;;  %v1589_v4 = vor.u32 %v1588_v56, %v1584_v62  ;;  %v1597_v16 = vshrl.u32 %v1224_v40, 16  ;;  %v1600_v29 = vshll.u32 %v1224_v40, 16  ;;  %v2346_v52 = vsel %vm2205_vm15, %v4534_v30, %v2107_v48 }
 0x172   : > { %v4999_v41 = vpack.c.b16 %v1926_v60, %v1925_v26  ;;  %v1580_v2 = vrot.slane %v1579_v25, 4  ;;  %v1779_v50 = vsel %vm4406_vm13, %v3580_v55, %v1778_v7  ;;  %v1780_v5 = vrot.slane %v1778_v7, 4  ;;  %v1229_v60 = vld [vmem:[#allocation2 + $0xc8] sm:$0x1] }
 0x173   : > { %v1590_v34 = vrot.slane %v1589_v4, 4  ;;  %v2009_v9 = vunpack.c.l.b16 %v1779_v50  ;;  %v1599_v28 = vrot.slane %v1597_v16, 4  ;;  %v1602_v47 = vrot.slane %v1600_v29, 5 }
 0x174   : > { %2192 = vrot.lane.b32.xlu2 %v4999_v41, %s4115_s26  ;;  %v1585_v40 = vsel %vm4413_vm14, %v1580_v2, %v1584_v62  ;;  %v1606_v26 = vshll.u32 %v1225_v20, 16  ;;  %v1610_v38 = vshrl.u32 %v1225_v20, 16  ;;  %v1782_v57 = vsel %vm4406_vm13, %v1780_v5, %v1781_v32  ;;  %v1227_v62 = vld [vmem:[#allocation2 + $0xc0] sm:$0xf]  ;;  %v2177_v5 = vpop.permute.xlu2 %2176 }
 0x175   : > { %v1595_v55 = vsel %vm4413_vm14, %v1590_v34, %v1594_v61  ;;  %v1927_v48 = vunpack.c.l.b16 %v1585_v40  ;;  %v1616_v56 = vshll.u32 %v1226_v53, 16  ;;  %v2010_v7 = vunpack.c.l.b16 %v1782_v57 }
 0x176   : > { %v1928_v25 = vunpack.c.l.b16 %v1595_v55  ;;  %v1603_v4 = vor.u32 %v1602_v47, %v1599_v28  ;;  %v1608_v16 = vrot.slane %v1606_v26, 5  ;;  %v2390_v2 = vsel %vm480_vm0, %v2346_v52, %v2142_v23  ;;  %2163 = vrot.lane.b32.xlu1 %v5007_v27, %s4114_s25  ;;  %v1179_v55 = vld [vmem:[#allocation2] sm:$0xf] }
 0x177   : > { %v1612_v20 = vrot.slane %v1610_v38, 4  ;;  %v3581_v29 = vrot.slane %v1227_v62, 9  ;;  %v1812_v50 = vrot.slane %v1228_v42, 5  ;;  %v5018_v34 = vpack.c.b16 %v2010_v7, %v2009_v9 }
 0x178   : > { %3737 = vmatmul.msk.bf16.gmra.mxu3 %vm2205_vm15, %v4934_v37  ;;  %v5016_v61 = vpack.c.b16 %v1928_v25, %v1927_v48  ;;  %v1604_v53 = vrot.slane %v1603_v4, 4  ;;  %v1815_v32 = vrot.slane %v1229_v60, 5  ;;  %v1618_v40 = vrot.slane %v1616_v56, 5  ;;  %v3842_v4 = vld [vmem:[#allocation2 + $0xcc] sm:$0xff] }
 0x179   : > { %v1613_v28 = vor.u32 %v1612_v20, %v1608_v16  ;;  %v1813_v52 = vsel %vm4406_vm13, %v3581_v29, %v1812_v50  ;;  %v1814_v23 = vrot.slane %v1812_v50, 4  ;;  %2128 = vrot.lane.b32.xlu0 %v5018_v34, %s4113_s24  ;;  %v2425_v26 = vsel %vm2286_vm2, %v2390_v2, %v2177_v5  ;;  %v1180_v5 = vld [vmem:[#allocation2 + $0x4] sm:$0xf] }
 0x17a   : > { %v1609_v47 = vsel %vm4413_vm14, %v1604_v53, %v1608_v16  ;;  %v2097_v9 = vunpack.c.l.b16 %v1813_v52  ;;  %v1784_v38 = vshrl.u32 %v1227_v62, 16  ;;  %v1787_v25 = vshll.u32 %v1227_v62, 16 }
 0x17b   : > { %v1614_v48 = vrot.slane %v1613_v28, 4  ;;  %v1929_v57 = vunpack.c.l.b16 %v1609_v47  ;;  %v1816_v56 = vsel %vm4406_vm13, %v1814_v23, %v1815_v32  ;;  %v1793_v29 = vshll.u32 %v1228_v42, 16  ;;  %v1181_v23 = vld [vmem:[#allocation2 + $0x8] sm:$0x1] }
 0x17c   : > { %2194 = vrot.lane.b32.xlu2 %v5016_v61, %s4115_s26  ;;  %v2098_v7 = vunpack.c.l.b16 %v1816_v56  ;;  %v1786_v20 = vrot.slane %v1784_v38, 4  ;;  %v1797_v50 = vshrl.u32 %v1228_v42, 16  ;;  %v1789_v2 = vrot.slane %v1787_v25, 5 }
 0x17d   : > { %v1619_v16 = vsel %vm4413_vm14, %v1614_v48, %v1618_v40  ;;  %v1803_v53 = vshll.u32 %v1229_v60, 16  ;;  %v1237_v28 = vshrl.u32 %v1179_v55, 16  ;;  %v1795_v32 = vrot.slane %v1793_v29, 5 }
 0x17e   : > { %v1930_v52 = vunpack.c.l.b16 %v1619_v16  ;;  %v5035_v47 = vpack.c.b16 %v2098_v7, %v2097_v9  ;;  %v1799_v62 = vrot.slane %v1797_v50, 4  ;;  %v1790_v27 = vor.u32 %v1789_v2, %v1786_v20  ;;  %2165 = vrot.lane.b32.xlu1 %v3842_v4, %s4114_s25  ;;  %v5044_v4 = vld [vmem:[#allocation2 + $0xcc] sm:$0xf] }
 0x17f   : > { %v1805_v56 = vrot.slane %v1803_v53, 5  ;;  %v1239_v59 = vrot.slane %v1237_v28, 4  ;;  %v1240_v38 = vshll.u32 %v1179_v55, 16  ;;  %v1246_v40 = vshll.u32 %v1180_v5, 16  ;;  %5892 = vst [vmem:[#allocation10_spill] sm:$0xff] %v5044_v4 }
 0x180   : > { %2771 = vmatmul.bf16.gmra.mxu2 %v2425_v26  ;;  %v5037_v54 = vpack.c.b16 %v1930_v52, %v1929_v57  ;;  %v1800_v42 = vor.u32 %v1799_v62, %v1795_v32  ;;  %v1250_v60 = vshrl.u32 %v1180_v5, 16  ;;  %v1791_v48 = vrot.slane %v1790_v27, 4  ;;  %v5050_v52 = vld [vmem:[#allocation2 + $0xd0] sm:$0xf] }
 0x181   : > { %v1242_v25 = vrot.slane %v1240_v38, 5  ;;  %v1256_v16 = vshll.u32 %v1181_v23, 16  ;;  %v3565_v9 = vrot.slane %v1179_v55, 9  ;;  %2130 = vrot.lane.b32.xlu0 %v5035_v47, %s4113_s24  ;;  %v1248_v26 = vrot.slane %v1246_v40, 5 }
 0x182   : > { %v1801_v7 = vrot.slane %v1800_v42, 4  ;;  %v1252_v20 = vrot.slane %v1250_v60, 4  ;;  %v1796_v29 = vsel %vm4413_vm14, %v1791_v48, %v1795_v32  ;;  %v1673_v2 = vrot.slane %v1180_v5, 5  ;;  %v2109_v48 = vpop.permute.xlu0 %2108 }
 0x183   : > { %v1243_v57 = vor.u32 %v1242_v25, %v1239_v59  ;;  %v1258_v50 = vrot.slane %v1256_v16, 5  ;;  %v2094_v55 = vunpack.c.l.b16 %v1796_v29  ;;  %v1676_v28 = vrot.slane %v1181_v23, 5  ;;  %v5064_v16 = vld [vmem:[#allocation2 + $0xd4] sm:$0x1] }
 0x184   : > { %2196 = vrot.lane.b32.xlu2 %v5037_v54, %s4115_s26  ;;  %v1806_v27 = vsel %vm4413_vm14, %v1801_v7, %v1805_v56  ;;  %v1253_v53 = vor.u32 %v1252_v20, %v1248_v26  ;;  %v1674_v59 = vsel %vm4406_vm13, %v3565_v9, %v1673_v2  ;;  %v1675_v32 = vrot.slane %v1673_v2, 4  ;;  %v2144_v7 = vpop.permute.xlu1 %2143 }
 0x185   : > { %v2095_v62 = vunpack.c.l.b16 %v1806_v27  ;;  %v1244_v38 = vrot.slane %v1243_v57, 4  ;;  %v1979_v42 = vunpack.c.l.b16 %v1674_v59  ;;  %v1818_v40 = vshrl.u32 %v5044_v4, 16 }
 0x186   : > { %v1254_v5 = vrot.slane %v1253_v53, 4  ;;  %v1821_v60 = vshll.u32 %v5044_v4, 16  ;;  %v1677_v56 = vsel %vm4406_vm13, %v1675_v32, %v1676_v28  ;;  %v1827_v9 = vshll.u32 %v5050_v52, 16 }
 0x187   : > { %v5056_v25 = vpack.c.b16 %v2095_v62, %v2094_v55  ;;  %v1249_v23 = vsel %vm4413_vm14, %v1244_v38, %v1248_v26  ;;  %v1980_v57 = vunpack.c.l.b16 %v1677_v56  ;;  %v1820_v2 = vrot.slane %v1818_v40, 4 }
 0x188   : > { %3738 = vmatmul.msk.bf16.gmra.mxu3 %vm2205_vm15, %v4969_v1  ;;  %v1259_v20 = vsel %vm4413_vm14, %v1254_v5, %v1258_v50  ;;  %v1899_v29 = vunpack.c.l.b16 %v1249_v23  ;;  %v1823_v55 = vrot.slane %v1821_v60, 5  ;;  %v1829_v53 = vrot.slane %v1827_v9, 5  ;;  %v2179_v50 = vpop.permute.xlu2 %2178 }
 0x189   : > { %v1900_v27 = vunpack.c.l.b16 %v1259_v20  ;;  %v1831_v62 = vshrl.u32 %v5050_v52, 16  ;;  %v2349_v26 = vsel %vm2205_vm15, %v4581_v15, %v2109_v48  ;;  %v2011_v28 = vpack.c.b16 %v1980_v57, %v1979_v42 }
 0x18a   : > { %v1837_v38 = vshll.u32 %v5064_v16, 16  ;;  %v2392_v59 = vsel %vm480_vm0, %v2349_v26, %v2144_v7  ;;  %v1824_v8 = vor.u32 %v1823_v55, %v1820_v2  ;;  %v5093_v2 = vld [vmem:[#allocation2 + $0xc] sm:$0xff] }
 0x18b   : > { %v1931_v32 = vpack.c.b16 %v1900_v27, %v1899_v29  ;;  %v1833_v4 = vrot.slane %v1831_v62, 4  ;;  %2027 = vrot.lane.b32.xlu1 %v2011_v28, %s4114_s25  ;;  %v2428_v42 = vsel %vm2286_vm2, %v2392_v59, %v2179_v50  ;;  %v5106_v27 = vld [vmem:[#allocation2 + $0x18] sm:$0xff]  ;;  %v5128_v50 = vld [vmem:[#allocation2 + $0x30] sm:$0xff] }
 0x18c   : > { %2198 = vrot.lane.b32.xlu2 %v5056_v25, %s4115_s26  ;;  %v1825_v5 = vrot.slane %v1824_v8, 4  ;;  %v1839_v60 = vrot.slane %v1837_v38, 5  ;;  %v2111_v8 = vpop.permute.xlu0 %2110 }
 0x18d   : > { %1947 = vrot.lane.b32.xlu0 %v1931_v32, %s4113_s24  ;;  %v1834_v40 = vor.u32 %v1833_v4, %v1829_v53  ;;  %v2352_v12 = vsel %vm2205_vm15, %v4660_v13, %v2111_v8 }
 0x18e   : > { %v1830_v48 = vsel %vm4413_vm14, %v1825_v5, %v1829_v53 }
 0x18f   : > { %v1835_v23 = vrot.slane %v1834_v40, 4  ;;  %v2167_v56 = vunpack.c.l.b16 %v1830_v48 }
 0x190   : > { %2776 = vmatmul.bf16.gmra.mxu2 %v2428_v42  ;;  %v2181_v29 = vpop.permute.xlu2 %2180 }
 0x191   : > { %v1840_v9 = vsel %vm4413_vm14, %v1835_v23, %v1839_v60  ;;  %v2146_v4 = vpop.permute.xlu1 %2145 }
 0x192   : > { %v2168_v7 = vunpack.c.l.b16 %v1840_v9  ;;  %v2394_v57 = vsel %vm480_vm0, %v2352_v12, %v2146_v4  ;;  %v5152_v9 = vld [vmem:[#allocation2 + $0x48] sm:$0xff] }
 0x193   : > { %2029 = vrot.lane.b32.xlu1 %v4435_v49, %s4114_s25  ;;  %v2431_v49 = vsel %vm2286_vm2, %v2394_v57, %v2181_v29  ;;  %v5169_v29 = vld [vmem:[#allocation2 + $0x54] sm:$0xff] }
 0x194   : > { %v2169_v20 = vpack.c.b16 %v2168_v7, %v2167_v56 }
 0x195   : > { %1949 = vrot.lane.b32.xlu0 %v4440_v58, %s4113_s24 }
 0x196   : > { %2200 = vrot.lane.b32.xlu2 %v2169_v20, %s4115_s26  ;;  %v3849_v20 = vld [vmem:[%s5863_s3 + $0x30] sm:$0xff] }
 0x198   : > { %3739 = vmatmul.msk.bf16.gmra.mxu3 %vm2205_vm15, %v4991_v36 }
 0x19b   : > { %2031 = vrot.lane.b32.xlu1 %v4467_v3, %s4114_s25  ;;  %v2113_v55 = vpop.permute.xlu0 %2112 }
 0x19c   : > { %v2355_v53 = vsel %vm2205_vm15, %v4746_v6, %v2113_v55 }
 0x19d   : > { %1951 = vrot.lane.b32.xlu0 %v4459_v51, %s4113_s24  ;;  %v2183_v58 = vpop.permute.xlu2 %2182 }
 0x19e   : > { %2062 = vrot.lane.b32.xlu2 %v5093_v2, %s4115_s26 }
 0x1a0   : > { %2781 = vmatmul.bf16.gmra.mxu2 %v2431_v49  ;;  %v2148_v51 = vpop.permute.xlu1 %2147  ;;  %v3848_v49 = vld [vmem:[%s5863_s3 + $0x28] sm:$0xff] }
 0x1a1   : > { %v2396_v26 = vsel %vm480_vm0, %v2355_v53, %v2148_v51  ;;  %v5188_v53 = vld [vmem:[#allocation2 + $0x60] sm:$0xff] }
 0x1a2   : > { %v2434_v28 = vsel %vm2286_vm2, %v2396_v26, %v2183_v58 }
 0x1a3   : > { %2033 = vrot.lane.b32.xlu1 %v4483_v39, %s4114_s25 }
 0x1a5   : > { %1953 = vrot.lane.b32.xlu0 %v4492_v0, %s4113_s24  ;;  %v5119_v0 = vld [vmem:[#allocation2 + $0x24] sm:$0xff] }
 0x1a6   : > { %2064 = vrot.lane.b32.xlu2 %v5106_v27, %s4115_s26 }
 0x1a8   : > { %3740 = vmatmul.msk.bf16.gmra.mxu3 %vm2205_vm15, %v5018_v34 }
 0x1aa   : > { %v2115_v38 = vpop.permute.xlu0 %2114 }
 0x1ab   : > { %v2185_v62 = vpop.permute.xlu2 %2184  ;;  %2035 = vrot.lane.b32.xlu1 %v4514_v43, %s4114_s25  ;;  %v2358_v5 = vsel %vm2205_vm15, %v4802_v46, %v2115_v38 }
 0x1ad   : > { %1955 = vrot.lane.b32.xlu0 %v4534_v30, %s4113_s24 }
 0x1ae   : > { %2066 = vrot.lane.b32.xlu2 %v5119_v0, %s4115_s26 }
 0x1b0   : > { %2786 = vmatmul.bf16.gmra.mxu2 %v2434_v28  ;;  %v2150_v59 = vpop.permute.xlu1 %2149 }
 0x1b1   : > { %v2398_v60 = vsel %vm480_vm0, %v2358_v5, %v2150_v59 }
 0x1b3   : > { %v2187_v32 = vpop.permute.xlu2 %2186  ;;  %2037 = vrot.lane.b32.xlu1 %v4556_v19, %s4114_s25 }
 0x1b5   : > { %1957 = vrot.lane.b32.xlu0 %v4581_v15, %s4113_s24  ;;  %v5141_v15 = vld [vmem:[#allocation2 + $0x3c] sm:$0xff] }
 0x1b6   : > { %2068 = vrot.lane.b32.xlu2 %v5128_v50, %s4115_s26 }
 0x1b8   : > { %3741 = vmatmul.msk.bf16.gmra.mxu3 %vm2205_vm15, %v5035_v47  ;;  %v2152_v40 = vpop.permute.xlu1 %2151  ;;  %v2437_v47 = vsel %vm2286_vm2, %v2398_v60, %v2185_v62  ;;  %v3846_v62 = vld [vmem:[%s5863_s3 + $0x18] sm:$0xff] }
 0x1ba   : > { %v2117_v30 = vpop.permute.xlu0 %2116 }
 0x1bb   : > { %v2189_v42 = vpop.permute.xlu2 %2188  ;;  %2039 = vrot.lane.b32.xlu1 %v4608_v44, %s4114_s25  ;;  %v2361_v7 = vsel %vm2205_vm15, %v4856_v22, %v2117_v30  ;;  %v5211_v30 = vld [vmem:[#allocation2 + $0x6c] sm:$0xff] }
 0x1bd   : > { %1959 = vrot.lane.b32.xlu0 %v4660_v13, %s4113_s24  ;;  %v3850_v13 = vld [vmem:[%s5863_s3 + $0x38] sm:$0xff] }
 0x1be   : > { %2070 = vrot.lane.b32.xlu2 %v5141_v15, %s4115_s26  ;;  %2659 = vmatpush.bf16.msrb.mxu1 %v3850_v13 }
 0x1c0   : > { %2791 = vmatmul.bf16.gmra.mxu2 %v2437_v47  ;;  %v2154_v23 = vpop.permute.xlu1 %2153 }
 0x1c2   : > { %v2119_v48 = vpop.permute.xlu0 %2118  ;;  %2660 = vmatpush.bf16.msrb.mxu1 %v3849_v20 }
 0x1c3   : > { %2041 = vrot.lane.b32.xlu1 %v4684_v35, %s4114_s25  ;;  %v2364_v26 = vsel %vm2205_vm15, %v4890_v11, %v2119_v48 }
 0x1c4   : > { %v2402_v38 = vsel %vm480_vm0, %v2364_v26, %v2154_v23 }
 0x1c5   : > { %v5148_v56 = vpop.permute.xlu2 %2190  ;;  %1961 = vrot.lane.b32.xlu0 %v4746_v6, %s4113_s24  ;;  %v2400_v6 = vsel %vm480_vm0, %v2361_v7, %v2152_v40  ;;  %v2443_v5 = vsel %vm2286_vm2, %v2402_v38, %v2189_v42  ;;  %v3844_v40 = vld [vmem:[%s5863_s3 + $0x8] sm:$0xff] }
 0x1c6   : > { %2072 = vrot.lane.b32.xlu2 %v5152_v9, %s4115_s26  ;;  %v2440_v57 = vsel %vm2286_vm2, %v2400_v6, %v2187_v32  ;;  %2661 = vmatpush.bf16.msrb.mxu1 %v3848_v49 }
 0x1c8   : > { %v2156_v4 = vpop.permute.xlu1 %2155 }
 0x1ca   : > { %v2121_v8 = vpop.permute.xlu0 %2120 }
 0x1cb   : > { %2043 = vrot.lane.b32.xlu1 %v4771_v31, %s4114_s25  ;;  %v2367_v42 = vsel %vm2205_vm15, %v4939_v33, %v2121_v8 }
 0x1cc   : > { %v2404_v13 = vsel %vm480_vm0, %v2367_v42, %v2156_v4 }
 0x1cd   : > { %1963 = vrot.lane.b32.xlu0 %v4802_v46, %s4113_s24  ;;  %v3847_v46 = vld [vmem:[%s5863_s3 + $0x20] sm:$0xff] }
 0x1ce   : > { %2074 = vrot.lane.b32.xlu2 %v5169_v29, %s4115_s26  ;;  %v5173_v12 = vpop.permute.xlu2 %2192  ;;  %2662 = vmatpush.bf16.msrb.mxu1 %v3847_v46 }
 0x1d0   : > { %2796 = vmatmul.bf16.gmra.mxu2 %v2440_v57  ;;  %v2158_v55 = vpop.permute.xlu1 %2157 }
 0x1d2   : > { %v2123_v58 = vpop.permute.xlu0 %2122  ;;  %2663 = vmatpush.bf16.msrb.mxu1 %v3846_v62 }
 0x1d3   : > { %v5182_v51 = vpop.f32.mrf.mxu2  ;;  %2045 = vrot.lane.b32.xlu1 %v4822_v21, %s4114_s25  ;;  %v3845_v21 = vld [vmem:[%s5863_s3 + $0x10] sm:$0xff]  ;;  %v2370_v57 = vsel %vm2205_vm15, %v4974_v18, %v2123_v58 }
 0x1d5   : > { %1965 = vrot.lane.b32.xlu0 %v4856_v22, %s4113_s24 }
 0x1d6   : > { %2076 = vrot.lane.b32.xlu2 %v5188_v53, %s4115_s26  ;;  %v5197_v28 = vpop.permute.xlu2 %2194  ;;  %2664 = vmatpush.bf16.msrb.mxu1 %v3845_v21 }
 0x1d8   : > { %v5202_v22 = vpop.permute.xlu1 %2159 }
 0x1da   : > { %2665 = vmatpush.bf16.msrb.mxu1 %v3844_v40 }
 0x1db   : > { %v2125_v59 = vpop.permute.xlu0 %2124  ;;  %v5205_v32 = vpop.f32.mrf.mxu2  ;;  %2047 = vrot.lane.b32.xlu1 %v4841_v24, %s4114_s25  ;;  %v3843_v24 = vld [vmem:[%s5863_s3] sm:$0xff] }
 0x1dd   : > { %1967 = vrot.lane.b32.xlu0 %v4890_v11, %s4113_s24 }
 0x1de   : > { %2078 = vrot.lane.b32.xlu2 %v5211_v30, %s4115_s26  ;;  %v5222_v60 = vpop.permute.xlu2 %2196  ;;  %2666 = vmatpush.bf16.msrb.mxu1 %v3843_v24 }
 0x1e0   : > { %2801 = vmatmul.bf16.gmra.mxu2 %v2443_v5  ;;  %v5224_v11 = vpop.permute.xlu1 %2161 }
 0x1e3   : > { %v5226_v47 = vpop.permute.xlu0 %2126  ;;  %v5228_v48 = vpop.f32.mrf.mxu2  ;;  %2049 = vrot.lane.b32.xlu1 %v4879_v45, %s4114_s25 }
 0x1e5   : > { %1969 = vrot.lane.b32.xlu0 %v4939_v33, %s4113_s24 }
 0x1e6   : > { %2080 = vrot.lane.b32.xlu2 %v4820_v17, %s4115_s26  ;;  %v5243_v20 = vpop.permute.xlu2 %2198  ;;  %v2446_v17 = vsel %vm2286_vm2, %v2404_v13, %v5148_v56 }
 0x1e8   : > { %v5238_v23 = vpop.permute.xlu1 %2163 }
 0x1eb   : > { %v5241_v7 = vpop.f32.mrf.mxu2  ;;  %2051 = vrot.lane.b32.xlu1 %v4934_v37, %s4114_s25  ;;  %v5247_v45 = vpop.permute.xlu0 %2128 }
 0x1ed   : > { %1971 = vrot.lane.b32.xlu0 %v4974_v18, %s4113_s24 }
 0x1ee   : > { %2082 = vrot.lane.b32.xlu2 %v4851_v63, %s4115_s26 }
 0x1f0   : > { %2806 = vmatmul.bf16.gmra.mxu2 %v2446_v17  ;;  %v2166_v33 = vpop.permute.xlu1 %2165  ;;  %v2201_v6 = vpop.permute.xlu2 %2200  ;;  %v5895_v17 = vld [vmem:[#allocation9_spill] sm:$0xff] }
 0x1f3   : > { %v5255_v8 = vpop.f32.mrf.mxu2  ;;  %2053 = vrot.lane.b32.xlu1 %v4969_v1, %s4114_s25  ;;  %v2131_v4 = vpop.permute.xlu0 %2130  ;;  %v2406_v1 = vsel %vm480_vm0, %v2370_v57, %v2158_v55 }
 0x1f4   : > { %v2382_v37 = vsel %vm2205_vm15, %v5056_v25, %v2131_v4  ;;  %v3825_v25 = vld [vmem:[#allocation2] sm:$0xff]  ;;  %v2449_v46 = vsel %vm2286_vm2, %v2406_v1, %v5173_v12  ;;  %v2373_v12 = vsel %vm2205_vm15, %v4999_v41, %v2125_v59 }
 0x1f5   : > { %1973 = vrot.lane.b32.xlu0 %v4999_v41, %s4113_s24  ;;  %v2414_v63 = vsel %vm480_vm0, %v2382_v37, %v2166_v33  ;;  %v2408_v38 = vsel %vm480_vm0, %v2373_v12, %v5202_v22  ;;  %v3866_v12 = vld [vmem:[%s5867_s7 + $0x18] sm:$0xff] }
 0x1f6   : > { %2084 = vrot.lane.b32.xlu2 %v4892_v10, %s4115_s26  ;;  %v5267_v56 = vsel %vm2286_vm2, %v2414_v63, %v2201_v6  ;;  %v2452_v42 = vsel %vm2286_vm2, %v2408_v38, %v5197_v28  ;;  %3171 = vmatpush.bf16.msrb.mxu0 %v3866_v12 }
 0x1f8   : > { %v2063_v58 = vpop.permute.xlu2 %2062 }
 0x1fb   : > { %v5272_v49 = vpop.f32.mrf.mxu2  ;;  %2055 = vrot.lane.b32.xlu1 %v4991_v36, %s4114_s25 }
 0x1fd   : > { %1975 = vrot.lane.b32.xlu0 %v5016_v61, %s4113_s24  ;;  %v2028_v10 = vpop.permute.xlu1 %2027 }
 0x1fe   : > { %2086 = vrot.lane.b32.xlu2 %v4926_v14, %s4115_s26  ;;  %v5893_v14 = vld [vmem:[#allocation7_spill] sm:$0xff] }
 0x1ff   : > { %v1948_v62 = vpop.permute.xlu0 %1947 }
 0x200   : > { %2811 = vmatmul.bf16.gmra.mxu2 %v2449_v46  ;;  %v2208_v18 = vsel %vm2205_vm15, %v3825_v25, %v1948_v62  ;;  %v2065_v41 = vpop.permute.xlu2 %2064 }
 0x201   : > { %v2255_v55 = vsel %vm480_vm0, %v2208_v18, %v2028_v10 }
 0x202   : > { %v2288_v36 = vsel %vm2286_vm2, %v2255_v55, %v2063_v58 }
 0x203   : > { %2667 = vmatmul.bf16.vlgmr.msrb.gmra.mxu1 %v2288_v36  ;;  %v5285_v26 = vpop.f32.mrf.mxu2  ;;  %2057 = vrot.lane.b32.xlu1 %v5018_v34, %s4114_s25  ;;  %v5894_v34 = vld [vmem:[#allocation8_spill] sm:$0xff] }
 0x205   : > { %1977 = vrot.lane.b32.xlu0 %v5037_v54, %s4113_s24  ;;  %v2030_v24 = vpop.permute.xlu1 %2029  ;;  %s5689_s24 = scalar_lea.vmem [#allocation3], %s3466_s17 }
 0x206   : > { %2088 = vrot.lane.b32.xlu2 %v5893_v14, %s4115_s26  ;;  %s3397_s27 = sshll.u32 %s5689_s24, 4  ;;  %s3398_s27 = int_to_ptr.vmem [resolvable:$true] %s3397_s27 }
 0x207   : > { %v1950_v21 = vpop.permute.xlu0 %1949 }
 0x208   : > { %v2211_v40 = vsel %vm2205_vm15, %v5093_v2, %v1950_v21  ;;  %v2376_v2 = vsel %vm2205_vm15, %v5016_v61, %v5226_v47  ;;  %v2067_v1 = vpop.permute.xlu2 %2066 }
 0x209   : > { %v2257_v13 = vsel %vm480_vm0, %v2211_v40, %v2030_v24  ;;  %v2410_v28 = vsel %vm480_vm0, %v2376_v2, %v5224_v11  ;;  %v2379_v11 = vsel %vm2205_vm15, %v5037_v54, %v5247_v45 }
 0x20a   : > { %v2291_v59 = vsel %vm2286_vm2, %v2257_v13, %v2065_v41  ;;  %v2455_v63 = vsel %vm2286_vm2, %v2410_v28, %v5222_v60 }
 0x20b   : > { %v5297_v5 = vpop.f32.mrf.mxu2 }
 0x20d   : > { %v2032_v6 = vpop.permute.xlu1 %2031 }
 0x20e   : > { %2090 = vrot.lane.b32.xlu2 %v5894_v34, %s4115_s26 }
 0x20f   : > { %v1952_v33 = vpop.permute.xlu0 %1951 }
 0x210   : > { %2816 = vmatmul.bf16.gmra.mxu2 %v2452_v42  ;;  %v2214_v37 = vsel %vm2205_vm15, %v5106_v27, %v1952_v33  ;;  %v2412_v27 = vsel %vm480_vm0, %v2379_v11, %v5238_v23  ;;  %v2069_v58 = vpop.permute.xlu2 %2068  ;;  %v3862_v23 = vld [vmem:[%s5865_s5 + $0x8] sm:$0xff] }
 0x211   : > { %v2259_v57 = vsel %vm480_vm0, %v2214_v37, %v2032_v6  ;;  %v2458_v62 = vsel %vm2286_vm2, %v2412_v27, %v5243_v20  ;;  %3048 = vmatpush.bf16.msrb.mxu3 %v3862_v23 }
 0x212   : > { %v2294_v25 = vsel %vm2286_vm2, %v2259_v57, %v2067_v1 }
 0x213   : > { %2672 = vmatmul.bf16.gmra.mxu1 %v2291_v59  ;;  %v5307_v22 = vpop.f32.mrf.mxu2 }
 0x215   : > { %v2034_v46 = vpop.permute.xlu1 %2033 }
 0x216   : > { %2092 = vrot.lane.b32.xlu2 %v5895_v17, %s4115_s26  ;;  %s4068_s26 = scalar_lea.hbm %s5869_s9, 512 }
 0x217   : > { %v1954_v47 = vpop.permute.xlu0 %1953 }
 0x218   : > { %v2217_v60 = vsel %vm2205_vm15, %v5119_v0, %v1954_v47  ;;  %v2071_v21 = vpop.permute.xlu2 %2070 }
 0x219   : > { %v2261_v18 = vsel %vm480_vm0, %v2217_v60, %v2034_v46  ;;  %v3861_v46 = vld [vmem:[%s5865_s5] sm:$0xff] }
 0x21a   : > { %v2297_v55 = vsel %vm2286_vm2, %v2261_v18, %v2069_v58  ;;  %3049 = vmatpush.bf16.msrb.mxu3 %v3861_v46 }
 0x21b   : > { %v5316_v4 = vpop.f32.mrf.mxu2 }
 0x21d   : > { %v2036_v36 = vpop.permute.xlu1 %2035 }
 0x21f   : > { %v1956_v45 = vpop.permute.xlu0 %1955 }
 0x220   : > { %2821 = vmatmul.bf16.gmra.mxu2 %v2455_v63  ;;  %v2220_v20 = vsel %vm2205_vm15, %v5128_v50, %v1956_v45  ;;  %v2073_v13 = vpop.permute.xlu2 %2072 }
 0x221   : > { %v2263_v14 = vsel %vm480_vm0, %v2220_v20, %v2036_v36  ;;  %v3864_v20 = vld [vmem:[%s5867_s7 + $0x8] sm:$0xff] }
 0x222   : > { %v2300_v38 = vsel %vm2286_vm2, %v2263_v14, %v2071_v21 }
 0x223   : > { %2677 = vmatmul.bf16.gmra.mxu1 %v2294_v25  ;;  %v5324_v61 = vpop.f32.mrf.mxu2 }
 0x225   : > { %v2038_v42 = vpop.permute.xlu1 %2037 }
 0x227   : > { %v1958_v24 = vpop.permute.xlu0 %1957 }
 0x228   : > { %v2223_v50 = vsel %vm2205_vm15, %v5141_v15, %v1958_v24  ;;  %v2075_v37 = vpop.permute.xlu2 %2074 }
 0x22b   : > { %v5331_v10 = vpop.f32.mrf.mxu2 }
 0x22d   : > { %v2040_v28 = vpop.permute.xlu1 %2039 }
 0x22f   : > { %v1960_v17 = vpop.permute.xlu0 %1959 }
 0x230   : > { %2826 = vmatmul.bf16.gmra.mxu2 %v2458_v62  ;;  %v2226_v33 = vsel %vm2205_vm15, %v5152_v9, %v1960_v17  ;;  %v2077_v11 = vpop.permute.xlu2 %2076 }
 0x231   : > { %v2267_v15 = vsel %vm480_vm0, %v2226_v33, %v2040_v28 }
 0x232   : > { %v2306_v6 = vsel %vm2286_vm2, %v2267_v15, %v2075_v37 }
 0x233   : > { %2682 = vmatmul.bf16.gmra.mxu1 %v2297_v55  ;;  %v5339_v54 = vpop.f32.mrf.mxu2 }
 0x235   : > { %v2042_v25 = vpop.permute.xlu1 %2041 }
 0x237   : > { %v1962_v57 = vpop.permute.xlu0 %1961 }
 0x238   : > { %v2229_v9 = vsel %vm2205_vm15, %v5169_v29, %v1962_v57  ;;  %v2079_v55 = vpop.permute.xlu2 %2078 }
 0x23b   : > { %v5344_v0 = vpop.f32.mrf.mxu2 }
 0x23d   : > { %v2044_v18 = vpop.permute.xlu1 %2043 }
 0x23f   : > { %v1964_v60 = vpop.permute.xlu0 %1963 }
 0x240   : > { %2831 = vmatmul.bf16.gmra.mxu2 %v5267_v56  ;;  %v2265_v56 = vsel %vm480_vm0, %v2223_v50, %v2038_v42  ;;  %v2232_v29 = vsel %vm2205_vm15, %v5188_v53, %v1964_v60  ;;  %v2081_v24 = vpop.permute.xlu2 %2080 }
 0x241   : > { %v2303_v41 = vsel %vm2286_vm2, %v2265_v56, %v2073_v13 }
 0x243   : > { %2687 = vmatmul.bf16.gmra.mxu1 %v2300_v38  ;;  %v5354_v40 = vpop.f32.mrf.mxu2 }
 0x245   : > { %v2046_v12 = vpop.permute.xlu1 %2045 }
 0x247   : > { %v1966_v36 = vpop.permute.xlu0 %1965 }
 0x248   : > { %v2083_v15 = vpop.permute.xlu2 %2082 }
 0x24b   : > { %v5356_v34 = vpop.f32.mrf.mxu2 }
 0x24d   : > { %v2048_v33 = vpop.permute.xlu1 %2047 }
 0x24f   : > { %v1968_v13 = vpop.permute.xlu0 %1967 }
 0x250   : > { %3727 = vmatmul.msk.bf16.vlgmr.msrb.gmra.mxu2 %vm2205_vm15, %v4467_v3  ;;  %v3865_v3 = vld [vmem:[%s5867_s7 + $0x10] sm:$0xff] }
 0x251   : > { %3172 = vmatpush.bf16.msrb.mxu0 %v3865_v3 }
 0x253   : > { %2692 = vmatmul.bf16.gmra.mxu1 %v2303_v41  ;;  %v5364_v59 = vpop.f32.mrf.mxu2 }
 0x255   : > { %3173 = vmatpush.bf16.msrb.mxu0 %v3864_v20 }
 0x257   : > { %v1970_v57 = vpop.permute.xlu0 %1969 }
 0x25b   : > { %v5366_v2 = vpop.f32.mrf.mxu2 }
 0x260   : > { %3728 = vmatmul.msk.bf16.gmra.mxu2 %vm2205_vm15, %v4483_v39  ;;  %v2269_v39 = vsel %vm480_vm0, %v2229_v9, %v2042_v25  ;;  %v3863_v9 = vld [vmem:[%s5867_s7] sm:$0xff]  ;;  %v5896_v25 = vld [vmem:[#allocation10_spill] sm:$0xff] }
 0x261   : > { %v2309_v47 = vsel %vm2286_vm2, %v2269_v39, %v2077_v11  ;;  %v3582_v39 = vrot.slane %v5896_v25, 9  ;;  %v1849_v11 = vrot.slane %v5064_v16, 5  ;;  %3174 = vmatpush.bf16.msrb.mxu0 %v3863_v9 }
 0x263   : > { %2697 = vmatmul.bf16.gmra.mxu1 %v2306_v6  ;;  %v5377_v63 = vpop.f32.mrf.mxu2 }
 0x26b   : > { %v5379_v1 = vpop.f32.mrf.mxu2 }
 0x270   : > { %3729 = vmatmul.msk.bf16.gmra.mxu2 %vm2205_vm15, %v4514_v43  ;;  %v2271_v43 = vsel %vm480_vm0, %v2232_v29, %v2044_v18  ;;  %v4027_v18 = vld [vmem:[#allocation2 + $0x84] sm:$0xff] }
 0x271   : > { %v2312_v23 = vsel %vm2286_vm2, %v2271_v43, %v2079_v55  ;;  %v2241_v43 = vsel %vm2205_vm15, %v4027_v18, %v1970_v57  ;;  %v2050_v55 = vpop.permute.xlu1 %2049 }
 0x273   : > { %2702 = vmatmul.bf16.gmra.mxu1 %v2309_v47  ;;  %v5387_v27 = vpop.f32.mrf.mxu2 }
 0x27b   : > { %v5392_v62 = vpop.f32.mrf.mxu2 }
 0x280   : > { %3730 = vmatmul.msk.bf16.gmra.mxu2 %vm2205_vm15, %v4556_v19  ;;  %v5399_v58 = vpop.f32.mrf.mxu1  ;;  %v2235_v19 = vsel %vm2205_vm15, %v5211_v30, %v1966_v36  ;;  %v4026_v30 = vld [vmem:[#allocation2 + $0x78] sm:$0xff] }
 0x281   : > { %v2273_v21 = vsel %vm480_vm0, %v2235_v19, %v2046_v12  ;;  %v2238_v17 = vsel %vm2205_vm15, %v4026_v30, %v1968_v13  ;;  %v4028_v19 = vld [vmem:[%s4232_s21] sm:$0xff]  ;;  %v5460_v13 = vpop.f32.mrf.mxu3 }
 0x282   : > { %v2315_v50 = vsel %vm2286_vm2, %v2273_v21, %v2081_v24  ;;  %v2275_v28 = vsel %vm480_vm0, %v2238_v17, %v2048_v33  ;;  %3783 = vmatmul.msk.bf16.vlgmr.msrb.gmra.mxu0 %vm480_vm0, %v4028_v19  ;;  %v2085_v21 = vpop.permute.xlu2 %2084  ;;  %v1972_v17 = vpop.permute.xlu0 %1971  ;;  %v5490_v19 = vld [vmem:[%s5864_s4] ss:$0 sm:$0xff] }
 0x283   : > { %2707 = vmatmul.bf16.gmra.mxu1 %v2312_v23  ;;  %v5402_v45 = vpop.f32.mrf.mxu2  ;;  %v2318_v37 = vsel %vm2286_vm2, %v2275_v28, %v2083_v15  ;;  %v4029_v28 = vld [vmem:[#allocation2 + $0x90] sm:$0xff]  ;;  %v2052_v15 = vpop.permute.xlu1 %2051 }
 0x288   : > { %v5407_v53 = vpop.f32.mrf.mxu1 }
 0x289   : > { %v5469_v57 = vpop.f32.mrf.mxu3 }
 0x28b   : > { %v5409_v14 = vpop.f32.mrf.mxu2 }
 0x290   : > { %3731 = vmatmul.msk.bf16.gmra.mxu2 %vm2205_vm15, %v4608_v44  ;;  %v5416_v38 = vpop.f32.mrf.mxu1 }
 0x293   : > { %2712 = vmatmul.bf16.gmra.mxu1 %v2315_v50  ;;  %v5419_v42 = vpop.f32.mrf.mxu2 }
 0x298   : > { %v5421_v56 = vpop.f32.mrf.mxu1 }
 0x29b   : > { %v5423_v41 = vpop.f32.mrf.mxu2 }
 0x2a0   : > { %3732 = vmatmul.msk.bf16.gmra.mxu2 %vm2205_vm15, %v4684_v35  ;;  %v5429_v44 = vpop.f32.mrf.mxu1  ;;  %v1846_v35 = vrot.slane %v5050_v52, 5  ;;  %v2277_v52 = vsel %vm480_vm0, %v2241_v43, %v2050_v55  ;;  %v4031_v43 = vld [vmem:[#allocation2 + $0x9c] sm:$0xff] }
 0x2a1   : > { %v2321_v24 = vsel %vm2286_vm2, %v2277_v52, %v2085_v21 }
 0x2a2   : > { %v1847_v46 = vsel %vm4406_vm13, %v3582_v39, %v1846_v35  ;;  %v1848_v29 = vrot.slane %v1846_v35, 4  ;;  %v2087_v39 = vpop.permute.xlu2 %2086 }
 0x2a3   : > { %2717 = vmatmul.bf16.gmra.mxu1 %v2318_v37  ;;  %v5432_v3 = vpop.f32.mrf.mxu2  ;;  %v2202_v23 = vunpack.c.l.b16 %v1847_v46  ;;  %v4030_v37 = vld [vmem:[%s4232_s21 + $0x8] sm:$0xff]  ;;  %v5479_v46 = vpop.f32.mrf.mxu3 }
 0x2a4   : > { %v1850_v20 = vsel %vm4406_vm13, %v1848_v29, %v1849_v11  ;;  %3784 = vmatmul.msk.bf16.gmra.mxu0 %vm480_vm0, %v4030_v37  ;;  %v1974_v29 = vpop.permute.xlu0 %1973 }
 0x2a5   : > { %v2203_v36 = vunpack.c.l.b16 %v1850_v20  ;;  %v2247_v55 = vsel %vm2205_vm15, %v4031_v43, %v1974_v29  ;;  %v4032_v20 = vld [vmem:[%s4232_s21 + $0x10] sm:$0xff]  ;;  %v4033_v43 = vld [vmem:[#allocation2 + $0xa8] sm:$0xff] }
 0x2a7   : > { %v2204_v12 = vpack.c.b16 %v2203_v36, %v2202_v23  ;;  %v2054_v23 = vpop.permute.xlu1 %2053 }
 0x2a8   : > { %v5434_v6 = vpop.f32.mrf.mxu1  ;;  %v2281_v36 = vsel %vm480_vm0, %v2247_v55, %v2054_v23 }
 0x2a9   : > { %3742 = vmatmul.msk.bf16.gmra.mxu3 %vm2205_vm15, %v2204_v12 }
 0x2aa   : > { %v2089_v12 = vpop.permute.xlu2 %2088 }
 0x2ab   : > { %v5442_v47 = vpop.f32.mrf.mxu2  ;;  %v2327_v21 = vsel %vm2286_vm2, %v2281_v36, %v2089_v12 }
 0x2af   : > { %v2056_v23 = vpop.permute.xlu1 %2055 }
 0x2b0   : > { %3733 = vmatmul.msk.bf16.gmra.mxu2 %vm2205_vm15, %v4771_v31  ;;  %v5454_v16 = vpop.f32.mrf.mxu1  ;;  %v2244_v31 = vsel %vm2205_vm15, %v4029_v28, %v1972_v17  ;;  %v2669_v28 = vadd.f32 %v5490_v19, %v5399_v58 }
 0x2b1   : > { %v2279_v9 = vsel %vm480_vm0, %v2244_v31, %v2052_v15  ;;  %v2671_v31 = vadd.f32 %v5490_v19, %v5407_v53 }
 0x2b2   : > { %v2324_v35 = vsel %vm2286_vm2, %v2279_v9, %v2087_v39  ;;  %v2758_v37 = vadd.f32 %v5182_v51, %v2669_v28  ;;  %v1976_v9 = vpop.permute.xlu0 %1975  ;;  %v2091_v28 = vpop.permute.xlu2 %2090 }
 0x2b3   : > { %2722 = vmatmul.bf16.gmra.mxu1 %v2321_v24  ;;  %v5458_v50 = vpop.f32.mrf.mxu2  ;;  %v5495_v24 = vpop.f32.mrf.mxu3  ;;  %v2250_v55 = vsel %vm2205_vm15, %v4033_v43, %v1976_v9  ;;  %v2676_v9 = vadd.f32 %v5490_v19, %v5421_v56 }
 0x2b4   : > { %3785 = vmatmul.msk.bf16.gmra.mxu0 %vm480_vm0, %v4032_v20  ;;  %v2283_v53 = vsel %vm480_vm0, %v2250_v55, %v2056_v23 }
 0x2b5   : > { %v2765_v23 = vadd.f32 %v5241_v7, %v2676_v9 }
 0x2b8   : > { %v5462_v30 = vpop.f32.mrf.mxu1 }
 0x2ba   : > { %v1978_v43 = vpop.permute.xlu0 %1977 }
 0x2bb   : > { %v5464_v33 = vpop.f32.mrf.mxu2  ;;  %v5506_v36 = vpop.f32.mrf.mxu3 }
 0x2c0   : > { %v5472_v25 = vpop.f32.mrf.mxu1 }
 0x2c3   : > { %2727 = vmatmul.bf16.gmra.mxu1 %v2324_v35  ;;  %v5475_v11 = vpop.f32.mrf.mxu2  ;;  %v2760_v35 = vadd.f32 %v5205_v32, %v2671_v31  ;;  %v2330_v32 = vsel %vm2286_vm2, %v2283_v53, %v2091_v28  ;;  %v4036_v28 = vld [vmem:[%s4232_s21 + $0x20] sm:$0xff] }
 0x2c8   : > { %v5477_v60 = vpop.f32.mrf.mxu1 }
 0x2cb   : > { %v5481_v18 = vpop.f32.mrf.mxu2 }
 0x2d0   : > { %v5492_v52 = vpop.f32.mrf.mxu1 }
 0x2d3   : > { %2732 = vmatmul.bf16.gmra.mxu1 %v2327_v21  ;;  %v2846_v17 = vpop.f32.mrf.mxu2  ;;  %v4034_v21 = vld [vmem:[%s4232_s21 + $0x18] sm:$0xff] }
 0x2d4   : > { %v2847_v39 = vadd.f32 %v2846_v17, %v2758_v37  ;;  %3786 = vmatmul.msk.bf16.gmra.mxu0 %vm480_vm0, %v4034_v21  ;;  %v2674_v37 = vadd.f32 %v5490_v19, %v5416_v38  ;;  %v2058_v21 = vpop.permute.xlu1 %2057 }
 0x2d6   : > { %v2926_v58 = vmax.f32 %v2847_v39, 0.0  ;;  %v5519_v39 = vpop.f32.mrf.mxu3 }
 0x2d8   : > { %v5501_v15 = vpop.f32.mrf.mxu1 }
 0x2db   : > { %v2848_v29 = vpop.f32.mrf.mxu2 }
 0x2dc   : > { %v2849_v20 = vadd.f32 %v2848_v29, %v2760_v35  ;;  %v2763_v29 = vadd.f32 %v5228_v48, %v2674_v37 }
 0x2de   : > { %v2927_v12 = vmax.f32 %v2849_v20, 0.0  ;;  %v5531_v37 = vpop.f32.mrf.mxu3 }
 0x2e0   : > { %v5511_v51 = vpop.f32.mrf.mxu1  ;;  %v2958_v17 = vpack.c.bf16 %v2927_v12, %v2926_v58  ;;  %v4035_v58 = vld [vmem:[#allocation2 + $0xb4] sm:$0xff] }
 0x2e1   : > { %v2253_v12 = vsel %vm2205_vm15, %v4035_v58, %v1978_v43  ;;  %v2681_v43 = vadd.f32 %v5490_v19, %v5434_v6 }
 0x2e2   : > { %3751 = vmatmul.msk.bf16.vlgmr.msrb.gmra.mxu3 %vm2205_vm15, %v2958_v17  ;;  %v2285_v56 = vsel %vm480_vm0, %v2253_v12, %v2058_v21 }
 0x2e3   : > { %2737 = vmatmul.bf16.gmra.mxu1 %v2330_v32  ;;  %v2851_v31 = vpop.f32.mrf.mxu2  ;;  %v2770_v58 = vadd.f32 %v5272_v49, %v2681_v43 }
 0x2e4   : > { %v2852_v55 = vadd.f32 %v2851_v31, %v2763_v29  ;;  %3787 = vmatmul.msk.bf16.gmra.mxu0 %vm480_vm0, %v4036_v28  ;;  %v2093_v31 = vpop.permute.xlu2 %2092  ;;  %v2679_v29 = vadd.f32 %v5490_v19, %v5429_v44  ;;  %v4037_v28 = vld [vmem:[%s4232_s21 + $0x28] sm:$0xff] }
 0x2e5   : > { %v2333_v7 = vsel %vm2286_vm2, %v2285_v56, %v2093_v31 }
 0x2e6   : > { %v2928_v38 = vmax.f32 %v2852_v55, 0.0  ;;  %v5543_v12 = vpop.f32.mrf.mxu3 }
 0x2e8   : > { %v5521_v35 = vpop.f32.mrf.mxu1 }
 0x2eb   : > { %v2853_v20 = vpop.f32.mrf.mxu2 }
 0x2ec   : > { %v2854_v53 = vadd.f32 %v2853_v20, %v2765_v23  ;;  %v2768_v23 = vadd.f32 %v5255_v8, %v2679_v29  ;;  %v2684_v8 = vadd.f32 %v5490_v19, %v5454_v16 }
 0x2ee   : > { %v2929_v17 = vmax.f32 %v2854_v53, 0.0  ;;  %v5552_v49 = vpop.f32.mrf.mxu3 }
 0x2f0   : > { %v5529_v32 = vpop.f32.mrf.mxu1  ;;  %v2959_v48 = vpack.c.bf16 %v2929_v17, %v2928_v38 }
 0x2f2   : > { %3752 = vmatmul.msk.bf16.gmra.mxu3 %vm2205_vm15, %v2959_v48  ;;  %v2686_v48 = vadd.f32 %v5490_v19, %v5462_v30 }
 0x2f3   : > { %2742 = vmatmul.bf16.gmra.mxu1 %v2333_v7  ;;  %v2856_v9 = vpop.f32.mrf.mxu2  ;;  %v2773_v7 = vadd.f32 %v5285_v26, %v2684_v8  ;;  %v2689_v26 = vadd.f32 %v5490_v19, %v5472_v25 }
 0x2f4   : > { %v2857_v20 = vadd.f32 %v2856_v9, %v2768_v23  ;;  %3788 = vmatmul.msk.bf16.gmra.mxu0 %vm480_vm0, %v4037_v28  ;;  %v2775_v29 = vadd.f32 %v5297_v5, %v2686_v48  ;;  %v2691_v5 = vadd.f32 %v5490_v19, %v5477_v60 }
 0x2f5   : > { %v2778_v28 = vadd.f32 %v5307_v22, %v2689_v26 }
 0x2f6   : > { %v2930_v38 = vmax.f32 %v2857_v20, 0.0  ;;  %v5562_v16 = vpop.f32.mrf.mxu3  ;;  %v2780_v8 = vadd.f32 %v5316_v4, %v2691_v5  ;;  %v2696_v4 = vadd.f32 %v5490_v19, %v5501_v15 }
 0x2f8   : > { %v5539_v55 = vpop.f32.mrf.mxu1 }
 0x2fb   : > { %v2858_v21 = vpop.f32.mrf.mxu2 }
 0x2fc   : > { %v2859_v53 = vadd.f32 %v2858_v21, %v2770_v58  ;;  %v4038_v21 = vld [vmem:[%s4232_s21 + $0x30] sm:$0xff] }
 0x2fe   : > { %v2931_v17 = vmax.f32 %v2859_v53, 0.0 }
 0x300   : > { %v5547_v44 = vpop.f32.mrf.mxu1  ;;  %v2960_v6 = vpack.c.bf16 %v2931_v17, %v2930_v38 }
 0x302   : > { %3753 = vmatmul.msk.bf16.gmra.mxu3 %vm2205_vm15, %v2960_v6  ;;  %v5574_v6 = vpop.f32.mrf.mxu3 }
 0x303   : > { %v2861_v56 = vpop.f32.mrf.mxu2 }
 0x304   : > { %v2862_v9 = vadd.f32 %v2861_v56, %v2773_v7  ;;  %3789 = vmatmul.msk.bf16.gmra.mxu0 %vm480_vm0, %v4038_v21 }
 0x306   : > { %v2932_v20 = vmax.f32 %v2862_v9, 0.0 }
 0x308   : > { %v5556_v31 = vpop.f32.mrf.mxu1 }
 0x30b   : > { %v2863_v43 = vpop.f32.mrf.mxu2 }
 0x30c   : > { %v2864_v23 = vadd.f32 %v2863_v43, %v2775_v29  ;;  %v4039_v43 = vld [vmem:[%s4232_s21 + $0x38] sm:$0xff] }
 0x30e   : > { %v2933_v58 = vmax.f32 %v2864_v23, 0.0  ;;  %v5582_v23 = vpop.f32.mrf.mxu3 }
 0x310   : > { %v5564_v53 = vpop.f32.mrf.mxu1  ;;  %v2961_v30 = vpack.c.bf16 %v2933_v58, %v2932_v20  ;;  %v2694_v20 = vadd.f32 %v5490_v19, %v5492_v52 }
 0x312   : > { %3754 = vmatmul.msk.bf16.gmra.mxu3 %vm2205_vm15, %v2961_v30  ;;  %v2783_v21 = vadd.f32 %v5324_v61, %v2694_v20  ;;  %v2699_v61 = vadd.f32 %v5490_v19, %v5511_v51  ;;  %v2706_v51 = vadd.f32 %v5490_v19, %v5539_v55 }
 0x313   : > { %v2866_v38 = vpop.f32.mrf.mxu2 }
 0x314   : > { %v2867_v56 = vadd.f32 %v2866_v38, %v2778_v28  ;;  %3790 = vmatmul.msk.bf16.gmra.mxu0 %vm480_vm0, %v4039_v43  ;;  %v2785_v38 = vadd.f32 %v5331_v10, %v2696_v4  ;;  %v2701_v10 = vadd.f32 %v5490_v19, %v5521_v35  ;;  %v2788_v43 = vadd.f32 %v5339_v54, %v2699_v61 }
 0x315   : > { %v2704_v54 = vadd.f32 %v5490_v19, %v5529_v32 }
 0x316   : > { %v2934_v9 = vmax.f32 %v2867_v56, 0.0  ;;  %v5592_v28 = vpop.f32.mrf.mxu3 }
 0x318   : > { %v5571_v17 = vpop.f32.mrf.mxu1 }
 0x31b   : > { %v2868_v48 = vpop.f32.mrf.mxu2 }
 0x31c   : > { %v2869_v7 = vadd.f32 %v2868_v48, %v2780_v8  ;;  %v4040_v48 = vld [vmem:[%s4232_s21 + $0x40] sm:$0xff] }
 0x31e   : > { %v2935_v29 = vmax.f32 %v2869_v7, 0.0 }
 0x320   : > { %v5579_v25 = vpop.f32.mrf.mxu1  ;;  %v2962_v60 = vpack.c.bf16 %v2935_v29, %v2934_v9  ;;  %v5603_v9 = vpop.f32.mrf.mxu3 }
 0x322   : > { %3755 = vmatmul.msk.bf16.gmra.mxu3 %vm2205_vm15, %v2962_v60 }
 0x323   : > { %v2871_v22 = vpop.f32.mrf.mxu2 }
 0x324   : > { %v2872_v30 = vadd.f32 %v2871_v22, %v2783_v21  ;;  %3791 = vmatmul.msk.bf16.gmra.mxu0 %vm480_vm0, %v4040_v48  ;;  %v2790_v22 = vadd.f32 %v5344_v0, %v2701_v10  ;;  %v2795_v0 = vadd.f32 %v5356_v34, %v2706_v51 }
 0x326   : > { %v2936_v56 = vmax.f32 %v2872_v30, 0.0  ;;  %v2884_v48 = vadd.f32 %v5469_v57, %v2795_v0  ;;  %v2709_v57 = vadd.f32 %v5490_v19, %v5547_v44 }
 0x328   : > { %v5588_v58 = vpop.f32.mrf.mxu1  ;;  %v2941_v61 = vmax.f32 %v2884_v48, 0.0 }
 0x32b   : > { %v2873_v26 = vpop.f32.mrf.mxu2 }
 0x32c   : > { %v2874_v5 = vadd.f32 %v2873_v26, %v2785_v38  ;;  %v4041_v38 = vld [vmem:[%s4232_s21 + $0x48] sm:$0xff] }
 0x32e   : > { %v2937_v8 = vmax.f32 %v2874_v5, 0.0  ;;  %v5615_v5 = vpop.f32.mrf.mxu3 }
 0x330   : > { %v5596_v52 = vpop.f32.mrf.mxu1  ;;  %v2963_v15 = vpack.c.bf16 %v2937_v8, %v2936_v56  ;;  %v2793_v56 = vadd.f32 %v5354_v40, %v2704_v54  ;;  %v3176_v8 = vpop.f32.mrf.mxu0  ;;  %v2711_v40 = vadd.f32 %v5490_v19, %v5556_v31  ;;  %v4043_v54 = vld [vmem:[%s4232_s21 + $0x58] sm:$0xff] }
 0x332   : > { %3756 = vmatmul.msk.bf16.gmra.mxu3 %vm2205_vm15, %v2963_v15  ;;  %v2882_v55 = vadd.f32 %v5460_v13, %v2793_v56 }
 0x333   : > { %v2876_v7 = vpop.f32.mrf.mxu2 }
 0x334   : > { %v2877_v60 = vadd.f32 %v2876_v7, %v2788_v43  ;;  %3792 = vmatmul.msk.bf16.gmra.mxu0 %vm480_vm0, %v4041_v38  ;;  %v2940_v10 = vmax.f32 %v2882_v55, 0.0  ;;  %v4042_v43 = vld [vmem:[%s4232_s21 + $0x50] sm:$0xff]  ;;  %v5659_v55 = vld [vmem:[%s5868_s8] ss:$0 sm:$0xff] }
 0x336   : > { %v2938_v21 = vmax.f32 %v2877_v60, 0.0  ;;  %v5626_v7 = vpop.f32.mrf.mxu3  ;;  %v2965_v60 = vpack.c.bf16 %v2941_v61, %v2940_v10 }
 0x338   : > { %v5605_v29 = vpop.f32.mrf.mxu1  ;;  %v3178_v32 = vpop.f32.mrf.mxu0 }
 0x33b   : > { %v2878_v20 = vpop.f32.mrf.mxu2 }
 0x33c   : > { %v2879_v4 = vadd.f32 %v2878_v20, %v2790_v22  ;;  %v2800_v22 = vadd.f32 %v5366_v2, %v2711_v40  ;;  %v2798_v20 = vadd.f32 %v5364_v59, %v2709_v57  ;;  %v2716_v2 = vadd.f32 %v5490_v19, %v5571_v17  ;;  %v5664_v17 = vld [vmem:[%s5866_s6] ss:$0 sm:$0xff] }
 0x33e   : > { %v2939_v30 = vmax.f32 %v2879_v4, 0.0  ;;  %v5637_v13 = vpop.f32.mrf.mxu3  ;;  %v2887_v31 = vadd.f32 %v5479_v46, %v2798_v20  ;;  %v2805_v46 = vadd.f32 %v5379_v1, %v2716_v2  ;;  %v3179_v20 = vadd.f32 %v5659_v55, %v3178_v32 }
 0x340   : > { %v5613_v35 = vpop.f32.mrf.mxu1  ;;  %v2964_v26 = vpack.c.bf16 %v2939_v30, %v2938_v21  ;;  %v3181_v4 = vpop.f32.mrf.mxu0  ;;  %v2889_v21 = vadd.f32 %v5495_v24, %v2800_v22  ;;  %v2714_v24 = vadd.f32 %v5490_v19, %v5564_v53  ;;  %v2894_v53 = vadd.f32 %v5519_v39, %v2805_v46 }
 0x342   : > { %3757 = vmatmul.msk.bf16.gmra.mxu3 %vm2205_vm15, %v2964_v26  ;;  %v2943_v38 = vmax.f32 %v2889_v21, 0.0  ;;  %v2942_v26 = vmax.f32 %v2887_v31, 0.0  ;;  %v2803_v48 = vadd.f32 %v5377_v63, %v2714_v24  ;;  %v3177_v63 = vadd.f32 %v5659_v55, %v3176_v8  ;;  %v4044_v31 = vld [vmem:[%s4232_s21 + $0x60] sm:$0xff] }
 0x344   : > { %3793 = vmatmul.msk.bf16.gmra.mxu0 %vm480_vm0, %v4042_v43  ;;  %v2966_v0 = vpack.c.bf16 %v2943_v38, %v2942_v26  ;;  %v2892_v1 = vadd.f32 %v5506_v36, %v2803_v48  ;;  %v2721_v36 = vadd.f32 %v5490_v19, %v5588_v58 }
 0x346   : > { %v2923_v51 = vpop.f32.mrf.mxu3  ;;  %v2944_v57 = vmax.f32 %v2892_v1, 0.0  ;;  %v2810_v24 = vadd.f32 %v5392_v62, %v2721_v36 }
 0x348   : > { %v5623_v15 = vpop.f32.mrf.mxu1  ;;  %v3183_v44 = vpop.f32.mrf.mxu0 }
 0x350   : > { %v5632_v34 = vpop.f32.mrf.mxu1  ;;  %v5666_v61 = vpop.f32.mrf.mxu0 }
 0x352   : > { %3758 = vmatmul.msk.bf16.gmra.mxu3 %vm2205_vm15, %v2965_v60  ;;  %v2945_v60 = vmax.f32 %v2894_v53, 0.0 }
 0x354   : > { %3794 = vmatmul.msk.bf16.gmra.mxu0 %vm480_vm0, %v4043_v54  ;;  %v2967_v38 = vpack.c.bf16 %v2945_v60, %v2944_v57  ;;  %v2719_v54 = vadd.f32 %v5490_v19, %v5579_v25  ;;  %v2899_v25 = vadd.f32 %v5543_v12, %v2810_v24  ;;  %v3184_v12 = vadd.f32 %v5659_v55, %v3183_v44 }
 0x356   : > { %v2808_v48 = vadd.f32 %v5387_v27, %v2719_v54  ;;  %v2947_v57 = vmax.f32 %v2899_v25, 0.0 }
 0x358   : > { %v5642_v30 = vpop.f32.mrf.mxu1  ;;  %v3188_v39 = vpop.f32.mrf.mxu0  ;;  %v2897_v62 = vadd.f32 %v5531_v37, %v2808_v48 }
 0x360   : > { %v5649_v59 = vpop.f32.mrf.mxu1  ;;  %v5693_v53 = vpop.f32.mrf.mxu0 }
 0x362   : > { %3759 = vmatmul.msk.bf16.gmra.mxu3 %vm2205_vm15, %v2966_v0 }
 0x364   : > { %3795 = vmatmul.msk.bf16.gmra.mxu0 %vm480_vm0, %v4044_v31 }
 0x365   : > { %v3051_v56 = vpop.f32.mrf.mxu3 }
 0x366   : > { %v3052_v43 = vadd.f32 %v5664_v17, %v3051_v56 }
 0x368   : > { %v5669_v10 = vpop.f32.mrf.mxu1  ;;  %v3256_v22 = vadd.f32 %v3177_v63, %v3052_v43  ;;  %v3182_v43 = vadd.f32 %v5659_v55, %v3181_v4  ;;  %v3193_v36 = vpop.f32.mrf.mxu0 }
 0x36a   : > { %v3288_v0 = vmax.f32 %v3256_v22, 0.0 }
 0x36d   : > { %v3053_v40 = vpop.f32.mrf.mxu3 }
 0x36e   : > { %v3054_v21 = vadd.f32 %v5664_v17, %v3053_v40 }
 0x370   : > { %v2743_v8 = vpop.f32.mrf.mxu1  ;;  %v3257_v26 = vadd.f32 %v3179_v20, %v3054_v21  ;;  %v2946_v20 = vmax.f32 %v2897_v62, 0.0  ;;  %v4046_v62 = vld [vmem:[%s4232_s21 + $0x70] sm:$0xff] }
 0x371   : > { %v2744_v32 = vadd.f32 %v5490_v19, %v2743_v8 }
 0x372   : > { %v3289_v2 = vmax.f32 %v3257_v26, 0.0  ;;  %3760 = vmatmul.msk.bf16.gmra.mxu3 %vm2205_vm15, %v2967_v38  ;;  %v4045_v38 = vld [vmem:[%s4232_s21 + $0x68] sm:$0xff]  ;;  %v2968_v8 = vpack.c.bf16 %v2947_v57, %v2946_v20  ;;  %v2724_v26 = vadd.f32 %v5490_v19, %v5596_v52  ;;  %v3187_v52 = vadd.f32 %v5659_v55, %v5666_v61 }
 0x373   : > { %v2833_v58 = vadd.f32 %v5475_v11, %v2744_v32 }
 0x374   : > { %v3871_v46 = vpack.c.bf16 %v3289_v2, %v3288_v0  ;;  %3796 = vmatmul.msk.bf16.gmra.mxu0 %vm480_vm0, %v4045_v38  ;;  %v2813_v24 = vadd.f32 %v5402_v45, %v2724_v26 }
 0x375   : > { %v3056_v56 = vpop.f32.mrf.mxu3  ;;  %v2922_v60 = vadd.f32 %v5637_v13, %v2833_v58 }
 0x376   : > { %3872 = vst [vmem:[%s5689_s24] sm:$0xff] %v3871_v46   ;;  %v3057_v27 = vadd.f32 %v5664_v17, %v3056_v56  ;;  %v3196_v46 = vpop.f32.mrf.mxu0  ;;  %v2902_v56 = vadd.f32 %v5552_v49, %v2813_v24  ;;  %v2731_v49 = vadd.f32 %v5490_v19, %v5623_v15 }
 0x377   : > { %v2956_v37 = vmax.f32 %v2922_v60, 0.0 }
 0x378   : > { %v2745_v1 = vpop.f32.mrf.mxu1  ;;  %v3258_v21 = vadd.f32 %v3182_v43, %v3057_v27  ;;  %v2729_v27 = vadd.f32 %v5490_v19, %v5613_v35  ;;  %v3192_v35 = vadd.f32 %v5659_v55, %v5693_v53 }
 0x379   : > { %v2746_v63 = vadd.f32 %v5490_v19, %v2745_v1  ;;  %v2948_v1 = vmax.f32 %v2902_v56, 0.0 }
 0x37a   : > { %v3290_v44 = vmax.f32 %v3258_v21, 0.0 }
 0x37b   : > { %v2835_v40 = vadd.f32 %v5481_v18, %v2746_v63  ;;  %v2726_v18 = vadd.f32 %v5490_v19, %v5605_v29  ;;  %v3189_v63 = vadd.f32 %v5659_v55, %v3188_v39  ;;  %v2820_v39 = vadd.f32 %v5423_v41, %v2731_v49 }
 0x37d   : > { %v2924_v11 = vadd.f32 %v2923_v51, %v2835_v40  ;;  %v3058_v22 = vpop.f32.mrf.mxu3  ;;  %v2815_v0 = vadd.f32 %v5409_v14, %v2726_v18  ;;  %v2909_v21 = vadd.f32 %v5582_v23, %v2820_v39 }
 0x37e   : > { %v3059_v31 = vadd.f32 %v5664_v17, %v3058_v22  ;;  %v2818_v22 = vadd.f32 %v5419_v42, %v2729_v27 }
 0x37f   : > { %v2957_v4 = vmax.f32 %v2924_v11, 0.0  ;;  %v2904_v29 = vadd.f32 %v5562_v16, %v2815_v0  ;;  %v3198_v16 = vpop.f32.mrf.mxu0 }
 0x380   : > { %v3259_v13 = vadd.f32 %v3184_v12, %v3059_v31  ;;  %v2907_v15 = vadd.f32 %v5574_v6, %v2818_v22  ;;  %v2951_v31 = vmax.f32 %v2909_v21, 0.0  ;;  %v2736_v6 = vadd.f32 %v5490_v19, %v5642_v30 }
 0x381   : > { %v5708_v51 = vpack.c.bf16 %v2957_v4, %v2956_v37  ;;  %v2949_v58 = vmax.f32 %v2904_v29, 0.0  ;;  %v3194_v4 = vadd.f32 %v5659_v55, %v3193_v36  ;;  %v3197_v29 = vadd.f32 %v5659_v55, %v3196_v46 }
 0x382   : > { %v3291_v54 = vmax.f32 %v3259_v13, 0.0  ;;  %3761 = vmatmul.msk.bf16.gmra.mxu3 %vm2205_vm15, %v2968_v8  ;;  %v2950_v37 = vmax.f32 %v2907_v15, 0.0  ;;  %v4047_v8 = vld [vmem:[%s4232_s21 + $0x78] sm:$0xff]  ;;  %v2734_v13 = vadd.f32 %v5490_v19, %v5632_v34  ;;  %v2825_v36 = vadd.f32 %v5442_v47, %v2736_v6  ;;  %s3867_s21 = sshll.u32 %s4188_s13, 7  ;;  %s3385_s13 = scalar_lea.sflag [#allocation4], %s323_s16 }
 0x383   : > { %v2969_v43 = vpack.c.bf16 %v2949_v58, %v2948_v1  ;;  %v3199_v47 = vadd.f32 %v5659_v55, %v3198_v16  ;;  %s3396_s23 = scalar_lea.hbm %s5869_s9, %s3867_s21 }
 0x384   : > { %v3876_v2 = vpack.c.bf16 %v3291_v54, %v3290_v44  ;;  %3797 = vmatmul.msk.bf16.gmra.mxu0 %vm480_vm0, %v4046_v62  ;;  %v2970_v18 = vpack.c.bf16 %v2951_v31, %v2950_v37  ;;  %v2914_v24 = vadd.f32 %v5603_v9, %v2825_v36  ;;  %v2741_v9 = vadd.f32 %v5490_v19, %v5669_v10  ;;  %s3399_s28 = sshll.u32 %s3396_s23, 4  ;;  %s3400_s28 = int_to_ptr.hbm [resolvable:$true] %s3399_s28 }
 0x385   : > { %v3061_v32 = vpop.f32.mrf.mxu3  ;;  %s4062_s29 = sshra.s32 %s3400_s28, 4  ;;  %s4063_s29 = int_to_ptr.hbm [resolvable:$true] %s4062_s29 }
 0x386   : > { %3948 = vst [vmem:[%s5689_s24 + $0x8] sm:$0xff] %v3876_v2   ;;  %v3062_v48 = vadd.f32 %v5664_v17, %v3061_v32  ;;  %v2823_v2 = vadd.f32 %v5432_v3, %v2734_v13  ;;  %v2953_v56 = vmax.f32 %v2914_v24, 0.0  ;;  %s4064_s14 = scalar_lea.hbm %s4063_s29, 128  ;;  %p4069_p0 = scmp.lt.s32.totalorder %s4063_s29, %s5869_s9 }
 0x387   : > { %v3201_v20 = vpop.f32.mrf.mxu0  ;;  %p4065_p11 = scmp.ne.s32.totalorder %s4063_s29, %s4064_s14  ;;  %p4070_p1 = scmp.lt.s32.totalorder %s4068_s26, %s4064_s14 }
 0x388   : > { %v3260_v14 = vadd.f32 %v3187_v52, %v3062_v48  ;;  %v2912_v30 = vadd.f32 %v5592_v28, %v2823_v2  ;;  %v2739_v28 = vadd.f32 %v5490_v19, %v5649_v59  ;;  %v3202_v27 = vadd.f32 %v5659_v55, %v3201_v20 }
 0x389   : > { %p4066_p12 = pnand %p4065_p11, %p4205_p5  ;;  %p4071_p2 = por %p4070_p1, %p4069_p0 }
 0x38a   : > { %v3292_v60 = vmax.f32 %v3260_v14, 0.0  ;;  %v2952_v48 = vmax.f32 %v2912_v30, 0.0  ;;  %v2828_v16 = vadd.f32 %v5458_v50, %v2739_v28 }
 0x38b   : > { %p4067_p13 = pneg %p4066_p12 }
 0x38c   : > { %v2971_v1 = vpack.c.bf16 %v2953_v56, %v2952_v48  ;;  %v2917_v10 = vadd.f32 %v5615_v5, %v2828_v16 }
 0x38d   : > { %v3063_v25 = vpop.f32.mrf.mxu3  ;;  %p4072_p3 = pnand %p4071_p2, %p4067_p13 }
 0x38e   : > { %v3064_v45 = vadd.f32 %v5664_v17, %v3063_v25 }
 0x38f   : > { %v3203_v23 = vpop.f32.mrf.mxu0 }
 0x390   : > { %v3261_v61 = vadd.f32 %v3189_v63, %v3064_v45  ;;  %v2830_v45 = vadd.f32 %v5464_v33, %v2741_v9  ;;  %v3204_v33 = vadd.f32 %v5659_v55, %v3203_v23 }
 0x392   : > { %v3293_v40 = vmax.f32 %v3261_v61, 0.0  ;;  %3762 = vmatmul.msk.bf16.gmra.mxu3 %vm2205_vm15, %v2969_v43  ;;  %v2919_v61 = vadd.f32 %v5626_v7, %v2830_v45 }
 0x394   : > { %v3881_v57 = vpack.c.bf16 %v3293_v40, %v3292_v60  ;;  %3798 = vmatmul.msk.bf16.gmra.mxu0 %vm480_vm0, %v4047_v8  ;;  %v2955_v59 = vmax.f32 %v2919_v61, 0.0  ;;  %v2954_v40 = vmax.f32 %v2917_v10, 0.0 }
 0x395   : > { %v3066_v11 = vpop.f32.mrf.mxu3 }
 0x396   : > { %3949 = vst [vmem:[%s5689_s24 + $0x10] sm:$0xff] %v3881_v57   ;;  %v3067_v12 = vadd.f32 %v5664_v17, %v3066_v11  ;;  %v2972_v11 = vpack.c.bf16 %v2955_v59, %v2954_v40 }
 0x397   : > { %v3206_v32 = vpop.f32.mrf.mxu0 }
 0x398   : > { %v3262_v41 = vadd.f32 %v3192_v35, %v3067_v12  ;;  %v3207_v35 = vadd.f32 %v5659_v55, %v3206_v32 }
 0x39a   : > { %v3294_v26 = vmax.f32 %v3262_v41, 0.0 }
 0x39d   : > { %v3068_v38 = vpop.f32.mrf.mxu3 }
 0x39e   : > { %v3069_v42 = vadd.f32 %v5664_v17, %v3068_v38 }
 0x39f   : > { %v3208_v3 = vpop.f32.mrf.mxu0 }
 0x3a0   : > { %v3263_v53 = vadd.f32 %v3194_v4, %v3069_v42  ;;  %v3209_v37 = vadd.f32 %v5659_v55, %v3208_v3 }
 0x3a2   : > { %v3295_v44 = vmax.f32 %v3263_v53, 0.0  ;;  %3763 = vmatmul.msk.bf16.gmra.mxu3 %vm2205_vm15, %v2970_v18 }
 0x3a4   : > { %v3886_v54 = vpack.c.bf16 %v3295_v44, %v3294_v26 }
 0x3a5   : > { %v3071_v0 = vpop.f32.mrf.mxu3 }
 0x3a6   : > { %3950 = vst [vmem:[%s5689_s24 + $0x18] sm:$0xff] %v3886_v54   ;;  %v3072_v34 = vadd.f32 %v5664_v17, %v3071_v0 }
 0x3a7   : > { %v3211_v49 = vpop.f32.mrf.mxu0 }
 0x3a8   : > { %v3264_v58 = vadd.f32 %v3197_v29, %v3072_v34  ;;  %v3212_v13 = vadd.f32 %v5659_v55, %v3211_v49 }
 0x3aa   : > { %v3296_v46 = vmax.f32 %v3264_v58, 0.0 }
 0x3ad   : > { %v3073_v52 = vpop.f32.mrf.mxu3 }
 0x3ae   : > { %v3074_v25 = vadd.f32 %v5664_v17, %v3073_v52 }
 0x3af   : > { %v3213_v50 = vpop.f32.mrf.mxu0 }
 0x3b0   : > { %v3265_v14 = vadd.f32 %v3199_v47, %v3074_v25  ;;  %v3214_v54 = vadd.f32 %v5659_v55, %v3213_v50 }
 0x3b2   : > { %v3297_v63 = vmax.f32 %v3265_v14, 0.0  ;;  %3764 = vmatmul.msk.bf16.gmra.mxu3 %vm2205_vm15, %v2971_v1 }
 0x3b4   : > { %v3891_v62 = vpack.c.bf16 %v3297_v63, %v3296_v46 }
 0x3b5   : > { %v3076_v43 = vpop.f32.mrf.mxu3 }
 0x3b6   : > { %3951 = vst [vmem:[%s5689_s24 + $0x20] sm:$0xff] %v3891_v62   ;;  %v3077_v19 = vadd.f32 %v5664_v17, %v3076_v43 }
 0x3b7   : > { %v3216_v15 = vpop.f32.mrf.mxu0 }
 0x3b8   : > { %v3266_v39 = vadd.f32 %v3202_v27, %v3077_v19  ;;  %v3217_v34 = vadd.f32 %v5659_v55, %v3216_v15 }
 0x3ba   : > { %v3298_v21 = vmax.f32 %v3266_v39, 0.0 }
 0x3bd   : > { %v3078_v60 = vpop.f32.mrf.mxu3 }
 0x3be   : > { %v3079_v57 = vadd.f32 %v5664_v17, %v3078_v60 }
 0x3bf   : > { %v3218_v4 = vpop.f32.mrf.mxu0 }
 0x3c0   : > { %v3267_v22 = vadd.f32 %v3204_v33, %v3079_v57  ;;  %v3219_v47 = vadd.f32 %v5659_v55, %v3218_v4 }
 0x3c2   : > { %v3299_v7 = vmax.f32 %v3267_v22, 0.0  ;;  %3765 = vmatmul.msk.bf16.gmra.mxu3 %vm2205_vm15, %v2972_v11 }
 0x3c4   : > { %v3896_v5 = vpack.c.bf16 %v3299_v7, %v3298_v21 }
 0x3c5   : > { %v3081_v20 = vpop.f32.mrf.mxu3 }
 0x3c6   : > { %3952 = vst [vmem:[%s5689_s24 + $0x28] sm:$0xff] %v3896_v5   ;;  %v3082_v12 = vadd.f32 %v5664_v17, %v3081_v20 }
 0x3c7   : > { %v3221_v53 = vpop.f32.mrf.mxu0 }
 0x3c8   : > { %v3268_v38 = vadd.f32 %v3207_v35, %v3082_v12  ;;  %v3222_v63 = vadd.f32 %v5659_v55, %v3221_v53 }
 0x3ca   : > { %v3300_v8 = vmax.f32 %v3268_v38, 0.0 }
 0x3cd   : > { %v3083_v31 = vpop.f32.mrf.mxu3 }
 0x3ce   : > { %v3084_v41 = vadd.f32 %v5664_v17, %v3083_v31 }
 0x3cf   : > { %v3223_v30 = vpop.f32.mrf.mxu0 }
 0x3d0   : > { %v3269_v42 = vadd.f32 %v3209_v37, %v3084_v41  ;;  %v3224_v16 = vadd.f32 %v5659_v55, %v3223_v30 }
 0x3d2   : > { %v3301_v23 = vmax.f32 %v3269_v42, 0.0  ;;  %3766 = vmatmul.msk.bf16.gmra.mxu3 %vm2205_vm15, %v5708_v51 }
 0x3d4   : > { %v3901_v18 = vpack.c.bf16 %v3301_v23, %v3300_v8 }
 0x3d5   : > { %v3086_v6 = vpop.f32.mrf.mxu3 }
 0x3d6   : > { %3953 = vst [vmem:[%s5689_s24 + $0x30] sm:$0xff] %v3901_v18   ;;  %v3087_v26 = vadd.f32 %v5664_v17, %v3086_v6 }
 0x3d7   : > { %v3226_v48 = vpop.f32.mrf.mxu0 }
 0x3d8   : > { %v3270_v36 = vadd.f32 %v3212_v13, %v3087_v26  ;;  %v3227_v40 = vadd.f32 %v5659_v55, %v3226_v48 }
 0x3da   : > { %v3302_v32 = vmax.f32 %v3270_v36, 0.0 }
 0x3dd   : > { %v3088_v44 = vpop.f32.mrf.mxu3 }
 0x3de   : > { %v3089_v0 = vadd.f32 %v5664_v17, %v3088_v44 }
 0x3df   : > { %v3228_v46 = vpop.f32.mrf.mxu0 }
 0x3e0   : > { %v3271_v2 = vadd.f32 %v3214_v54, %v3089_v0  ;;  %v3229_v11 = vadd.f32 %v5659_v55, %v3228_v46 }
 0x3e2   : > { %v3303_v24 = vmax.f32 %v3271_v2, 0.0 }
 0x3e4   : > { %v3906_v51 = vpack.c.bf16 %v3303_v24, %v3302_v32 }
 0x3e5   : > { %v3091_v29 = vpop.f32.mrf.mxu3 }
 0x3e6   : > { %3954 = vst [vmem:[%s5689_s24 + $0x38] sm:$0xff] %v3906_v51   ;;  %v3092_v56 = vadd.f32 %v5664_v17, %v3091_v29 }
 0x3e7   : > { %v3231_v10 = vpop.f32.mrf.mxu0 }
 0x3e8   : > { %v3272_v58 = vadd.f32 %v3217_v34, %v3092_v56  ;;  %v3232_v12 = vadd.f32 %v5659_v55, %v3231_v10 }
 0x3ea   : > { %v3304_v1 = vmax.f32 %v3272_v58, 0.0 }
 0x3ed   : > { %v3093_v52 = vpop.f32.mrf.mxu3 }
 0x3ee   : > { %v3094_v25 = vadd.f32 %v5664_v17, %v3093_v52 }
 0x3ef   : > { %v3233_v33 = vpop.f32.mrf.mxu0 }
 0x3f0   : > { %v3273_v3 = vadd.f32 %v3219_v47, %v3094_v25  ;;  %v3234_v41 = vadd.f32 %v5659_v55, %v3233_v33 }
 0x3f2   : > { %v3305_v9 = vmax.f32 %v3273_v3, 0.0 }
 0x3f4   : > { %v3911_v14 = vpack.c.bf16 %v3305_v9, %v3304_v1 }
 0x3f5   : > { %v3096_v28 = vpop.f32.mrf.mxu3 }
 0x3f6   : > { %3955 = vst [vmem:[%s5689_s24 + $0x40] sm:$0xff] %v3911_v14   ;;  %v3097_v45 = vadd.f32 %v5664_v17, %v3096_v28 }
 0x3f7   : > { %v3236_v35 = vpop.f32.mrf.mxu0 }
 0x3f8   : > { %v3274_v43 = vadd.f32 %v3222_v63, %v3097_v45  ;;  %v3237_v26 = vadd.f32 %v5659_v55, %v3236_v35 }
 0x3fa   : > { %v3306_v27 = vmax.f32 %v3274_v43, 0.0 }
 0x3fd   : > { %v3098_v62 = vpop.f32.mrf.mxu3 }
 0x3fe   : > { %v3099_v49 = vadd.f32 %v5664_v17, %v3098_v62 }
 0x3ff   : > { %v3238_v42 = vpop.f32.mrf.mxu0 }
 0x400   : > { %v3275_v61 = vadd.f32 %v3224_v16, %v3099_v49  ;;  %v3239_v0 = vadd.f32 %v5659_v55, %v3238_v42 }
 0x402   : > { %v3307_v19 = vmax.f32 %v3275_v61, 0.0 }
 0x404   : > { %v3916_v59 = vpack.c.bf16 %v3307_v19, %v3306_v27 }
 0x405   : > { %v3101_v60 = vpop.f32.mrf.mxu3 }
 0x406   : > { %3956 = vst [vmem:[%s5689_s24 + $0x48] sm:$0xff] %v3916_v59   ;;  %v3102_v39 = vadd.f32 %v5664_v17, %v3101_v60 }
 0x407   : > { %v3241_v13 = vpop.f32.mrf.mxu0 }
 0x408   : > { %v3276_v50 = vadd.f32 %v3227_v40, %v3102_v39  ;;  %v3242_v56 = vadd.f32 %v5659_v55, %v3241_v13 }
 0x40a   : > { %v3308_v7 = vmax.f32 %v3276_v50, 0.0 }
 0x40d   : > { %v3103_v57 = vpop.f32.mrf.mxu3 }
 0x40e   : > { %v3104_v22 = vadd.f32 %v5664_v17, %v3103_v57 }
 0x40f   : > { %v3243_v51 = vpop.f32.mrf.mxu0 }
 0x410   : > { %v3277_v21 = vadd.f32 %v3229_v11, %v3104_v22  ;;  %v3244_v25 = vadd.f32 %v5659_v55, %v3243_v51 }
 0x412   : > { %v3309_v5 = vmax.f32 %v3277_v21, 0.0 }
 0x414   : > { %v3921_v20 = vpack.c.bf16 %v3309_v5, %v3308_v7 }
 0x415   : > { %v3106_v15 = vpop.f32.mrf.mxu3 }
 0x416   : > { %3957 = vst [vmem:[%s5689_s24 + $0x50] sm:$0xff] %v3921_v20   ;;  %v3107_v31 = vadd.f32 %v5664_v17, %v3106_v15 }
 0x417   : > { %v3246_v58 = vpop.f32.mrf.mxu0 }
 0x418   : > { %v3278_v37 = vadd.f32 %v3232_v12, %v3107_v31  ;;  %v3247_v45 = vadd.f32 %v5659_v55, %v3246_v58 }
 0x41a   : > { %v3310_v23 = vmax.f32 %v3278_v37, 0.0 }
 0x41d   : > { %v3108_v38 = vpop.f32.mrf.mxu3 }
 0x41e   : > { %v3109_v4 = vadd.f32 %v5664_v17, %v3108_v38 }
 0x41f   : > { %v3248_v63 = vpop.f32.mrf.mxu0 }
 0x420   : > { %v3279_v8 = vadd.f32 %v3234_v41, %v3109_v4  ;;  %v3249_v49 = vadd.f32 %v5659_v55, %v3248_v63 }
 0x422   : > { %v3311_v18 = vmax.f32 %v3279_v8, 0.0 }
 0x424   : > { %v3926_v6 = vpack.c.bf16 %v3311_v18, %v3310_v23 }
 0x425   : > { %v3111_v53 = vpop.f32.mrf.mxu3 }
 0x426   : > { %3958 = vst [vmem:[%s5689_s24 + $0x58] sm:$0xff] %v3926_v6   ;;  %v3112_v44 = vadd.f32 %v5664_v17, %v3111_v53 }
 0x427   : > { %v3251_v27 = vpop.f32.mrf.mxu0 }
 0x428   : > { %v3280_v54 = vadd.f32 %v3237_v26, %v3112_v44  ;;  %v3252_v39 = vadd.f32 %v5659_v55, %v3251_v27 }
 0x42a   : > { %v3312_v24 = vmax.f32 %v3280_v54, 0.0 }
 0x42d   : > { %v3113_v36 = vpop.f32.mrf.mxu3 }
 0x42e   : > { %v3114_v2 = vadd.f32 %v5664_v17, %v3113_v36 }
 0x42f   : > { %v3253_v57 = vpop.f32.mrf.mxu0 }
 0x430   : > { %v3281_v32 = vadd.f32 %v3239_v0, %v3114_v2  ;;  %v3254_v22 = vadd.f32 %v5659_v55, %v3253_v57 }
 0x432   : > { %v3313_v30 = vmax.f32 %v3281_v32, 0.0 }
 0x434   : > { %v3931_v29 = vpack.c.bf16 %v3313_v30, %v3312_v24 }
 0x435   : > { %v3116_v34 = vpop.f32.mrf.mxu3 }
 0x436   : > { %3959 = vst [vmem:[%s5689_s24 + $0x60] sm:$0xff] %v3931_v29   ;;  %v3117_v52 = vadd.f32 %v5664_v17, %v3116_v34 }
 0x438   : > { %v3282_v47 = vadd.f32 %v3242_v56, %v3117_v52 }
 0x43a   : > { %v3314_v9 = vmax.f32 %v3282_v47, 0.0 }
 0x43d   : > { %v3118_v48 = vpop.f32.mrf.mxu3 }
 0x43e   : > { %v3119_v3 = vadd.f32 %v5664_v17, %v3118_v48 }
 0x440   : > { %v3283_v1 = vadd.f32 %v3244_v25, %v3119_v3 }
 0x442   : > { %v3315_v14 = vmax.f32 %v3283_v1, 0.0 }
 0x444   : > { %v3936_v28 = vpack.c.bf16 %v3315_v14, %v3314_v9 }
 0x445   : > { %v3121_v46 = vpop.f32.mrf.mxu3 }
 0x446   : > { %3960 = vst [vmem:[%s5689_s24 + $0x68] sm:$0xff] %v3936_v28   ;;  %v3122_v62 = vadd.f32 %v5664_v17, %v3121_v46 }
 0x448   : > { %v3284_v16 = vadd.f32 %v3247_v45, %v3122_v62 }
 0x44a   : > { %v3316_v19 = vmax.f32 %v3284_v16, 0.0 }
 0x44d   : > { %v3123_v43 = vpop.f32.mrf.mxu3 }
 0x44e   : > { %v3124_v61 = vadd.f32 %v5664_v17, %v3123_v43 }
 0x450   : > { %v3285_v10 = vadd.f32 %v3249_v49, %v3124_v61 }
 0x452   : > { %v3317_v59 = vmax.f32 %v3285_v10, 0.0 }
 0x454   : > { %v3941_v60 = vpack.c.bf16 %v3317_v59, %v3316_v19 }
 0x455   : > { %v3126_v40 = vpop.f32.mrf.mxu3 }
 0x456   : > { %3961 = vst [vmem:[%s5689_s24 + $0x70] sm:$0xff] %v3941_v60   ;;  %v3127_v33 = vadd.f32 %v5664_v17, %v3126_v40 }
 0x458   : > { %v3286_v11 = vadd.f32 %v3252_v39, %v3127_v33 }
 0x45a   : > { %v3318_v5 = vmax.f32 %v3286_v11, 0.0 }
 0x45d   : > { %v3128_v50 = vpop.f32.mrf.mxu3 }
 0x45e   : > { %v3129_v21 = vadd.f32 %v5664_v17, %v3128_v50 }
 0x460   : > { %v3287_v7 = vadd.f32 %v3254_v22, %v3129_v21 }
 0x462   : > { %v3319_v20 = vmax.f32 %v3287_v7, 0.0 }
 0x464   : > { %v3946_v15 = vpack.c.bf16 %v3319_v20, %v3318_v5 }
 0x466   : > { %3962 = vst [vmem:[%s5689_s24 + $0x78] sm:$0xff] %v3946_v15  }
 0x467   : > { %4075 = shalt.err (!%p4072_p3)
}
 0x468   : > { %s4116_s16 = smov 4  }
 0x469   : > { %3969 = dma.vmem_to_hbm [thread:$0]  (%p4205_p5), %s3398_s27, 2048, %s3400_s28, %s3385_s13, %s4114_s25, %s4114_s25, %s4116_s16  }
 0x46a PF: > { %p3975_p4 = scmp.ge.s32.totalorder %s4110_s12, 2  ;;  %s3414_s24 = sand.u32 1, %s4098_s30  }
 0x46b   : > { %s3415_s29 = scalar_lea.sflag [#allocation4], %s3414_s24 }
 0x46c   : > { %p3972_p7 = pnand %p3975_p4, %p4209_p6 }
 0x46e   : > { %p3973_p8 = pneg %p3972_p7 }
 0x470   : > { %4093 = dma.done.wait (%p3973_p8), %s3415_s29, 2048  }
 0x471   : > { %4095 = vsyncadd (%p3973_p8), %s3415_s29, 4294965248  ;;  %p19_p9 = scmp.ge.s32.totalorder %s4192_s15, 6   ;;  %s5898_s30 = smov %s4102_s10 }
 0x472   : > { %s5899_s10 = smov %s4106_s11  ;;  %s5900_s11 = smov %s4203_s18 }
 0x473   : > { %s5901_s12 = smov %s4192_s15  ;;  %21 = sbr.rel (!%p19_p9) target bundleno = 3 (0x3), region = 92 }
 0x478   :  { %3421 = vsyncpa [#allocation4], 1 }
 0x479   :  { %3423 = vsyncpa [#allocation4 + $0x1], 1 }

</bundles_post_ra>
